<compile_context>
chip_gen: v7x
topology: tpu7x:2x2x1
jax: 0.10.0
libtpu: 0.0.40
codegen_flags: <defaults>
</compile_context>

<pallas_src>
import numpy as np
import jax
import jax.numpy as jnp
from jax.experimental import pallas as pl
from jax.experimental.pallas import tpu as pltpu

# ---------------- config (small, consistent with the module) ----------------
B = 2                       # batch
H = W = 8                   # input_resolution
C = 32                      # dim
WS = 4                      # window_size
NH = 2                      # num_heads
HD = C // NH                # head dim
N = WS * WS                 # tokens per window
NW = (H // WS) * (W // WS)  # windows per image
M_TOK = B * H * W           # 128 tokens total
DEPTH = 2                   # blocks: shift=0, shift=WS//2
MLP_RATIO = 4
HIDDEN = C * MLP_RATIO
SCALE = HD ** -0.5          # qk_scale=None -> head_dim**-0.5
EPS = 1e-5
NEG = -1e9                  # additive "not in my window" mask


# ---------------- fused Pallas kernel: one Swin block per grid step ----------------
def _basic_layer_kernel(x_ref,
                        ln1w_ref, ln1b_ref,
                        qkvw_ref, qkvb_ref,
                        projw_ref, projb_ref, bias_ref,
                        ln2w_ref, ln2b_ref,
                        fc1w_ref, fc1b_ref, fc2w_ref, fc2b_ref,
                        o_ref, x_sc):
    f32 = jnp.float32
    bf16 = jnp.bfloat16
    d = pl.program_id(0)

    @pl.when(d == 0)
    def _():
        x_sc[...] = x_ref[...].astype(f32)          # residual stream lives in VMEM scratch

    def ln(v, w, b):                                # biased-variance LayerNorm, f32 on VPU
        mu = jnp.mean(v, axis=-1, keepdims=True)
        vc = v - mu
        var = jnp.mean(vc * vc, axis=-1, keepdims=True)
        return vc * jax.lax.rsqrt(var + EPS) * w + b

    # -------- (shifted) window multi-head self-attention (token-major; shift/window
    # -------- partition folded into bias_ref at prep time) --------
    h1 = ln(x_sc[...], ln1w_ref[0], ln1b_ref[0])
    # fused QKV: one (128,C)@(C,3C) MXU matmul, bf16 operands, f32 accumulate.
    # Q columns are pre-scaled by head_dim**-0.5 at prep time.
    qkv = jnp.dot(h1.astype(bf16), qkvw_ref[0], preferred_element_type=f32) + qkvb_ref[0]

    av_heads = []
    for hd in range(NH):                            # static unroll (2 heads)
        q = qkv[:, hd * HD:(hd + 1) * HD]                       # (128, HD) static lane slice
        k = qkv[:, C + hd * HD:C + (hd + 1) * HD]               # (128, HD)
        # lane-dense (128,128) scores + precomputed token-basis bias:
        #   rel-pos bias (+ shift mask) within a window, -1e9 across windows.
        s = jnp.dot(q.astype(bf16), k.astype(bf16).T, preferred_element_type=f32)
        s = s + bias_ref[0, hd, :, :].astype(f32)
        s = s - jnp.max(s, axis=-1, keepdims=True)
        e = jnp.exp(s)
        p = e * pl.reciprocal(jnp.sum(e, axis=-1, keepdims=True), approx=True)
        v = qkv[:, 2 * C + hd * HD:2 * C + (hd + 1) * HD]       # slice V after softmax
        av_heads.append(jnp.dot(p.astype(bf16), v.astype(bf16),
                                preferred_element_type=f32))    # (128, HD)
    av = jnp.concatenate(av_heads, axis=-1)                     # (128, C) head-major concat
    attn = jnp.dot(av.astype(bf16), projw_ref[0], preferred_element_type=f32) + projb_ref[0]
    x_sc[...] = x_sc[...] + attn                                 # residual (drop_path=0)

    # -------- MLP --------
    h2 = ln(x_sc[...], ln2w_ref[0], ln2b_ref[0])
    hmid = jnp.dot(h2.astype(bf16), fc1w_ref[0], preferred_element_type=f32) + fc1b_ref[0]
    # TODO(synk): PyTorch nn.GELU() default is exact erf; tanh-approx GELU (EUP path, always
    # supported by Mosaic) deviates by <~4e-4 — swap to approximate=False if strict parity
    # with the erf form is required.
    hmid = jax.nn.gelu(hmid, approximate=True)
    x_sc[...] = x_sc[...] + (jnp.dot(hmid.astype(bf16), fc2w_ref[0],
                                     preferred_element_type=f32) + fc2b_ref[0])

    @pl.when(d == pl.num_programs(0) - 1)
    def _():
        o_ref[...] = x_sc[...].astype(o_ref.dtype)


def _param_spec(arr):
    """Per-block parameter: leading DEPTH axis selected by the grid step."""
    n_tail = arr.ndim - 1
    return pl.BlockSpec((1,) + arr.shape[1:],
                        lambda d, _n=n_tail: (d,) + (0,) * _n)


_PARAM_ORDER = ('ln1_w', 'ln1_b', 'qkv_w', 'qkv_b', 'proj_w', 'proj_b', 'bias_mask',
                'ln2_w', 'ln2_b', 'fc1_w', 'fc1_b', 'fc2_w', 'fc2_b')


def basic_layer_apply(x, ops):
    """x: (B, H*W, C).  ops: stacked/preprocessed parameters from prepare_layer_ops()."""
    Bb, L, Cc = x.shape
    M = Bb * L
    xf = x.reshape(M, Cc)
    params = tuple(ops[k] for k in _PARAM_ORDER)
    in_specs = [pl.BlockSpec((M, Cc), lambda d: (0, 0))] + [_param_spec(a) for a in params]
    out = pl.pallas_call(
        _basic_layer_kernel,
        out_shape=jax.ShapeDtypeStruct((M, Cc), x.dtype),
        grid=(DEPTH,),
        in_specs=in_specs,
        out_specs=pl.BlockSpec((M, Cc), lambda d: (0, 0)),
        scratch_shapes=[pltpu.VMEM((M, Cc), jnp.float32)],
        compiler_params=pltpu.CompilerParams(dimension_semantics=("arbitrary",)),
    )(xf, *params)
    return out.reshape(Bb, L, Cc)


# ---------------- one-time host-side prep (hoisted out of the forward) ----------------
def compute_relative_position_index_np(ws):
    coords = np.stack(np.meshgrid(np.arange(ws), np.arange(ws), indexing='ij'))
    cf = coords.reshape(2, -1)
    rel = (cf[:, :, None] - cf[:, None, :]).transpose(1, 2, 0).astype(np.int64)
    rel[:, :, 0] += ws - 1
    rel[:, :, 1] += ws - 1
    rel[:, :, 0] *= 2 * ws - 1
    return rel.sum(-1).astype(np.int32)                    # (N, N)


def compute_attn_mask_np(Hh, Ww, ws, shift):
    img_mask = np.zeros((1, Hh, Ww, 1), np.float32)
    cnt = 0
    for hs in (slice(0, -ws), slice(-ws, -shift), slice(-shift, None)):
        for wsl in (slice(0, -ws), slice(-ws, -shift), slice(-shift, None)):
            img_mask[:, hs, wsl, :] = cnt
            cnt += 1
    mw = (img_mask.reshape(1, Hh // ws, ws, Ww // ws, ws, 1)
                  .transpose(0, 1, 3, 2, 4, 5).reshape(-1, ws * ws))
    am = mw[:, None, :] - mw[:, :, None]
    return np.where(am != 0, -100.0, 0.0).astype(np.float32)   # (NW, N, N)


def build_permutation_np(shift):
    """Row-permutation matrix: token-major (b,h,w) -> window-major after roll(-shift)."""
    P = np.zeros((M_TOK, M_TOK), np.float32)
    nwh, nww = H // WS, W // WS
    for b in range(B):
        for wh in range(nwh):
            for ww in range(nww):
                for i in range(WS):
                    for j in range(WS):
                        dst = ((b * nwh + wh) * nww + ww) * N + i * WS + j
                        sh = (wh * WS + i + shift) % H
                        sw = (ww * WS + j + shift) % W
                        P[dst, b * H * W + sh * W + sw] = 1.0
    return P


def init_block_params(key):
    ks = jax.random.split(key, 5)
    return {
        'norm1_w': jnp.ones((C,), jnp.float32), 'norm1_b': jnp.zeros((C,), jnp.float32),
        'qkv_w': 0.02 * jax.random.normal(ks[0], (C, 3 * C), jnp.float32),
        'qkv_b': jnp.zeros((3 * C,), jnp.float32),
        'proj_w': 0.02 * jax.random.normal(ks[1], (C, C), jnp.float32),
        'proj_b': jnp.zeros((C,), jnp.float32),
        'rel_table': 0.02 * jax.random.normal(ks[2], ((2 * WS - 1) ** 2, NH), jnp.float32),
        'norm2_w': jnp.ones((C,), jnp.float32), 'norm2_b': jnp.zeros((C,), jnp.float32),
        'fc1_w': 0.02 * jax.random.normal(ks[3], (C, HIDDEN), jnp.float32),
        'fc1_b': jnp.zeros((HIDDEN,), jnp.float32),
        'fc2_w': 0.02 * jax.random.normal(ks[4], (HIDDEN, C), jnp.float32),
        'fc2_b': jnp.zeros((C,), jnp.float32),
    }


def prepare_layer_ops(params_list):
    """Stack / pre-fold per-block parameters for the fused kernel (numpy, one-time)."""
    rel_index = compute_relative_position_index_np(WS)
    shift_mask = compute_attn_mask_np(H, W, WS, WS // 2)          # (NW, N, N)

    ln1_w, ln1_b, ln2_w, ln2_b = [], [], [], []
    qkv_w, qkv_b, proj_w, proj_b, bias_mask = [], [], [], [], []
    fc1_w, fc1_b, fc2_w, fc2_b = [], [], [], []

    for i, p in enumerate(params_list):
        shift = 0 if i % 2 == 0 else WS // 2
        P = build_permutation_np(shift)

        ln1_w.append(np.asarray(p['norm1_w'], np.float32).reshape(1, C))
        ln1_b.append(np.asarray(p['norm1_b'], np.float32).reshape(1, C))
        ln2_w.append(np.asarray(p['norm2_w'], np.float32).reshape(1, C))
        ln2_b.append(np.asarray(p['norm2_b'], np.float32).reshape(1, C))

        # fused QKV weight (C, 3C) = [Q | K | V], heads-major inside each; fold qk scale
        # into the Q columns / Q bias.
        w = np.array(p['qkv_w'], np.float32)
        bvec = np.array(p['qkv_b'], np.float32)
        w[:, :C] *= SCALE
        bvec[:C] *= SCALE
        qkv_w.append(w)
        qkv_b.append(bvec.reshape(1, 3 * C))

        proj_w.append(np.asarray(p['proj_w'], np.float32))        # (C, C), (in, out)
        proj_b.append(np.asarray(p['proj_b'], np.float32).reshape(1, C))

        rel_tab = np.asarray(p['rel_table'], np.float32)
        rel_bias = rel_tab[rel_index.reshape(-1)].reshape(N, N, NH).transpose(2, 0, 1)  # (NH,N,N)

        # Block-diagonal additive bias in window-major order (rel-pos bias + shift mask on
        # the diagonal blocks, -1e9 off-block), then conjugated by the permutation so the
        # kernel can stay token-major:  bias_token = P.T @ bias_window @ P  (exact — P is a
        # permutation, each output entry is a single selected entry).
        head_bias = []
        for hd in range(NH):
            bm = np.full((M_TOK, M_TOK), NEG, np.float32)
            for bb in range(B):
                for wnd in range(NW):
                    r0 = (bb * NW + wnd) * N
                    add = shift_mask[wnd] if shift > 0 else 0.0
                    bm[r0:r0 + N, r0:r0 + N] = rel_bias[hd] + add
            head_bias.append(P.T @ bm @ P)
        bias_mask.append(np.stack(head_bias, axis=0))              # (NH, M_TOK, M_TOK)

        fc1_w.append(np.asarray(p['fc1_w'], np.float32))
        fc1_b.append(np.asarray(p['fc1_b'], np.float32).reshape(1, HIDDEN))
        fc2_w.append(np.asarray(p['fc2_w'], np.float32))
        fc2_b.append(np.asarray(p['fc2_b'], np.float32).reshape(1, C))

    st_f32 = lambda xs: jnp.asarray(np.stack(xs, axis=0).astype(np.float32))
    st_bf16 = lambda xs: jnp.asarray(np.stack(xs, axis=0), dtype=jnp.bfloat16)
    return {
        # small f32 operands (added on the VPU — v5e has no bf16 VPU)
        'ln1_w': st_f32(ln1_w), 'ln1_b': st_f32(ln1_b),
        'ln2_w': st_f32(ln2_w), 'ln2_b': st_f32(ln2_b),
        'qkv_b': st_f32(qkv_b), 'proj_b': st_f32(proj_b),
        'fc1_b': st_f32(fc1_b), 'fc2_b': st_f32(fc2_b),
        # large constants stored bf16 in HBM (halves constant DMA); MXU takes bf16 natively,
        # the bias is upcast to f32 in-kernel before the VPU add.
        'qkv_w': st_bf16(qkv_w), 'proj_w': st_bf16(proj_w),
        'bias_mask': st_bf16(bias_mask),
        'fc1_w': st_bf16(fc1_w), 'fc2_w': st_bf16(fc2_w),
    }


# TODO(synk): downsample/upsample are None in the default BasicLayer construction and are
# therefore not instantiated here (drop/attn_drop/drop_path=0 -> identity as well).

if __name__ == "__main__":
    key = jax.random.PRNGKey(0)
    keys = jax.random.split(key, DEPTH + 1)
    x = jax.random.normal(keys[0], (B, H * W, C), jnp.float32)
    params = [init_block_params(k) for k in keys[1:]]
    ops = prepare_layer_ops(params)          # one-time prep, outside the forward

    fn = jax.jit(basic_layer_apply)
    out = fn(x, ops)
    jax.block_until_ready(out)
    assert out.shape == (B, H * W, C) and out.dtype == jnp.float32
    assert bool(jnp.all(jnp.isfinite(out)))
    print("KERNEL_OK")
</pallas_src>

<mosaic_0001>
module attributes {stable_mosaic.version = 11 : i64} {
  func.func @_basic_layer_kernel(%arg0: i32, %arg1: memref<128x32xf32, #tpu.memory_space<vmem>>, %arg2: memref<1x1x32xf32, #tpu.memory_space<vmem>>, %arg3: memref<1x1x32xf32, #tpu.memory_space<vmem>>, %arg4: memref<1x32x96xbf16, #tpu.memory_space<vmem>>, %arg5: memref<1x1x96xf32, #tpu.memory_space<vmem>>, %arg6: memref<1x32x32xbf16, #tpu.memory_space<vmem>>, %arg7: memref<1x1x32xf32, #tpu.memory_space<vmem>>, %arg8: memref<1x2x128x128xbf16, #tpu.memory_space<vmem>>, %arg9: memref<1x1x32xf32, #tpu.memory_space<vmem>>, %arg10: memref<1x1x32xf32, #tpu.memory_space<vmem>>, %arg11: memref<1x32x128xbf16, #tpu.memory_space<vmem>>, %arg12: memref<1x1x128xf32, #tpu.memory_space<vmem>>, %arg13: memref<1x128x32xbf16, #tpu.memory_space<vmem>>, %arg14: memref<1x1x32xf32, #tpu.memory_space<vmem>>, %arg15: memref<128x32xf32, #tpu.memory_space<vmem>>, %arg16: memref<128x32xf32, #tpu.memory_space<vmem>>) attributes {dimension_semantics = [#tpu.dimension_semantics<arbitrary>], iteration_bounds = array<i64: 2>, scalar_prefetch = 0 : i64, scratch_operands = 1 : i64, tpu.core_type = #tpu.core_type<tc>, window_params = [{pipeline_mode = #tpu.pipeline_mode<synchronous>, transform_indices = @transform_0, window_bounds = array<i64: 128, 32>}, {transform_indices = @transform_1, window_bounds = array<i64: 1, 1, 32>}, {transform_indices = @transform_2, window_bounds = array<i64: 1, 1, 32>}, {transform_indices = @transform_3, window_bounds = array<i64: 1, 32, 96>}, {transform_indices = @transform_4, window_bounds = array<i64: 1, 1, 96>}, {transform_indices = @transform_5, window_bounds = array<i64: 1, 32, 32>}, {transform_indices = @transform_6, window_bounds = array<i64: 1, 1, 32>}, {transform_indices = @transform_7, window_bounds = array<i64: 1, 2, 128, 128>}, {transform_indices = @transform_8, window_bounds = array<i64: 1, 1, 32>}, {transform_indices = @transform_9, window_bounds = array<i64: 1, 1, 32>}, {transform_indices = @transform_10, window_bounds = array<i64: 1, 32, 128>}, {transform_indices = @transform_11, window_bounds = array<i64: 1, 1, 128>}, {transform_indices = @transform_12, window_bounds = array<i64: 1, 128, 32>}, {transform_indices = @transform_13, window_bounds = array<i64: 1, 1, 32>}, {pipeline_mode = #tpu.pipeline_mode<synchronous>, transform_indices = @transform_14, window_bounds = array<i64: 128, 32>}]} {
    %c0_i32 = arith.constant 0 : i32
    %0 = arith.cmpi eq, %arg0, %c0_i32 : i32
    %1 = arith.extui %0 : i1 to i32
    %c0_i32_0 = arith.constant 0 : i32
    %2 = arith.cmpi ne, %1, %c0_i32_0 : i32
    scf.if %2 {
      %c0_81 = arith.constant 0 : index
      %c0_82 = arith.constant 0 : index
      %156 = vector.load %arg1[%c0_81, %c0_82] : memref<128x32xf32, #tpu.memory_space<vmem>>, vector<128x32xf32>
      %c0_83 = arith.constant 0 : index
      %c0_84 = arith.constant 0 : index
      %157 = vector.load %arg16[%c0_83, %c0_84] : memref<128x32xf32, #tpu.memory_space<vmem>>, vector<128x32xf32>
      tpu.vector_store %arg16[%c0_83, %c0_84], %156 {strides = array<i32>} : memref<128x32xf32, #tpu.memory_space<vmem>>, vector<128x32xf32>,
    } else {
    }
    %c0 = arith.constant 0 : index
    %c0_1 = arith.constant 0 : index
    %3 = vector.load %arg16[%c0, %c0_1] : memref<128x32xf32, #tpu.memory_space<vmem>>, vector<128x32xf32>
    %c0_2 = arith.constant 0 : index
    %c0_3 = arith.constant 0 : index
    %c0_4 = arith.constant 0 : index
    %4 = vector.load %arg2[%c0_2, %c0_3, %c0_4] : memref<1x1x32xf32, #tpu.memory_space<vmem>>, vector<1x1x32xf32>
    %5 = vector.shape_cast %4 : vector<1x1x32xf32> to vector<1x32xf32>
    %c0_5 = arith.constant 0 : index
    %c0_6 = arith.constant 0 : index
    %c0_7 = arith.constant 0 : index
    %6 = vector.load %arg3[%c0_5, %c0_6, %c0_7] : memref<1x1x32xf32, #tpu.memory_space<vmem>>, vector<1x1x32xf32>
    %7 = vector.shape_cast %6 : vector<1x1x32xf32> to vector<1x32xf32>
    %cst = arith.constant dense<0.000000e+00> : vector<128xf32>
    %8 = vector.multi_reduction <add>, %3, %cst [1] : vector<128x32xf32> to vector<128xf32>
    %9 = vector.shape_cast %8 : vector<128xf32> to vector<128x1xf32>
    %cst_8 = arith.constant 3.200000e+01 : f32
    %10 = vector.broadcast %cst_8 : f32 to vector<128x1xf32>
    %11 = arith.divf %9, %10 : vector<128x1xf32>
    %12 = vector.broadcast %11 : vector<128x1xf32> to vector<128x32xf32>
    %13 = arith.subf %3, %12 : vector<128x32xf32>
    %14 = arith.mulf %13, %13 : vector<128x32xf32>
    %cst_9 = arith.constant dense<0.000000e+00> : vector<128xf32>
    %15 = vector.multi_reduction <add>, %14, %cst_9 [1] : vector<128x32xf32> to vector<128xf32>
    %16 = vector.shape_cast %15 : vector<128xf32> to vector<128x1xf32>
    %cst_10 = arith.constant 3.200000e+01 : f32
    %17 = vector.broadcast %cst_10 : f32 to vector<128x1xf32>
    %18 = arith.divf %16, %17 : vector<128x1xf32>
    %cst_11 = arith.constant 9.99999974E-6 : f32
    %19 = vector.broadcast %cst_11 : f32 to vector<128x1xf32>
    %20 = arith.addf %18, %19 : vector<128x1xf32>
    %21 = math.rsqrt %20 : vector<128x1xf32>
    %22 = vector.broadcast %21 : vector<128x1xf32> to vector<128x32xf32>
    %23 = arith.mulf %13, %22 : vector<128x32xf32>
    %24 = vector.broadcast %5 : vector<1x32xf32> to vector<128x32xf32>
    %25 = arith.mulf %23, %24 : vector<128x32xf32>
    %26 = vector.broadcast %7 : vector<1x32xf32> to vector<128x32xf32>
    %27 = arith.addf %25, %26 : vector<128x32xf32>
    %28 = arith.truncf %27 : vector<128x32xf32> to vector<128x32xbf16>
    %c0_12 = arith.constant 0 : index
    %c0_13 = arith.constant 0 : index
    %c0_14 = arith.constant 0 : index
    %29 = vector.load %arg4[%c0_12, %c0_13, %c0_14] : memref<1x32x96xbf16, #tpu.memory_space<vmem>>, vector<1x32x96xbf16>
    %30 = vector.shape_cast %29 : vector<1x32x96xbf16> to vector<32x96xbf16>
    %cst_15 = arith.constant dense<0.000000e+00> : vector<128x96xf32>
    %31 = tpu.matmul %28, %30, %cst_15 {dimension_numbers = #tpu.dot_dimension_numbers<[1], [0], [0], [1], [0, 0, 1, 1], [], []>} : vector<128x32xbf16>, vector<32x96xbf16>, vector<128x96xf32> -> vector<128x96xf32>
    %c0_16 = arith.constant 0 : index
    %c0_17 = arith.constant 0 : index
    %c0_18 = arith.constant 0 : index
    %32 = vector.load %arg5[%c0_16, %c0_17, %c0_18] : memref<1x1x96xf32, #tpu.memory_space<vmem>>, vector<1x1x96xf32>
    %33 = vector.shape_cast %32 : vector<1x1x96xf32> to vector<1x96xf32>
    %34 = vector.broadcast %33 : vector<1x96xf32> to vector<128x96xf32>
    %35 = arith.addf %31, %34 : vector<128x96xf32>
    %36 = vector.extract_strided_slice %35 {offsets = [0, 0], sizes = [128, 16], strides = [1, 1]} : vector<128x96xf32> to vector<128x16xf32>
    %37 = vector.extract_strided_slice %35 {offsets = [0, 32], sizes = [128, 16], strides = [1, 1]} : vector<128x96xf32> to vector<128x16xf32>
    %38 = arith.truncf %36 : vector<128x16xf32> to vector<128x16xbf16>
    %39 = arith.truncf %37 : vector<128x16xf32> to vector<128x16xbf16>
    %40 = tpu.transpose %39, [1, 0] : vector<128x16xbf16> -> vector<16x128xbf16>
    %cst_19 = arith.constant dense<0.000000e+00> : vector<128x128xf32>
    %41 = tpu.matmul %38, %40, %cst_19 {dimension_numbers = #tpu.dot_dimension_numbers<[1], [0], [0], [1], [0, 0, 1, 1], [], []>} : vector<128x16xbf16>, vector<16x128xbf16>, vector<128x128xf32> -> vector<128x128xf32>
    %c0_20 = arith.constant 0 : index
    %c0_21 = arith.constant 0 : index
    %c0_22 = arith.constant 0 : index
    %c0_23 = arith.constant 0 : index
    %42 = vector.load %arg8[%c0_20, %c0_21, %c0_22, %c0_23] : memref<1x2x128x128xbf16, #tpu.memory_space<vmem>>, vector<1x1x128x128xbf16>
    %43 = vector.shape_cast %42 : vector<1x1x128x128xbf16> to vector<128x128xbf16>
    %44 = arith.extf %43 : vector<128x128xbf16> to vector<128x128xf32>
    %45 = arith.addf %41, %44 : vector<128x128xf32>
    %cst_24 = arith.constant dense<0xFF800000> : vector<128xf32>
    %46 = vector.multi_reduction <maximumf>, %45, %cst_24 [1] : vector<128x128xf32> to vector<128xf32>
    %47 = vector.shape_cast %46 : vector<128xf32> to vector<128x1xf32>
    %48 = vector.broadcast %47 : vector<128x1xf32> to vector<128x128xf32>
    %49 = arith.subf %45, %48 : vector<128x128xf32>
    %50 = math.exp %49 : vector<128x128xf32>
    %cst_25 = arith.constant dense<0.000000e+00> : vector<128xf32>
    %51 = vector.multi_reduction <add>, %50, %cst_25 [1] : vector<128x128xf32> to vector<128xf32>
    %52 = vector.shape_cast %51 : vector<128xf32> to vector<128x1xf32>
    %53 = tpu.reciprocal %52 {approx = true} : vector<128x1xf32> -> vector<128x1xf32>
    %54 = vector.broadcast %53 : vector<128x1xf32> to vector<128x128xf32>
    %55 = arith.mulf %50, %54 : vector<128x128xf32>
    %56 = vector.extract_strided_slice %35 {offsets = [0, 64], sizes = [128, 16], strides = [1, 1]} : vector<128x96xf32> to vector<128x16xf32>
    %57 = arith.truncf %55 : vector<128x128xf32> to vector<128x128xbf16>
    %58 = arith.truncf %56 : vector<128x16xf32> to vector<128x16xbf16>
    %cst_26 = arith.constant dense<0.000000e+00> : vector<128x16xf32>
    %59 = tpu.matmul %57, %58, %cst_26 {dimension_numbers = #tpu.dot_dimension_numbers<[1], [0], [0], [1], [0, 0, 1, 1], [], []>} : vector<128x128xbf16>, vector<128x16xbf16>, vector<128x16xf32> -> vector<128x16xf32>
    %60 = vector.extract_strided_slice %35 {offsets = [0, 16], sizes = [128, 16], strides = [1, 1]} : vector<128x96xf32> to vector<128x16xf32>
    %61 = vector.extract_strided_slice %35 {offsets = [0, 48], sizes = [128, 16], strides = [1, 1]} : vector<128x96xf32> to vector<128x16xf32>
    %62 = arith.truncf %60 : vector<128x16xf32> to vector<128x16xbf16>
    %63 = arith.truncf %61 : vector<128x16xf32> to vector<128x16xbf16>
    %64 = tpu.transpose %63, [1, 0] : vector<128x16xbf16> -> vector<16x128xbf16>
    %cst_27 = arith.constant dense<0.000000e+00> : vector<128x128xf32>
    %65 = tpu.matmul %62, %64, %cst_27 {dimension_numbers = #tpu.dot_dimension_numbers<[1], [0], [0], [1], [0, 0, 1, 1], [], []>} : vector<128x16xbf16>, vector<16x128xbf16>, vector<128x128xf32> -> vector<128x128xf32>
    %c0_28 = arith.constant 0 : index
    %c1 = arith.constant 1 : index
    %c0_29 = arith.constant 0 : index
    %c0_30 = arith.constant 0 : index
    %66 = vector.load %arg8[%c0_28, %c1, %c0_29, %c0_30] : memref<1x2x128x128xbf16, #tpu.memory_space<vmem>>, vector<1x1x128x128xbf16>
    %67 = vector.shape_cast %66 : vector<1x1x128x128xbf16> to vector<128x128xbf16>
    %68 = arith.extf %67 : vector<128x128xbf16> to vector<128x128xf32>
    %69 = arith.addf %65, %68 : vector<128x128xf32>
    %cst_31 = arith.constant dense<0xFF800000> : vector<128xf32>
    %70 = vector.multi_reduction <maximumf>, %69, %cst_31 [1] : vector<128x128xf32> to vector<128xf32>
    %71 = vector.shape_cast %70 : vector<128xf32> to vector<128x1xf32>
    %72 = vector.broadcast %71 : vector<128x1xf32> to vector<128x128xf32>
    %73 = arith.subf %69, %72 : vector<128x128xf32>
    %74 = math.exp %73 : vector<128x128xf32>
    %cst_32 = arith.constant dense<0.000000e+00> : vector<128xf32>
    %75 = vector.multi_reduction <add>, %74, %cst_32 [1] : vector<128x128xf32> to vector<128xf32>
    %76 = vector.shape_cast %75 : vector<128xf32> to vector<128x1xf32>
    %77 = tpu.reciprocal %76 {approx = true} : vector<128x1xf32> -> vector<128x1xf32>
    %78 = vector.broadcast %77 : vector<128x1xf32> to vector<128x128xf32>
    %79 = arith.mulf %74, %78 : vector<128x128xf32>
    %80 = vector.extract_strided_slice %35 {offsets = [0, 80], sizes = [128, 16], strides = [1, 1]} : vector<128x96xf32> to vector<128x16xf32>
    %81 = arith.truncf %79 : vector<128x128xf32> to vector<128x128xbf16>
    %82 = arith.truncf %80 : vector<128x16xf32> to vector<128x16xbf16>
    %cst_33 = arith.constant dense<0.000000e+00> : vector<128x16xf32>
    %83 = tpu.matmul %81, %82, %cst_33 {dimension_numbers = #tpu.dot_dimension_numbers<[1], [0], [0], [1], [0, 0, 1, 1], [], []>} : vector<128x128xbf16>, vector<128x16xbf16>, vector<128x16xf32> -> vector<128x16xf32>
    %84 = tpu.concatenate %59, %83 in 1 : vector<128x16xf32>, vector<128x16xf32> -> vector<128x32xf32>
    %85 = arith.truncf %84 : vector<128x32xf32> to vector<128x32xbf16>
    %c0_34 = arith.constant 0 : index
    %c0_35 = arith.constant 0 : index
    %c0_36 = arith.constant 0 : index
    %86 = vector.load %arg6[%c0_34, %c0_35, %c0_36] : memref<1x32x32xbf16, #tpu.memory_space<vmem>>, vector<1x32x32xbf16>
    %87 = vector.shape_cast %86 : vector<1x32x32xbf16> to vector<32x32xbf16>
    %cst_37 = arith.constant dense<0.000000e+00> : vector<128x32xf32>
    %88 = tpu.matmul %85, %87, %cst_37 {dimension_numbers = #tpu.dot_dimension_numbers<[1], [0], [0], [1], [0, 0, 1, 1], [], []>} : vector<128x32xbf16>, vector<32x32xbf16>, vector<128x32xf32> -> vector<128x32xf32>
    %c0_38 = arith.constant 0 : index
    %c0_39 = arith.constant 0 : index
    %c0_40 = arith.constant 0 : index
    %89 = vector.load %arg7[%c0_38, %c0_39, %c0_40] : memref<1x1x32xf32, #tpu.memory_space<vmem>>, vector<1x1x32xf32>
    %90 = vector.shape_cast %89 : vector<1x1x32xf32> to vector<1x32xf32>
    %91 = vector.broadcast %90 : vector<1x32xf32> to vector<128x32xf32>
    %92 = arith.addf %88, %91 : vector<128x32xf32>
    %c0_41 = arith.constant 0 : index
    %c0_42 = arith.constant 0 : index
    %93 = vector.load %arg16[%c0_41, %c0_42] : memref<128x32xf32, #tpu.memory_space<vmem>>, vector<128x32xf32>
    %94 = arith.addf %93, %92 : vector<128x32xf32>
    %c0_43 = arith.constant 0 : index
    %c0_44 = arith.constant 0 : index
    %95 = vector.load %arg16[%c0_43, %c0_44] : memref<128x32xf32, #tpu.memory_space<vmem>>, vector<128x32xf32>
    tpu.vector_store %arg16[%c0_43, %c0_44], %94 {strides = array<i32>} : memref<128x32xf32, #tpu.memory_space<vmem>>, vector<128x32xf32>,
    %c0_45 = arith.constant 0 : index
    %c0_46 = arith.constant 0 : index
    %96 = vector.load %arg16[%c0_45, %c0_46] : memref<128x32xf32, #tpu.memory_space<vmem>>, vector<128x32xf32>
    %c0_47 = arith.constant 0 : index
    %c0_48 = arith.constant 0 : index
    %c0_49 = arith.constant 0 : index
    %97 = vector.load %arg9[%c0_47, %c0_48, %c0_49] : memref<1x1x32xf32, #tpu.memory_space<vmem>>, vector<1x1x32xf32>
    %98 = vector.shape_cast %97 : vector<1x1x32xf32> to vector<1x32xf32>
    %c0_50 = arith.constant 0 : index
    %c0_51 = arith.constant 0 : index
    %c0_52 = arith.constant 0 : index
    %99 = vector.load %arg10[%c0_50, %c0_51, %c0_52] : memref<1x1x32xf32, #tpu.memory_space<vmem>>, vector<1x1x32xf32>
    %100 = vector.shape_cast %99 : vector<1x1x32xf32> to vector<1x32xf32>
    %cst_53 = arith.constant dense<0.000000e+00> : vector<128xf32>
    %101 = vector.multi_reduction <add>, %96, %cst_53 [1] : vector<128x32xf32> to vector<128xf32>
    %102 = vector.shape_cast %101 : vector<128xf32> to vector<128x1xf32>
    %cst_54 = arith.constant 3.200000e+01 : f32
    %103 = vector.broadcast %cst_54 : f32 to vector<128x1xf32>
    %104 = arith.divf %102, %103 : vector<128x1xf32>
    %105 = vector.broadcast %104 : vector<128x1xf32> to vector<128x32xf32>
    %106 = arith.subf %96, %105 : vector<128x32xf32>
    %107 = arith.mulf %106, %106 : vector<128x32xf32>
    %cst_55 = arith.constant dense<0.000000e+00> : vector<128xf32>
    %108 = vector.multi_reduction <add>, %107, %cst_55 [1] : vector<128x32xf32> to vector<128xf32>
    %109 = vector.shape_cast %108 : vector<128xf32> to vector<128x1xf32>
    %cst_56 = arith.constant 3.200000e+01 : f32
    %110 = vector.broadcast %cst_56 : f32 to vector<128x1xf32>
    %111 = arith.divf %109, %110 : vector<128x1xf32>
    %cst_57 = arith.constant 9.99999974E-6 : f32
    %112 = vector.broadcast %cst_57 : f32 to vector<128x1xf32>
    %113 = arith.addf %111, %112 : vector<128x1xf32>
    %114 = math.rsqrt %113 : vector<128x1xf32>
    %115 = vector.broadcast %114 : vector<128x1xf32> to vector<128x32xf32>
    %116 = arith.mulf %106, %115 : vector<128x32xf32>
    %117 = vector.broadcast %98 : vector<1x32xf32> to vector<128x32xf32>
    %118 = arith.mulf %116, %117 : vector<128x32xf32>
    %119 = vector.broadcast %100 : vector<1x32xf32> to vector<128x32xf32>
    %120 = arith.addf %118, %119 : vector<128x32xf32>
    %121 = arith.truncf %120 : vector<128x32xf32> to vector<128x32xbf16>
    %c0_58 = arith.constant 0 : index
    %c0_59 = arith.constant 0 : index
    %c0_60 = arith.constant 0 : index
    %122 = vector.load %arg11[%c0_58, %c0_59, %c0_60] : memref<1x32x128xbf16, #tpu.memory_space<vmem>>, vector<1x32x128xbf16>
    %123 = vector.shape_cast %122 : vector<1x32x128xbf16> to vector<32x128xbf16>
    %cst_61 = arith.constant dense<0.000000e+00> : vector<128x128xf32>
    %124 = tpu.matmul %121, %123, %cst_61 {dimension_numbers = #tpu.dot_dimension_numbers<[1], [0], [0], [1], [0, 0, 1, 1], [], []>} : vector<128x32xbf16>, vector<32x128xbf16>, vector<128x128xf32> -> vector<128x128xf32>
    %c0_62 = arith.constant 0 : index
    %c0_63 = arith.constant 0 : index
    %c0_64 = arith.constant 0 : index
    %125 = vector.load %arg12[%c0_62, %c0_63, %c0_64] : memref<1x1x128xf32, #tpu.memory_space<vmem>>, vector<1x1x128xf32>
    %126 = vector.shape_cast %125 : vector<1x1x128xf32> to vector<1x128xf32>
    %127 = vector.broadcast %126 : vector<1x128xf32> to vector<128x128xf32>
    %128 = arith.addf %124, %127 : vector<128x128xf32>
    %129 = arith.mulf %128, %128 : vector<128x128xf32>
    %130 = arith.mulf %128, %129 : vector<128x128xf32>
    %cst_65 = arith.constant 4.471500e-02 : f32
    %131 = vector.broadcast %cst_65 : f32 to vector<128x128xf32>
    %132 = arith.mulf %131, %130 : vector<128x128xf32>
    %133 = arith.addf %128, %132 : vector<128x128xf32>
    %cst_66 = arith.constant 0.797884583 : f32
    %134 = vector.broadcast %cst_66 : f32 to vector<128x128xf32>
    %135 = arith.mulf %134, %133 : vector<128x128xf32>
    %136 = math.tanh %135 : vector<128x128xf32>
    %cst_67 = arith.constant 1.000000e+00 : f32
    %137 = vector.broadcast %cst_67 : f32 to vector<128x128xf32>
    %138 = arith.addf %137, %136 : vector<128x128xf32>
    %cst_68 = arith.constant 5.000000e-01 : f32
    %139 = vector.broadcast %cst_68 : f32 to vector<128x128xf32>
    %140 = arith.mulf %139, %138 : vector<128x128xf32>
    %141 = arith.mulf %128, %140 : vector<128x128xf32>
    %c0_69 = arith.constant 0 : index
    %c0_70 = arith.constant 0 : index
    %142 = vector.load %arg16[%c0_69, %c0_70] : memref<128x32xf32, #tpu.memory_space<vmem>>, vector<128x32xf32>
    %143 = arith.truncf %141 : vector<128x128xf32> to vector<128x128xbf16>
    %c0_71 = arith.constant 0 : index
    %c0_72 = arith.constant 0 : index
    %c0_73 = arith.constant 0 : index
    %144 = vector.load %arg13[%c0_71, %c0_72, %c0_73] : memref<1x128x32xbf16, #tpu.memory_space<vmem>>, vector<1x128x32xbf16>
    %145 = vector.shape_cast %144 : vector<1x128x32xbf16> to vector<128x32xbf16>
    %cst_74 = arith.constant dense<0.000000e+00> : vector<128x32xf32>
    %146 = tpu.matmul %143, %145, %cst_74 {dimension_numbers = #tpu.dot_dimension_numbers<[1], [0], [0], [1], [0, 0, 1, 1], [], []>} : vector<128x128xbf16>, vector<128x32xbf16>, vector<128x32xf32> -> vector<128x32xf32>
    %c0_75 = arith.constant 0 : index
    %c0_76 = arith.constant 0 : index
    %c0_77 = arith.constant 0 : index
    %147 = vector.load %arg14[%c0_75, %c0_76, %c0_77] : memref<1x1x32xf32, #tpu.memory_space<vmem>>, vector<1x1x32xf32>
    %148 = vector.shape_cast %147 : vector<1x1x32xf32> to vector<1x32xf32>
    %149 = vector.broadcast %148 : vector<1x32xf32> to vector<128x32xf32>
    %150 = arith.addf %146, %149 : vector<128x32xf32>
    %151 = arith.addf %142, %150 : vector<128x32xf32>
    %c0_78 = arith.constant 0 : index
    %c0_79 = arith.constant 0 : index
    %152 = vector.load %arg16[%c0_78, %c0_79] : memref<128x32xf32, #tpu.memory_space<vmem>>, vector<128x32xf32>
    tpu.vector_store %arg16[%c0_78, %c0_79], %151 {strides = array<i32>} : memref<128x32xf32, #tpu.memory_space<vmem>>, vector<128x32xf32>,
    %c1_i32 = arith.constant 1 : i32
    %153 = arith.cmpi eq, %arg0, %c1_i32 : i32
    %154 = arith.extui %153 : i1 to i32
    %c0_i32_80 = arith.constant 0 : i32
    %155 = arith.cmpi ne, %154, %c0_i32_80 : i32
    scf.if %155 {
      %c0_81 = arith.constant 0 : index
      %c0_82 = arith.constant 0 : index
      %156 = vector.load %arg16[%c0_81, %c0_82] : memref<128x32xf32, #tpu.memory_space<vmem>>, vector<128x32xf32>
      %c0_83 = arith.constant 0 : index
      %c0_84 = arith.constant 0 : index
      %157 = vector.load %arg15[%c0_83, %c0_84] : memref<128x32xf32, #tpu.memory_space<vmem>>, vector<128x32xf32>
      tpu.vector_store %arg15[%c0_83, %c0_84], %156 {strides = array<i32>} : memref<128x32xf32, #tpu.memory_space<vmem>>, vector<128x32xf32>,
    } else {
    }
    return
  }
  func.func @transform_0(%arg0: i32) -> (i32, i32) {
    %c0_i32 = arith.constant 0 : i32
    %c0_i32_0 = arith.constant 0 : i32
    %c0_i32_1 = arith.constant 0 : i32
    return %c0_i32, %c0_i32_0 : i32, i32
  }
  func.func @transform_1(%arg0: i32) -> (i32, i32, i32) {
    %c0_i32 = arith.constant 0 : i32
    %c0_i32_0 = arith.constant 0 : i32
    %c0_i32_1 = arith.constant 0 : i32
    return %arg0, %c0_i32, %c0_i32_0 : i32, i32, i32
  }
  func.func @transform_2(%arg0: i32) -> (i32, i32, i32) {
    %c0_i32 = arith.constant 0 : i32
    %c0_i32_0 = arith.constant 0 : i32
    %c0_i32_1 = arith.constant 0 : i32
    return %arg0, %c0_i32, %c0_i32_0 : i32, i32, i32
  }
  func.func @transform_3(%arg0: i32) -> (i32, i32, i32) {
    %c0_i32 = arith.constant 0 : i32
    %c0_i32_0 = arith.constant 0 : i32
    %c0_i32_1 = arith.constant 0 : i32
    return %arg0, %c0_i32, %c0_i32_0 : i32, i32, i32
  }
  func.func @transform_4(%arg0: i32) -> (i32, i32, i32) {
    %c0_i32 = arith.constant 0 : i32
    %c0_i32_0 = arith.constant 0 : i32
    %c0_i32_1 = arith.constant 0 : i32
    return %arg0, %c0_i32, %c0_i32_0 : i32, i32, i32
  }
  func.func @transform_5(%arg0: i32) -> (i32, i32, i32) {
    %c0_i32 = arith.constant 0 : i32
    %c0_i32_0 = arith.constant 0 : i32
    %c0_i32_1 = arith.constant 0 : i32
    return %arg0, %c0_i32, %c0_i32_0 : i32, i32, i32
  }
  func.func @transform_6(%arg0: i32) -> (i32, i32, i32) {
    %c0_i32 = arith.constant 0 : i32
    %c0_i32_0 = arith.constant 0 : i32
    %c0_i32_1 = arith.constant 0 : i32
    return %arg0, %c0_i32, %c0_i32_0 : i32, i32, i32
  }
  func.func @transform_7(%arg0: i32) -> (i32, i32, i32, i32) {
    %c0_i32 = arith.constant 0 : i32
    %c0_i32_0 = arith.constant 0 : i32
    %c0_i32_1 = arith.constant 0 : i32
    %c0_i32_2 = arith.constant 0 : i32
    return %arg0, %c0_i32, %c0_i32_0, %c0_i32_1 : i32, i32, i32, i32
  }
  func.func @transform_8(%arg0: i32) -> (i32, i32, i32) {
    %c0_i32 = arith.constant 0 : i32
    %c0_i32_0 = arith.constant 0 : i32
    %c0_i32_1 = arith.constant 0 : i32
    return %arg0, %c0_i32, %c0_i32_0 : i32, i32, i32
  }
  func.func @transform_9(%arg0: i32) -> (i32, i32, i32) {
    %c0_i32 = arith.constant 0 : i32
    %c0_i32_0 = arith.constant 0 : i32
    %c0_i32_1 = arith.constant 0 : i32
    return %arg0, %c0_i32, %c0_i32_0 : i32, i32, i32
  }
  func.func @transform_10(%arg0: i32) -> (i32, i32, i32) {
    %c0_i32 = arith.constant 0 : i32
    %c0_i32_0 = arith.constant 0 : i32
    %c0_i32_1 = arith.constant 0 : i32
    return %arg0, %c0_i32, %c0_i32_0 : i32, i32, i32
  }
  func.func @transform_11(%arg0: i32) -> (i32, i32, i32) {
    %c0_i32 = arith.constant 0 : i32
    %c0_i32_0 = arith.constant 0 : i32
    %c0_i32_1 = arith.constant 0 : i32
    return %arg0, %c0_i32, %c0_i32_0 : i32, i32, i32
  }
  func.func @transform_12(%arg0: i32) -> (i32, i32, i32) {
    %c0_i32 = arith.constant 0 : i32
    %c0_i32_0 = arith.constant 0 : i32
    %c0_i32_1 = arith.constant 0 : i32
    return %arg0, %c0_i32, %c0_i32_0 : i32, i32, i32
  }
  func.func @transform_13(%arg0: i32) -> (i32, i32, i32) {
    %c0_i32 = arith.constant 0 : i32
    %c0_i32_0 = arith.constant 0 : i32
    %c0_i32_1 = arith.constant 0 : i32
    return %arg0, %c0_i32, %c0_i32_0 : i32, i32, i32
  }
  func.func @transform_14(%arg0: i32) -> (i32, i32) {
    %c0_i32 = arith.constant 0 : i32
    %c0_i32_0 = arith.constant 0 : i32
    %c0_i32_1 = arith.constant 0 : i32
    return %c0_i32, %c0_i32_0 : i32, i32
  }
}

</mosaic_0001>

<bundles_post_ra>
// kernel: basic_layer_apply.1
= control target key start
LH: loop header
LB: loop body
LE: loop exit
PB: predicated region body
PF: predicated region fallthrough
CT: control target
= control target key end

     0   :  { %s5922_s0 = inlined_call_operand.vmem [shape: f32[128,32], index: 0, kind: input, shape index: {}]   ;;  %s5923_s1 = inlined_call_operand.vmem [shape: f32[2,1,32], index: 1, kind: input, shape index: {}]   ;;  %s5924_s2 = inlined_call_operand.vmem [shape: f32[2,1,32], index: 2, kind: input, shape index: {}]   ;;  %s5925_s3 = inlined_call_operand.vmem [shape: bf16[2,32,96], index: 3, kind: input, shape index: {}]   ;;  %s5926_s4 = inlined_call_operand.vmem [shape: f32[2,1,96], index: 4, kind: input, shape index: {}]   ;;  %s5927_s5 = inlined_call_operand.vmem [shape: bf16[2,32,32], index: 5, kind: input, shape index: {}]   ;;  %s5928_s6 = inlined_call_operand.vmem [shape: f32[2,1,32], index: 6, kind: input, shape index: {}]   ;;  %s5929_s7 = inlined_call_operand.vmem [shape: bf16[2,2,128,128], index: 7, kind: input, shape index: {}]   ;;  %s5930_s8 = inlined_call_operand.vmem [shape: f32[2,1,32], index: 8, kind: input, shape index: {}]   ;;  %s5931_s9 = inlined_call_operand.vmem [shape: f32[2,1,32], index: 9, kind: input, shape index: {}]   ;;  %s5932_s10 = inlined_call_operand.hbm [shape: bf16[2,32,128], index: 10, kind: input, shape index: {}]   ;;  %s5933_s11 = inlined_call_operand.hbm [shape: f32[2,1,128], index: 11, kind: input, shape index: {}]   ;;  %s5934_s12 = inlined_call_operand.vmem [shape: bf16[2,128,32], index: 12, kind: input, shape index: {}]   ;;  %s5935_s13 = inlined_call_operand.vmem [shape: f32[2,1,32], index: 13, kind: input, shape index: {}]   ;;  %s5936_s14 = inlined_call_operand.vmem [shape: f32[128,32], index: 14, kind: output, shape index: {}]  }
   0x1   :  { %5944 = sst [smem:[#allocation14_spill]] %s5925_s3 }
   0x2   :  { %5945 = sst [smem:[#allocation15_spill]] %s5927_s5 }
   0x3   :  { %5946 = sst [smem:[#allocation16_spill]] %s5932_s10 }
   0x4   :  { %5947 = sst [smem:[#allocation17_spill]] %s5933_s11 }
   0x5   :  { %5948 = sst [smem:[#allocation18_spill]] %s5936_s14 }
   0x6   :  { %19 = vsyncpa [#allocation4], 0 }
   0x7   :  { %21 = vsyncpa [#allocation4 + $0x1], 0 }
   0x8   :  { %22 = vsyncpa [#allocation6], 0 }
   0x9   :  { %24 = vsyncpa [#allocation6 + $0x1], 0  ;;  %s4449_s29 = smov 0   ;;  %s4451_s30 = smov 0  }
   0xa   :  { %s4453_s15 = smov 0   ;;  %s4455_s16 = smov 0  }
   0xb LB: > { %5949 = sst [smem:[#allocation9_spill]] %s4354_s30  ;;  %s4468_s17 = sadd.s32 4294967295, %s4362_s16   ;;  %s4362_s16 = sphi %s4455_s16, %s5973_s16   ;;  %s4358_s15 = sphi %s4453_s15, %s5976_s15   ;;  %s4354_s30 = sphi %s4451_s30, %s5975_s30   ;;  %s4350_s29 = sphi %s4449_s29, %s5974_s29  }
   0xc   : > { %5950 = sst [smem:[#allocation10_spill]] %s4358_s15  ;;  %s4471_s18 = sadd.s32 1, %s4362_s16  }
   0xd   : > { %5951 = sst [smem:[#allocation11_spill]] %s4471_s18  ;;  %s289_s19 = ssub.s32 %s4362_s16, %s4471_s18 }
   0xe   : > { %s292_s20 = sadd.s32 1, %s4358_s15  ;;  %p290_p0 = scmp.eq.s32.totalorder %s289_s19, 0 }
   0xf   : > { %p299_p1 = scmp.ne.s32.totalorder %s4358_s15, %s4354_s30  ;;  %p300_p2 = scmp.eq.s32.totalorder %s4362_s16, 0 }
  0x10   : > { %p305_p3 = scmp.ne.s32.totalorder %s4354_s30, %s4350_s29  ;;  %p306_p5 = scmp.eq.s32.totalorder %s4468_s17, 0 }
  0x11   : > { %s4481_s21 = scalar_select %p290_p0, %s4358_s15, %s292_s20  }
  0x12   : > { %p301_p4 = por %p300_p2, %p299_p1  ;;  %p3913_p6 = scmp.lt.s32.totalorder %s4362_s16, 2 }
  0x13   : > { %5952 = sst [smem:[#allocation12_spill]] %s4481_s21  ;;  %p4485_p7 = por %p306_p5, %p305_p3 }
  0x14   : > { %s4490_s23 = sand.u32 1, %s4358_s15   ;;  %s3456_s25 = sshll.u32 %s4362_s16, 8 }
  0x15   : > { %s5953_s22 = scalar_select %p4485_p7, 1, 0 }
  0x16   : > { %s3360_s24 = sshll.u32 %s4490_s23, 4  ;;  %s5954_s10 = sld [smem:[#allocation16_spill]] }
  0x17   : > { %s495_s29 = scalar_lea.vmem [#allocation3], %s3360_s24  ;;  %p4501_p8 = pnand %p3913_p6, %p301_p4 }
  0x18   : > { %s502_s19 = sshll.u32 %s495_s29, 4  ;;  %s4499_s19 = int_to_ptr.vmem [resolvable:$true] %s502_s19 }
  0x19   : > { %p4266_p11 = pneg %p4501_p8 }
  0x1c   : > { %s4497_s28 = scalar_lea.hbm %s5954_s10, %s3456_s25  ;;  %s4269_s26 = scalar_lea.hbm %s5954_s10, 512 }
  0x1d   : > { %s4264_s15 = scalar_lea.hbm %s4497_s28, 256  ;;  %p4270_p0 = scmp.lt.u32.totalorder %s4497_s28, %s5954_s10 }
  0x1e   : > { %p4265_p10 = scmp.ne.s32.totalorder %s4497_s28, %s4264_s15  ;;  %p4271_p1 = scmp.lt.u32.totalorder %s4269_s26, %s4264_s15 }
  0x1f   : > { %p4273_p3 = scmp.lt.u32.totalorder %s4264_s15, %s4497_s28 }
  0x20   : > { %p4267_p12 = pnand %p4266_p11, %p4265_p10  ;;  %p4272_p2 = por %p4271_p1, %p4270_p0 }
  0x22   : > { %p4268_p13 = pneg %p4267_p12  ;;  %p4274_p4 = por %p4273_p3, %p4272_p2 }
  0x24   : > { %p4275_p5 = pnand %p4274_p4, %p4268_p13 }
  0x26   : > { %4278 = shalt.err (!%p4275_p5)
}
  0x27   : > { %s4279_s21 = scalar_lea.vmem %s4499_s19, 256  ;;  %s4364_s24 = smov [#allocation3]  }
  0x28   : > { %p4280_p6 = scmp.ne.s32.totalorder %s4499_s19, %s4279_s21  ;;  %s4284_s25 = sshll.u32 %s4364_s24, 4  ;;  %s4285_s25 = int_to_ptr.vmem [resolvable:$false] %s4284_s25 }
  0x29   : > { %s4286_s27 = scalar_lea.vmem %s4285_s25, 512  ;;  %p4287_p9 = scmp.lt.s32.totalorder %s4499_s19, %s4285_s25 }
  0x2a   : > { %p4282_p10 = pnand %p4280_p6, %p4266_p11  ;;  %p4288_p0 = scmp.lt.s32.totalorder %s4286_s27, %s4279_s21 }
  0x2c   : > { %p4283_p12 = pneg %p4282_p10  ;;  %p4289_p1 = por %p4288_p0, %p4287_p9 }
  0x2e   : > { %p4290_p2 = pnand %p4289_p1, %p4283_p12 }
  0x30   : > { %4293 = shalt.err (!%p4290_p2)
}
  0x31   : > { %s4365_s15 = smov 64   ;;  %s4366_s26 = smov 4  }
  0x32   : > { %s5956_s29 = scalar_lea.sflag [#allocation4], %s4490_s23  ;;  %p541_p13 = scmp.lt.s32.totalorder %s4362_s16, 3 }
  0x33   : > { %3909 = dma.hbm_to_vmem [thread:$0]  (!%p4501_p8), %s4497_s28, 256, %s4499_s19, %s5956_s29, %s4365_s15, %s4365_s15, %s4366_s26  }
  0x34   : > { %s3363_s21 = sshll.u32 %s4362_s16, 4  ;;  %p5957_p9 = scmp.ge.s32.totalorder %s4362_s16, 1 }
  0x35   : > { %s5959_s11 = sld [smem:[#allocation17_spill]]  ;;  %s515_s18 = scalar_lea.vmem [#allocation5], %s4490_s23 }
  0x36   : > { %p4538_p3 = pnand %p5957_p9, %p541_p13  ;;  %s522_s14 = sshll.u32 %s515_s18, 4  ;;  %s523_s14 = int_to_ptr.vmem [resolvable:$true] %s522_s14 }
  0x37   : > { %s513_s28 = scalar_lea.sflag [#allocation6], %s4490_s23 }
  0x38   : > { %s5958_s24 = scalar_select %p4538_p3, 1, 0 }
  0x3b   : > { %s4545_s10 = scalar_lea.hbm %s5959_s11, %s3363_s21  ;;  %s4299_s26 = scalar_lea.hbm %s5959_s11, 32 }
  0x3c   : > { %s4294_s19 = scalar_lea.hbm %s4545_s10, 16  ;;  %p4300_p10 = scmp.lt.u32.totalorder %s4545_s10, %s5959_s11 }
  0x3d   : > { %p4295_p4 = scmp.ne.s32.totalorder %s4545_s10, %s4294_s19  ;;  %p4301_p12 = scmp.lt.u32.totalorder %s4299_s26, %s4294_s19 }
  0x3e   : > { %p4303_p1 = scmp.lt.u32.totalorder %s4294_s19, %s4545_s10 }
  0x3f   : > { %p4297_p5 = pnand %p4295_p4, %p4266_p11  ;;  %p4302_p0 = por %p4301_p12, %p4300_p10 }
  0x41   : > { %p4298_p6 = pneg %p4297_p5  ;;  %p4304_p2 = por %p4303_p1, %p4302_p0 }
  0x43   : > { %p4305_p13 = pnand %p4304_p2, %p4298_p6 }
  0x45   : > { %4308 = shalt.err (!%p4305_p13)
}
  0x46   : > { %s4309_s18 = scalar_lea.vmem %s523_s14, 16  ;;  %s4367_s23 = smov [#allocation5]  }
  0x47   : > { %p4310_p9 = scmp.ne.s32.totalorder %s523_s14, %s4309_s18  ;;  %s4314_s25 = sshll.u32 %s4367_s23, 4  ;;  %s4315_s25 = int_to_ptr.vmem [resolvable:$false] %s4314_s25 }
  0x48   : > { %s4316_s27 = scalar_lea.vmem %s4315_s25, 32  ;;  %p4317_p7 = scmp.lt.s32.totalorder %s523_s14, %s4315_s25 }
  0x49   : > { %p4312_p4 = pnand %p4310_p9, %p4266_p11  ;;  %p4318_p3 = scmp.lt.s32.totalorder %s4316_s27, %s4309_s18 }
  0x4b   : > { %p4313_p5 = pneg %p4312_p4  ;;  %p4319_p10 = por %p4318_p3, %p4317_p7 }
  0x4d   : > { %p4320_p12 = pnand %p4319_p10, %p4313_p5 }
  0x4f   : > { %4323 = shalt.err (!%p4320_p12)
}
  0x50   : > { %3912 = dma.hbm_to_vmem [thread:$0]  (!%p4501_p8), %s4545_s10, 16, %s523_s14, %s513_s28  }
  0x51   : > { %p5960_p6 = scmp.ne.s32.totalorder %s5958_s24, 0 }
  0x53   : > { %545 = sbr.rel (%p5960_p6) target bundleno = 3429 (0xd65), region = 76 }
  0x5a   : > { %s4571_s19 = sand.u32 1, %s4354_s30   ;;  %p5962_p7 = scmp.ne.s32.totalorder %s5953_s22, 0 }
  0x5b   : > { %5961 = sst [smem:[#allocation13_spill]] %s4571_s19  ;;  %s3365_s16 = sshll.u32 %s4571_s19, 4 }
  0x5c   : > { %s548_s15 = scalar_lea.sflag [#allocation4], %s4571_s19  ;;  %s4575_s26 = scalar_lea.vmem [#allocation3], %s3365_s16 }
  0x5d   : > { %4341 = dma.done.wait (%p5962_p7), %s548_s15, 256  }
  0x5e   : > { %4343 = vsyncadd (%p5962_p7), %s548_s15, 4294967040  ;;  %s557_s10 = scalar_lea.sflag [#allocation6], %s4571_s19 }
  0x5f   : > { %4345 = dma.done.wait (%p5962_p7), %s557_s10, 16  }
  0x60   : > { %4347 = vsyncadd (%p5962_p7), %s557_s10, 4294967280  ;;  %p644_p8 = scmp.lt.s32.totalorder %s4468_s17, 1  ;;  %s5963_s3 = sld [smem:[#allocation14_spill]] }
  0x61   : > { %s5964_s5 = sld [smem:[#allocation15_spill]]  ;;  %p3374_p11 = scmp.ne.s32.totalorder %s4468_s17, 0 }
  0x62   : > { %s4589_s20 = scalar_select %p644_p8, %s4468_s17, 1 }
  0x63   : > { %689 = sbr.rel (%p3374_p11) target bundleno = 108 (0x6c), region = 88  ;;  %v690_v0 = vld [vmem:[%s5922_s0] sm:$0xff] (!%p3374_p11)  ;;  %vm706_vm0 = vcmask (!%p3374_p11), 261120   ;;  %v691_v1 = vld [vmem:[%s5922_s0 + $0x8] sm:$0xff] (!%p3374_p11)  ;;  %v692_v2 = vld [vmem:[%s5922_s0 + $0x10] sm:$0xff] (!%p3374_p11) }
  0x64   : > { %s3457_s23 = sshll.u32 %s4589_s20, 4  ;;  %s3459_s21 = sshll.u32 %s4589_s20, 7  ;;  %707 = vst.msk [vmem:[#allocation2] sm:$0xff] (!%p3374_p11), %vm706_vm0, %v690_v0  ;;  %708 = vst.msk [vmem:[#allocation2 + $0x8] sm:$0xff] (!%p3374_p11), %vm706_vm0, %v691_v1  ;;  %v693_v3 = vld [vmem:[%s5922_s0 + $0x18] sm:$0xff] (!%p3374_p11)  ;;  %v694_v4 = vld [vmem:[%s5922_s0 + $0x20] sm:$0xff] (!%p3374_p11) }
  0x65   : > { %s4622_s25 = scalar_lea.vmem %s5929_s7, %s3459_s21  ;;  %s673_s15 = scalar_lea.vmem %s5930_s8, %s4589_s20  ;;  %709 = vst.msk [vmem:[#allocation2 + $0x10] sm:$0xff] (!%p3374_p11), %vm706_vm0, %v692_v2  ;;  %v695_v5 = vld [vmem:[%s5922_s0 + $0x28] sm:$0xff] (!%p3374_p11)  ;;  %710 = vst.msk [vmem:[#allocation2 + $0x18] sm:$0xff] (!%p3374_p11), %vm706_vm0, %v693_v3  ;;  %v696_v6 = vld [vmem:[%s5922_s0 + $0x30] sm:$0xff] (!%p3374_p11) }
  0x66   : > { %s4607_s24 = scalar_lea.vmem %s5963_s3, %s3457_s23  ;;  %s676_s14 = scalar_lea.vmem %s5931_s9, %s4589_s20  ;;  %711 = vst.msk [vmem:[#allocation2 + $0x20] sm:$0xff] (!%p3374_p11), %vm706_vm0, %v694_v4  ;;  %712 = vst.msk [vmem:[#allocation2 + $0x28] sm:$0xff] (!%p3374_p11), %vm706_vm0, %v695_v5  ;;  %v697_v7 = vld [vmem:[%s5922_s0 + $0x38] sm:$0xff] (!%p3374_p11)  ;;  %v698_v8 = vld [vmem:[%s5922_s0 + $0x40] sm:$0xff] (!%p3374_p11) }
  0x67   : > { %s4612_s11 = scalar_lea.vmem %s5964_s5, %s3457_s23  ;;  %s3460_s23 = sshll.u32 %s4589_s20, 6  ;;  %713 = vst.msk [vmem:[#allocation2 + $0x30] sm:$0xff] (!%p3374_p11), %vm706_vm0, %v696_v6  ;;  %714 = vst.msk [vmem:[#allocation2 + $0x38] sm:$0xff] (!%p3374_p11), %vm706_vm0, %v697_v7  ;;  %v699_v9 = vld [vmem:[%s5922_s0 + $0x48] sm:$0xff] (!%p3374_p11)  ;;  %v700_v10 = vld [vmem:[%s5922_s0 + $0x50] sm:$0xff] (!%p3374_p11) }
  0x68   : > { %s4636_s30 = scalar_lea.vmem %s5934_s12, %s3460_s23  ;;  %s684_s19 = scalar_lea.vmem %s5935_s13, %s4589_s20  ;;  %715 = vst.msk [vmem:[#allocation2 + $0x40] sm:$0xff] (!%p3374_p11), %vm706_vm0, %v698_v8  ;;  %v701_v11 = vld [vmem:[%s5922_s0 + $0x58] sm:$0xff] (!%p3374_p11)  ;;  %716 = vst.msk [vmem:[#allocation2 + $0x48] sm:$0xff] (!%p3374_p11), %vm706_vm0, %v699_v9  ;;  %v702_v12 = vld [vmem:[%s5922_s0 + $0x60] sm:$0xff] (!%p3374_p11) }
  0x69   : > { %717 = vst.msk [vmem:[#allocation2 + $0x50] sm:$0xff] (!%p3374_p11), %vm706_vm0, %v700_v10  ;;  %718 = vst.msk [vmem:[#allocation2 + $0x58] sm:$0xff] (!%p3374_p11), %vm706_vm0, %v701_v11  ;;  %v703_v13 = vld [vmem:[%s5922_s0 + $0x68] sm:$0xff] (!%p3374_p11)  ;;  %v704_v14 = vld [vmem:[%s5922_s0 + $0x70] sm:$0xff] (!%p3374_p11) }
  0x6a   : > { %719 = vst.msk [vmem:[#allocation2 + $0x60] sm:$0xff] %vm706_vm0, %v702_v12  ;;  %720 = vst.msk [vmem:[#allocation2 + $0x68] sm:$0xff] %vm706_vm0, %v703_v13  ;;  %v705_v15 = vld [vmem:[%s5922_s0 + $0x78] sm:$0xff] }
  0x6b   : > { %721 = vst.msk [vmem:[#allocation2 + $0x70] sm:$0xff] %vm706_vm0, %v704_v14  ;;  %722 = vst.msk [vmem:[#allocation2 + $0x78] sm:$0xff] %vm706_vm0, %v705_v15 }
  0x6c PF: > { %vm741_vm1 = vcmask 261120   ;;  %s5965_s18 = scalar_lea.vmem %s5923_s1, %s4589_s20  ;;  %s5966_s21 = scalar_lea.vmem %s5924_s2, %s4589_s20  ;;  %vm1211_vm2 = vcmask 130048  }
  0x6d   : > { %v723_v16 = vld [vmem:[#allocation2] sm:$0xff]  ;;  %v724_v18 = vld [vmem:[#allocation2 + $0x8] sm:$0xff]  ;;  %s5967_s29 = scalar_lea.vmem %s5926_s4, %s4589_s20  ;;  %s4368_s10 = smov 96  }
  0x6e   : > { %v725_v17 = vld [vmem:[#allocation2 + $0x10] sm:$0xff]  ;;  %v742_v19 = vsel %vm741_vm1, %v723_v16, 0.0  ;;  %v726_v21 = vld [vmem:[#allocation2 + $0x18] sm:$0xff]  ;;  %v745_v24 = vsel %vm741_vm1, %v724_v18, 0.0  ;;  %s4369_s23 = smov 64   ;;  %s4370_s28 = smov 80  }
  0x6f   : > { %v748_v20 = vsel %vm741_vm1, %v725_v17, 0.0  ;;  %743 = vadd.xlane.f32.xlu0 %v742_v19  ;;  %v4709_v22 = vld [vmem:[#allocation2 + $0x20] sm:$0xff]  ;;  %v4711_v23 = vld [vmem:[#allocation2 + $0x28] sm:$0xff]  ;;  %v751_v25 = vsel %vm741_vm1, %v726_v21, 0.0  ;;  %s4372_s22 = smov 48   ;;  %s5968_s16 = scalar_lea.vmem %s5928_s6, %s4589_s20 }
  0x70   : > { %749 = vadd.xlane.f32.xlu1 %v748_v20  ;;  %v4715_v26 = vld [vmem:[#allocation2 + $0x30] sm:$0xff]  ;;  %v4717_v27 = vld [vmem:[#allocation2 + $0x38] sm:$0xff]  ;;  %v754_v28 = vsel %vm741_vm1, %v4709_v22, 0.0  ;;  %v757_v29 = vsel %vm741_vm1, %v4711_v23, 0.0  ;;  %p3453_p3 = scmp.ne.s32.totalorder %s4468_s17, 1 }
  0x71   : > { %v760_v30 = vsel %vm741_vm1, %v4715_v26, 0.0  ;;  %v763_v31 = vsel %vm741_vm1, %v4717_v27, 0.0  ;;  %v4727_v32 = vld [vmem:[#allocation2 + $0x40] sm:$0xff]  ;;  %v4729_v33 = vld [vmem:[#allocation2 + $0x48] sm:$0xff] }
  0x72   : > { %v766_v34 = vsel %vm741_vm1, %v4727_v32, 0.0  ;;  %v769_v35 = vsel %vm741_vm1, %v4729_v33, 0.0  ;;  %v4735_v36 = vld [vmem:[#allocation2 + $0x50] sm:$0xff]  ;;  %v4737_v37 = vld [vmem:[#allocation2 + $0x58] sm:$0xff] }
  0x73   : > { %746 = vadd.xlane.f32.xlu0 %v745_v24  ;;  %v772_v38 = vsel %vm741_vm1, %v4735_v36, 0.0  ;;  %v775_v39 = vsel %vm741_vm1, %v4737_v37, 0.0  ;;  %v4743_v40 = vld [vmem:[#allocation2 + $0x60] sm:$0xff]  ;;  %v4745_v41 = vld [vmem:[#allocation2 + $0x68] sm:$0xff]  ;;  %v4751_v44 = vld [vmem:[#allocation2 + $0x70] sm:$0xff] }
  0x74   : > { %752 = vadd.xlane.f32.xlu1 %v751_v25  ;;  %v778_v42 = vsel %vm741_vm1, %v4743_v40, 0.0  ;;  %v781_v43 = vsel %vm741_vm1, %v4745_v41, 0.0  ;;  %v4753_v45 = vld [vmem:[#allocation2 + $0x78] sm:$0xff]  ;;  %v784_v46 = vsel %vm741_vm1, %v4751_v44, 0.0 }
  0x75   : > { %v787_v47 = vsel %vm741_vm1, %v4753_v45, 0.0 }
  0x77   : > { %755 = vadd.xlane.f32.xlu0 %v754_v28 }
  0x78   : > { %758 = vadd.xlane.f32.xlu1 %v757_v29 }
  0x7b   : > { %761 = vadd.xlane.f32.xlu0 %v760_v30 }
  0x7c   : > { %764 = vadd.xlane.f32.xlu1 %v763_v31 }
  0x7f   : > { %767 = vadd.xlane.f32.xlu0 %v766_v34 }
  0x80   : > { %770 = vadd.xlane.f32.xlu1 %v769_v35 }
  0x83   : > { %773 = vadd.xlane.f32.xlu0 %v772_v38 }
  0x84   : > { %776 = vadd.xlane.f32.xlu1 %v775_v39 }
  0x87   : > { %779 = vadd.xlane.f32.xlu0 %v778_v42 }
  0x88   : > { %782 = vadd.xlane.f32.xlu1 %v781_v43 }
  0x8b   : > { %785 = vadd.xlane.f32.xlu0 %v784_v46 }
  0x8c   : > { %788 = vadd.xlane.f32.xlu1 %v787_v47 }
  0xfc   : > { %v744_v48 = vpop.xlane.xlu0 %743 }
  0xfd   : > { %v750_v49 = vpop.xlane.xlu1 %749  ;;  %v791_v50 = vmul.f32 0.03125, %v744_v48 }
  0xfe   : > { %v793_v51 = vmul.f32 0.03125, %v750_v49 }
  0xff   : > { %v4759_v52 = vsub.f32 %v723_v16, %v791_v50 }
 0x100   : > { %v4761_v53 = vsub.f32 %v725_v17, %v793_v51  ;;  %v747_v54 = vpop.xlane.xlu0 %746 }
 0x101   : > { %v753_v55 = vpop.xlane.xlu1 %752  ;;  %v792_v56 = vmul.f32 0.03125, %v747_v54  ;;  %v823_v58 = vmul.f32 %v4759_v52, %v4759_v52 }
 0x102   : > { %v794_v57 = vmul.f32 0.03125, %v753_v55  ;;  %v825_v59 = vmul.f32 %v4761_v53, %v4761_v53 }
 0x103   : > { %v4767_v60 = vsub.f32 %v724_v18, %v792_v56  ;;  %v839_v62 = vsel %vm741_vm1, %v823_v58, 0.0 }
 0x104   : > { %v4769_v61 = vsub.f32 %v726_v21, %v794_v57  ;;  %840 = vadd.xlane.f32.xlu0 %v839_v62  ;;  %v756_v63 = vpop.xlane.xlu0 %755  ;;  %v845_v1 = vsel %vm741_vm1, %v825_v59, 0.0 }
 0x105   : > { %v759_v0 = vpop.xlane.xlu1 %758  ;;  %v795_v2 = vmul.f32 0.03125, %v756_v63  ;;  %v824_v4 = vmul.f32 %v4767_v60, %v4767_v60 }
 0x106   : > { %v796_v3 = vmul.f32 0.03125, %v759_v0  ;;  %v826_v5 = vmul.f32 %v4769_v61, %v4769_v61 }
 0x107   : > { %v4778_v6 = vsub.f32 %v4709_v22, %v795_v2  ;;  %v842_v8 = vsel %vm741_vm1, %v824_v4, 0.0 }
 0x108   : > { %v4781_v7 = vsub.f32 %v4711_v23, %v796_v3  ;;  %846 = vadd.xlane.f32.xlu0 %v845_v1  ;;  %843 = vadd.xlane.f32.xlu1 %v842_v8  ;;  %v762_v9 = vpop.xlane.xlu0 %761  ;;  %v848_v11 = vsel %vm741_vm1, %v826_v5, 0.0  ;;  %v3995_v5 = vld [vmem:[%s4607_s24 + $0x8] sm:$0xff]  }
 0x109   : > { %v765_v10 = vpop.xlane.xlu1 %764  ;;  %v797_v12 = vmul.f32 0.03125, %v762_v9  ;;  %v827_v14 = vmul.f32 %v4778_v6, %v4778_v6 }
 0x10a   : > { %v798_v13 = vmul.f32 0.03125, %v765_v10  ;;  %v828_v15 = vmul.f32 %v4781_v7, %v4781_v7 }
 0x10b   : > { %v4790_v16 = vsub.f32 %v4715_v26, %v797_v12  ;;  %v851_v18 = vsel %vm741_vm1, %v827_v14, 0.0 }
 0x10c   : > { %v4793_v17 = vsub.f32 %v4717_v27, %v798_v13  ;;  %849 = vadd.xlane.f32.xlu1 %v848_v11  ;;  %852 = vadd.xlane.f32.xlu0 %v851_v18  ;;  %v768_v19 = vpop.xlane.xlu0 %767  ;;  %v854_v21 = vsel %vm741_vm1, %v828_v15, 0.0 }
 0x10d   : > { %v771_v20 = vpop.xlane.xlu1 %770  ;;  %v799_v22 = vmul.f32 0.03125, %v768_v19  ;;  %v829_v24 = vmul.f32 %v4790_v16, %v4790_v16 }
 0x10e   : > { %v800_v23 = vmul.f32 0.03125, %v771_v20  ;;  %v830_v25 = vmul.f32 %v4793_v17, %v4793_v17 }
 0x10f   : > { %v4802_v26 = vsub.f32 %v4727_v32, %v799_v22  ;;  %v857_v28 = vsel %vm741_vm1, %v829_v24, 0.0 }
 0x110   : > { %v4805_v27 = vsub.f32 %v4729_v33, %v800_v23  ;;  %855 = vadd.xlane.f32.xlu1 %v854_v21  ;;  %858 = vadd.xlane.f32.xlu0 %v857_v28  ;;  %v774_v29 = vpop.xlane.xlu0 %773  ;;  %v860_v31 = vsel %vm741_vm1, %v830_v25, 0.0 }
 0x111   : > { %v777_v30 = vpop.xlane.xlu1 %776  ;;  %v801_v34 = vmul.f32 0.03125, %v774_v29  ;;  %v831_v38 = vmul.f32 %v4802_v26, %v4802_v26 }
 0x112   : > { %v802_v35 = vmul.f32 0.03125, %v777_v30  ;;  %v832_v32 = vmul.f32 %v4805_v27, %v4805_v27 }
 0x113   : > { %v4814_v39 = vsub.f32 %v4735_v36, %v801_v34  ;;  %v863_v42 = vsel %vm741_vm1, %v831_v38, 0.0 }
 0x114   : > { %v4817_v33 = vsub.f32 %v4737_v37, %v802_v35  ;;  %861 = vadd.xlane.f32.xlu1 %v860_v31  ;;  %864 = vadd.xlane.f32.xlu0 %v863_v42  ;;  %v780_v43 = vpop.xlane.xlu0 %779  ;;  %v866_v47 = vsel %vm741_vm1, %v832_v32, 0.0 }
 0x115   : > { %v783_v46 = vpop.xlane.xlu1 %782  ;;  %v803_v48 = vmul.f32 0.03125, %v780_v43  ;;  %v833_v50 = vmul.f32 %v4814_v39, %v4814_v39 }
 0x116   : > { %v804_v49 = vmul.f32 0.03125, %v783_v46  ;;  %v834_v36 = vmul.f32 %v4817_v33, %v4817_v33 }
 0x117   : > { %v4826_v51 = vsub.f32 %v4743_v40, %v803_v48  ;;  %v869_v54 = vsel %vm741_vm1, %v833_v50, 0.0 }
 0x118   : > { %v4829_v37 = vsub.f32 %v4745_v41, %v804_v49  ;;  %867 = vadd.xlane.f32.xlu1 %v866_v47  ;;  %870 = vadd.xlane.f32.xlu0 %v869_v54  ;;  %v786_v55 = vpop.xlane.xlu0 %785  ;;  %v872_v57 = vsel %vm741_vm1, %v834_v36, 0.0  ;;  %v4859_v47 = vld [vmem:[%s5965_s18] ss:$0 sm:$0xff] }
 0x119   : > { %v789_v56 = vpop.xlane.xlu1 %788  ;;  %v805_v58 = vmul.f32 0.03125, %v786_v55  ;;  %v835_v62 = vmul.f32 %v4826_v51, %v4826_v51 }
 0x11a   : > { %v806_v59 = vmul.f32 0.03125, %v789_v56  ;;  %v836_v40 = vmul.f32 %v4829_v37, %v4829_v37 }
 0x11b   : > { %v4838_v41 = vsub.f32 %v4751_v44, %v805_v58  ;;  %v875_v0 = vsel %vm741_vm1, %v835_v62, 0.0 }
 0x11c   : > { %v4841_v63 = vsub.f32 %v4753_v45, %v806_v59  ;;  %873 = vadd.xlane.f32.xlu1 %v872_v57  ;;  %876 = vadd.xlane.f32.xlu0 %v875_v0  ;;  %v878_v1 = vsel %vm741_vm1, %v836_v40, 0.0  ;;  %v3994_v45 = vld [vmem:[%s4607_s24] sm:$0xff]   ;;  %s4371_s24 = smov 112  }
 0x11d   : > { %v837_v2 = vmul.f32 %v4838_v41, %v4838_v41  ;;  %3650 = vmatprep.subr.bf16.mxu0 %v3994_v45  ;;  %v4868_v59 = vld [vmem:[%s5966_s21] ss:$0 sm:$0xff] }
 0x11e   : > { %v838_v3 = vmul.f32 %v4841_v63, %v4841_v63  ;;  %3651 = vmatpush3.bf16.msra.mxu0 %v3994_v45 }
 0x11f   : > { %v881_v4 = vsel %vm741_vm1, %v837_v2, 0.0  ;;  %3652 = vmatprep.subr.bf16.mxu0 %v3995_v5 }
 0x120   : > { %879 = vadd.xlane.f32.xlu1 %v878_v1  ;;  %882 = vadd.xlane.f32.xlu0 %v881_v4  ;;  %v884_v44 = vsel %vm741_vm1, %v838_v3, 0.0 }
 0x122   : > { %3653 = vmatpush3.bf16.msra.mxu0 %v3995_v5 }
 0x124   : > { %885 = vadd.xlane.f32.xlu1 %v884_v44 }
 0x191   : > { %v841_v8 = vpop.xlane.xlu0 %840 }
 0x192   : > { %v887_v9 = vmul.f32 0.03125, %v841_v8 }
 0x194   : > { %v903_v10 = vadd.f32 1e-05, %v887_v9 }
 0x195   : > { %v844_v11 = vpop.xlane.xlu1 %843  ;;  %v847_v12 = vpop.xlane.xlu0 %846 }
 0x196   : > { %4008 = vrsqrt.f32 %v903_v10  ;;  %v888_v13 = vmul.f32 0.03125, %v844_v11  ;;  %v889_v14 = vmul.f32 0.03125, %v847_v12 }
 0x198   : > { %v904_v15 = vadd.f32 1e-05, %v888_v13  ;;  %v905_v18 = vadd.f32 1e-05, %v889_v14 }
 0x199   : > { %v850_v19 = vpop.xlane.xlu1 %849  ;;  %v853_v20 = vpop.xlane.xlu0 %852 }
 0x19a   : > { %4010 = vrsqrt.f32 %v904_v15  ;;  %v890_v21 = vmul.f32 0.03125, %v850_v19  ;;  %v891_v22 = vmul.f32 0.03125, %v853_v20 }
 0x19b   : > { %4012 = vrsqrt.f32 %v905_v18 }
 0x19c   : > { %v906_v23 = vadd.f32 1e-05, %v890_v21  ;;  %v907_v24 = vadd.f32 1e-05, %v891_v22 }
 0x19d   : > { %v856_v25 = vpop.xlane.xlu1 %855  ;;  %v859_v28 = vpop.xlane.xlu0 %858 }
 0x19e   : > { %4014 = vrsqrt.f32 %v906_v23  ;;  %v892_v29 = vmul.f32 0.03125, %v856_v25  ;;  %v893_v30 = vmul.f32 0.03125, %v859_v28 }
 0x19f   : > { %4016 = vrsqrt.f32 %v907_v24 }
 0x1a0   : > { %v4009_v31 = vpop.eup %4008  ;;  %v908_v34 = vadd.f32 1e-05, %v892_v29  ;;  %v909_v35 = vadd.f32 1e-05, %v893_v30 }
 0x1a1   : > { %v862_v38 = vpop.xlane.xlu1 %861  ;;  %v865_v32 = vpop.xlane.xlu0 %864  ;;  %v935_v42 = vmul.f32 %v4009_v31, %v4759_v52 }
 0x1a2   : > { %4018 = vrsqrt.f32 %v908_v34  ;;  %v894_v43 = vmul.f32 0.03125, %v862_v38  ;;  %v895_v46 = vmul.f32 0.03125, %v865_v32 }
 0x1a3   : > { %4020 = vrsqrt.f32 %v909_v35  ;;  %v957_v52 = vmul.f32 %v4859_v47, %v935_v42 }
 0x1a4   : > { %v4011_v48 = vpop.eup %4010  ;;  %v910_v49 = vadd.f32 1e-05, %v894_v43  ;;  %v911_v50 = vadd.f32 1e-05, %v895_v46 }
 0x1a5   : > { %v4013_v36 = vpop.eup %4012  ;;  %v868_v54 = vpop.xlane.xlu1 %867  ;;  %v936_v56 = vmul.f32 %v4011_v48, %v4767_v60  ;;  %v979_v44 = vadd.f32 %v4868_v59, %v957_v52 }
 0x1a6   : > { %v871_v55 = vpop.xlane.xlu0 %870  ;;  %4022 = vrsqrt.f32 %v910_v49  ;;  %v896_v57 = vmul.f32 0.03125, %v868_v54  ;;  %v937_v62 = vmul.f32 %v4013_v36, %v4761_v53 }
 0x1a7   : > { %v897_v58 = vmul.f32 0.03125, %v871_v55  ;;  %4024 = vrsqrt.f32 %v911_v50  ;;  %v958_v40 = vmul.f32 %v4859_v47, %v936_v56 }
 0x1a8   : > { %v4015_v0 = vpop.eup %4014  ;;  %v912_v1 = vadd.f32 1e-05, %v896_v57  ;;  %v959_v8 = vmul.f32 %v4859_v47, %v937_v62 }
 0x1a9   : > { %v913_v2 = vadd.f32 1e-05, %v897_v58  ;;  %v4017_v60 = vpop.eup %4016  ;;  %v874_v3 = vpop.xlane.xlu1 %873  ;;  %v980_v45 = vadd.f32 %v4868_v59, %v958_v40  ;;  %v938_v5 = vmul.f32 %v4015_v0, %v4769_v61 }
 0x1aa   : > { %v877_v4 = vpop.xlane.xlu0 %876  ;;  %4026 = vrsqrt.f32 %v912_v1  ;;  %v898_v9 = vmul.f32 0.03125, %v874_v3  ;;  %v939_v12 = vmul.f32 %v4017_v60, %v4778_v6  ;;  %v981_v61 = vadd.f32 %v4868_v59, %v959_v8 }
 0x1ab   : > { %v899_v53 = vmul.f32 0.03125, %v877_v4  ;;  %4028 = vrsqrt.f32 %v913_v2  ;;  %v995_v10 = vpack.c.bf16 %v980_v45, %v979_v44  ;;  %v960_v11 = vmul.f32 %v4859_v47, %v938_v5 }
 0x1ac   : > { %v4019_v13 = vpop.eup %4018  ;;  %v914_v14 = vadd.f32 1e-05, %v898_v9  ;;  %v961_v23 = vmul.f32 %v4859_v47, %v939_v12 }
 0x1ad   : > { %v915_v15 = vadd.f32 1e-05, %v899_v53  ;;  %v4021_v18 = vpop.eup %4020  ;;  %v880_v19 = vpop.xlane.xlu1 %879  ;;  %3654 = vmatprep.mubr.msk.bf16.mxu0 %vm741_vm1, %v995_v10  ;;  %v982_v21 = vadd.f32 %v4868_v59, %v960_v11  ;;  %v940_v22 = vmul.f32 %v4019_v13, %v4781_v7 }
 0x1ae   : > { %v883_v20 = vpop.xlane.xlu0 %882  ;;  %4030 = vrsqrt.f32 %v914_v14  ;;  %v900_v24 = vmul.f32 0.03125, %v880_v19  ;;  %v941_v6 = vmul.f32 %v4021_v18, %v4790_v16  ;;  %v983_v7 = vadd.f32 %v4868_v59, %v961_v23 }
 0x1af   : > { %v901_v25 = vmul.f32 0.03125, %v883_v20  ;;  %4032 = vrsqrt.f32 %v915_v15  ;;  %v996_v28 = vpack.c.bf16 %v982_v21, %v981_v61  ;;  %v962_v29 = vmul.f32 %v4859_v47, %v940_v22 }
 0x1b0   : > { %v4023_v30 = vpop.eup %4022  ;;  %v916_v31 = vadd.f32 1e-05, %v900_v24  ;;  %v963_v43 = vmul.f32 %v4859_v47, %v941_v6 }
 0x1b1   : > { %v917_v34 = vadd.f32 1e-05, %v901_v25  ;;  %v4025_v35 = vpop.eup %4024  ;;  %v886_v38 = vpop.xlane.xlu1 %885  ;;  %3655 = vmatmul.mubr.msk.bf16.vlgmr.msra.gmra.mrb[0].mxu0 %vm741_vm1, %v996_v28  ;;  %v984_v32 = vadd.f32 %v4868_v59, %v962_v29  ;;  %v942_v42 = vmul.f32 %v4023_v30, %v4793_v17 }
 0x1b2   : > { %4034 = vrsqrt.f32 %v916_v31  ;;  %v902_v16 = vmul.f32 0.03125, %v886_v38  ;;  %v943_v46 = vmul.f32 %v4025_v35, %v4802_v26  ;;  %v985_v55 = vadd.f32 %v4868_v59, %v963_v43 }
 0x1b3   : > { %4036 = vrsqrt.f32 %v917_v34  ;;  %v997_v48 = vpack.c.bf16 %v984_v32, %v983_v7  ;;  %v964_v49 = vmul.f32 %v4859_v47, %v942_v42 }
 0x1b4   : > { %v4027_v50 = vpop.eup %4026  ;;  %v918_v36 = vadd.f32 1e-05, %v902_v16  ;;  %v965_v52 = vmul.f32 %v4859_v47, %v943_v46 }
 0x1b5   : > { %v4029_v54 = vpop.eup %4028  ;;  %3658 = vmatprep.mubr.msk.bf16.mxu0 %vm741_vm1, %v997_v48  ;;  %v986_v56 = vadd.f32 %v4868_v59, %v964_v49  ;;  %v944_v17 = vmul.f32 %v4027_v50, %v4805_v27 }
 0x1b6   : > { %4038 = vrsqrt.f32 %v918_v36  ;;  %v945_v26 = vmul.f32 %v4029_v54, %v4814_v39  ;;  %v987_v0 = vadd.f32 %v4868_v59, %v965_v52 }
 0x1b7   : > { %v998_v57 = vpack.c.bf16 %v986_v56, %v985_v55  ;;  %v966_v58 = vmul.f32 %v4859_v47, %v944_v17 }
 0x1b8   : > { %v4031_v62 = vpop.eup %4030  ;;  %v967_v27 = vmul.f32 %v4859_v47, %v945_v26 }
 0x1b9   : > { %v4033_v40 = vpop.eup %4032  ;;  %3659 = vmatmul.mubr.msk.bf16.gmra.mrb[4].mxu0 %vm741_vm1, %v998_v57  ;;  %v988_v1 = vadd.f32 %v4868_v59, %v966_v58  ;;  %v946_v2 = vmul.f32 %v4031_v62, %v4817_v33 }
 0x1ba   : > { %v947_v60 = vmul.f32 %v4033_v40, %v4826_v51  ;;  %v989_v45 = vadd.f32 %v4868_v59, %v967_v27 }
 0x1bb   : > { %v999_v3 = vpack.c.bf16 %v988_v1, %v987_v0  ;;  %v968_v39 = vmul.f32 %v4859_v47, %v946_v2 }
 0x1bc   : > { %v4035_v4 = vpop.eup %4034  ;;  %v969_v9 = vmul.f32 %v4859_v47, %v947_v60 }
 0x1bd   : > { %v4037_v44 = vpop.eup %4036  ;;  %3662 = vmatprep.mubr.msk.bf16.mxu0 %vm741_vm1, %v999_v3  ;;  %v990_v5 = vadd.f32 %v4868_v59, %v968_v39  ;;  %v948_v8 = vmul.f32 %v4035_v4, %v4829_v37 }
 0x1be   : > { %v949_v33 = vmul.f32 %v4037_v44, %v4838_v41  ;;  %v991_v11 = vadd.f32 %v4868_v59, %v969_v9 }
 0x1bf   : > { %v1000_v53 = vpack.c.bf16 %v990_v5, %v989_v45  ;;  %v970_v51 = vmul.f32 %v4859_v47, %v948_v8 }
 0x1c0   : > { %v4039_v10 = vpop.eup %4038  ;;  %v971_v14 = vmul.f32 %v4859_v47, %v949_v33 }
 0x1c1   : > { %3663 = vmatmul.mubr.msk.bf16.gmra.mrb[8].mxu0 %vm741_vm1, %v1000_v53  ;;  %v992_v12 = vadd.f32 %v4868_v59, %v970_v51  ;;  %v950_v13 = vmul.f32 %v4039_v10, %v4841_v63  ;;  %v3377_v63 = vld [vmem:[%s5967_s29] ss:$0 sm:$0xff]  ;;  %s5971_s29 = sld [smem:[#allocation18_spill]] (!%p3453_p3) }
 0x1c2   : > { %v993_v41 = vadd.f32 %v4868_v59, %v971_v14 }
 0x1c3   : > { %v1001_v37 = vpack.c.bf16 %v992_v12, %v991_v11  ;;  %v972_v15 = vmul.f32 %v4859_v47, %v950_v13 }
 0x1c5   : > { %3666 = vmatprep.mubr.msk.bf16.mxu0 %vm741_vm1, %v1001_v37  ;;  %v994_v18 = vadd.f32 %v4868_v59, %v972_v15 }
 0x1c7   : > { %v1002_v19 = vpack.c.bf16 %v994_v18, %v993_v41 }
 0x1c9   : > { %3667 = vmatmul.mubr.msk.bf16.gmra.mrb[12].mxu0 %vm741_vm1, %v1002_v19 }
 0x284   : > { %v3656_v20 = vpop.f32.mrb[0].mxu0 }
 0x285   : > { %v1084_v61 = vpop.f32.mrb[1].mxu0  ;;  %v1093_v22 = vadd.f32 %v3656_v20, %v3377_v63 }
 0x286   : > { %v3657_v21 = vpop.f32.mrb[2].mxu0  ;;  %v1085_v24 = vadd.f32 %v3377_v63, %v1084_v61  ;;  %v3525_v61 = vld [vmem:[%s4622_s25 + $0x8] sm:$0xff]  }
 0x287   : > { %v1096_v23 = vadd.f32 %v3657_v21, %v3377_v63  ;;  %v1087_v47 = vpop.f32.mrb[3].mxu0  ;;  %v3467_v21 = vunpack.c.l.bf16 %v3525_v61 }
 0x288   : > { %v1088_v25 = vadd.f32 %v3377_v63, %v1087_v47 }
 0x289   : > { %v4928_v6 = vpack.c.bf16 %v1096_v23, %v1093_v22  ;;  %v3462_v22 = vld [vmem:[%s4622_s25] sm:$0xff]  }
 0x28a   : > { %v4930_v59 = vpack.c.bf16 %v1088_v25, %v1085_v24  ;;  %v3464_v47 = vunpack.c.h.bf16 %v3462_v22  ;;  %v3463_v25 = vunpack.c.l.bf16 %v3462_v22 }
 0x28b   : > { %1197 = vrot.lane.b32.xlu1 %v4928_v6, %s4368_s10 }
 0x28c   : > { %1195 = vrot.lane.b32.xlu0 %v4930_v59, %s4368_s10  ;;  %v3660_v28 = vpop.f32.mrb[4].mxu0  ;;  %3686 = vmatprep.mubr.msk.bf16.mxu1 %vm1211_vm2, %v4930_v59 }
 0x28d   : > { %v1100_v29 = vpop.f32.mrb[5].mxu0  ;;  %v1109_v31 = vadd.f32 %v3660_v28, %v3377_v63 }
 0x28e   : > { %v3661_v30 = vpop.f32.mrb[6].mxu0  ;;  %v1101_v38 = vadd.f32 %v3377_v63, %v1100_v29 }
 0x28f   : > { %v1112_v34 = vadd.f32 %v3661_v30, %v3377_v63  ;;  %v1103_v35 = vpop.f32.mrb[7].mxu0 }
 0x290   : > { %v1104_v7 = vadd.f32 %v3377_v63, %v1103_v35  ;;  %v3468_v35 = vunpack.c.h.bf16 %v3525_v61 }
 0x291   : > { %v4938_v32 = vpack.c.bf16 %v1112_v34, %v1109_v31 }
 0x292   : > { %v4940_v42 = vpack.c.bf16 %v1104_v7, %v1101_v38  ;;  %v3527_v38 = vld [vmem:[%s4622_s25 + $0x18] sm:$0xff]  }
 0x293   : > { %v3476_v7 = vunpack.c.h.bf16 %v3527_v38 }
 0x294   : > { %1199 = vrot.lane.b32.xlu1 %v4940_v42, %s4368_s10  ;;  %v3664_v43 = vpop.f32.mrb[8].mxu0 }
 0x295   : > { %v1116_v16 = vpop.f32.mrb[9].mxu0  ;;  %v1125_v48 = vadd.f32 %v3664_v43, %v3377_v63 }
 0x296   : > { %v3665_v46 = vpop.f32.mrb[10].mxu0  ;;  %v1117_v36 = vadd.f32 %v3377_v63, %v1116_v16 }
 0x297   : > { %v1128_v49 = vadd.f32 %v3665_v46, %v3377_v63  ;;  %v1119_v50 = vpop.f32.mrb[11].mxu0  ;;  %v3475_v46 = vunpack.c.l.bf16 %v3527_v38 }
 0x298   : > { %v1120_v54 = vadd.f32 %v3377_v63, %v1119_v50  ;;  %1201 = vrot.lane.b32.xlu1 %v4938_v32, %s4368_s10 }
 0x299   : > { %v4946_v55 = vpack.c.bf16 %v1128_v49, %v1125_v48  ;;  %v3526_v49 = vld [vmem:[%s4622_s25 + $0x10] sm:$0xff]  }
 0x29a   : > { %v4948_v56 = vpack.c.bf16 %v1120_v54, %v1117_v36  ;;  %v3472_v54 = vunpack.c.h.bf16 %v3526_v49 }
 0x29c   : > { %1205 = vrot.lane.b32.xlu1 %v4946_v55, %s4368_s10  ;;  %1203 = vrot.lane.b32.xlu0 %v4948_v56, %s4368_s10  ;;  %v3668_v17 = vpop.f32.mrb[12].mxu0 }
 0x29d   : > { %v1132_v52 = vpop.f32.mrb[13].mxu0  ;;  %v1141_v57 = vadd.f32 %v3668_v17, %v3377_v63 }
 0x29e   : > { %v3669_v26 = vpop.f32.mrb[14].mxu0  ;;  %v1133_v40 = vadd.f32 %v3377_v63, %v1132_v52 }
 0x29f   : > { %v1144_v58 = vadd.f32 %v3669_v26, %v3377_v63  ;;  %v1135_v62 = vpop.f32.mrb[15].mxu0  ;;  %v3471_v26 = vunpack.c.l.bf16 %v3526_v49 }
 0x2a0   : > { %v1136_v0 = vadd.f32 %v3377_v63, %v1135_v62 }
 0x2a1   : > { %v4954_v1 = vpack.c.bf16 %v1144_v58, %v1141_v57  ;;  %v3529_v57 = vld [vmem:[%s4622_s25 + $0x28] sm:$0xff]  }
 0x2a2   : > { %v4956_v2 = vpack.c.bf16 %v1136_v0, %v1133_v40  ;;  %v3484_v62 = vunpack.c.h.bf16 %v3529_v57 }
 0x2a3   : > { %1209 = vrot.lane.b32.xlu1 %v4954_v1, %s4368_s10 }
 0x2a4   : > { %1207 = vrot.lane.b32.xlu0 %v4956_v2, %s4368_s10  ;;  %s5972_s10 = smov (!%p3453_p3), %s5971_s29 }
 0x2a7   : > { %1511 = vrot.lane.b32.xlu1 %v4928_v6, %s4369_s23 }
 0x2a8   : > { %1509 = vrot.lane.b32.xlu0 %v4930_v59, %s4369_s23 }
 0x2ab   : > { %1515 = vrot.lane.b32.xlu1 %v4938_v32, %s4369_s23 }
 0x2ac   : > { %1513 = vrot.lane.b32.xlu0 %v4940_v42, %s4369_s23 }
 0x2af   : > { %1519 = vrot.lane.b32.xlu1 %v4946_v55, %s4369_s23 }
 0x2b0   : > { %1517 = vrot.lane.b32.xlu0 %v4948_v56, %s4369_s23 }
 0x2b3   : > { %1523 = vrot.lane.b32.xlu1 %v4954_v1, %s4369_s23 }
 0x2b4   : > { %1679 = vrot.lane.b32.xlu0 %v4930_v59, %s4370_s28 }
 0x2b7   : > { %1681 = vrot.lane.b32.xlu1 %v4928_v6, %s4370_s28 }
 0x2b8   : > { %1521 = vrot.lane.b32.xlu0 %v4956_v2, %s4369_s23 }
 0x2fd   : > { %v1198_v3 = vpop.permute.xlu1 %1197 }
 0x2fe   : > { %v1196_v27 = vpop.permute.xlu0 %1195  ;;  %v1240_v4 = vsel %vm1211_vm2, %v1198_v3, 0 }
 0x2ff   : > { %3886 = vmatprep.subr.msk.bf16.mxu1 %vm1211_vm2, %v1196_v27  ;;  %v1237_v60 = vsel %vm1211_vm2, %v1196_v27, 0  ;;  %v3483_v27 = vunpack.c.l.bf16 %v3529_v57 }
 0x300   : > { %3671 = vmatpush3.bf16.xpose.msra.mxu1 %v1237_v60 }
 0x301   : > { %3887 = vmatprep.subr.msk.bf16.mxu1 %vm1211_vm2, %v1198_v3  ;;  %v3528_v3 = vld [vmem:[%s4622_s25 + $0x20] sm:$0xff]  }
 0x306   : > { %v1200_v39 = vpop.permute.xlu1 %1199 }
 0x307   : > { %v1243_v45 = vsel %vm1211_vm2, %v1200_v39, 0 }
 0x308   : > { %3673 = vmatpush3.bf16.xpose.msra.mxu1 %v1240_v4 }
 0x309   : > { %3888 = vmatprep.subr.msk.bf16.mxu1 %vm1211_vm2, %v1200_v39 }
 0x30a   : > { %v1202_v44 = vpop.permute.xlu1 %1201 }
 0x30b   : > { %v1246_v53 = vsel %vm1211_vm2, %v1202_v44, 0 }
 0x30e   : > { %v1206_v5 = vpop.permute.xlu1 %1205  ;;  %v1204_v8 = vpop.permute.xlu0 %1203 }
 0x30f   : > { %v1249_v12 = vsel %vm1211_vm2, %v1204_v8, 0  ;;  %v1252_v37 = vsel %vm1211_vm2, %v1206_v5, 0 }
 0x310   : > { %3675 = vmatpush3.bf16.xpose.msra.mxu1 %v1243_v45 }
 0x311   : > { %3889 = vmatprep.subr.msk.bf16.mxu1 %vm1211_vm2, %v1202_v44  ;;  %v3480_v44 = vunpack.c.h.bf16 %v3528_v3 }
 0x315   : > { %v1210_v9 = vpop.permute.xlu1 %1209 }
 0x316   : > { %v1208_v33 = vpop.permute.xlu0 %1207  ;;  %v1258_v63 = vsel %vm1211_vm2, %v1210_v9, 0 }
 0x317   : > { %v1255_v18 = vsel %vm1211_vm2, %v1208_v33, 0 }
 0x318   : > { %3677 = vmatpush3.bf16.xpose.msra.mxu1 %v1246_v53 }
 0x319   : > { %3890 = vmatprep.subr.msk.bf16.mxu1 %vm1211_vm2, %v1204_v8  ;;  %v1512_v10 = vpop.permute.xlu1 %1511  ;;  %v3479_v8 = vunpack.c.l.bf16 %v3528_v3 }
 0x31a   : > { %v1510_v51 = vpop.permute.xlu0 %1509 }
 0x31b   : > { %3702 = vmatprep.subr.bf16.mxu0 %v1510_v51 }
 0x31c   : > { %3703 = vmatpush3.bf16.msra.mxu0 %v1510_v51 }
 0x31d   : > { %3704 = vmatprep.subr.bf16.mxu0 %v1512_v10  ;;  %v1516_v13 = vpop.permute.xlu1 %1515 }
 0x31e   : > { %v1514_v11 = vpop.permute.xlu0 %1513 }
 0x320   : > { %3679 = vmatpush3.bf16.xpose.msra.mxu1 %v1249_v12  ;;  %3705 = vmatpush3.bf16.msra.mxu0 %v1512_v10  ;;  %v3530_v12 = vld [vmem:[%s4622_s25 + $0x30] sm:$0xff]  }
 0x321   : > { %3891 = vmatprep.subr.msk.bf16.mxu1 %vm1211_vm2, %v1206_v5  ;;  %3706 = vmatprep.subr.bf16.mxu0 %v1514_v11  ;;  %v1520_v41 = vpop.permute.xlu1 %1519 }
 0x322   : > { %v1518_v14 = vpop.permute.xlu0 %1517 }
 0x324   : > { %3707 = vmatpush3.bf16.msra.mxu0 %v1514_v11 }
 0x325   : > { %3708 = vmatprep.subr.bf16.mxu0 %v1516_v13  ;;  %v1524_v20 = vpop.permute.xlu1 %1523 }
 0x326   : > { %v4987_v15 = vpop.permute.xlu0 %1679 }
 0x328   : > { %3681 = vmatpush3.bf16.xpose.msra.mxu1 %v1252_v37  ;;  %3709 = vmatpush3.bf16.msra.mxu0 %v1516_v13 }
 0x329   : > { %3892 = vmatprep.subr.msk.bf16.mxu1 %vm1211_vm2, %v1208_v33  ;;  %3710 = vmatprep.subr.bf16.mxu0 %v1518_v14 }
 0x32a   : > { %v1522_v19 = vpop.permute.xlu0 %1521 }
 0x32c   : > { %3711 = vmatpush3.bf16.msra.mxu0 %v1518_v14 }
 0x32d   : > { %3712 = vmatprep.subr.bf16.mxu0 %v1520_v41 }
 0x330   : > { %3683 = vmatpush3.bf16.xpose.msra.mxu1 %v1255_v18  ;;  %3713 = vmatpush3.bf16.msra.mxu0 %v1520_v41  ;;  %v3487_v41 = vunpack.c.l.bf16 %v3530_v12 }
 0x331   : > { %3893 = vmatprep.subr.msk.bf16.mxu1 %vm1211_vm2, %v1210_v9  ;;  %3714 = vmatprep.subr.bf16.mxu0 %v1522_v19  ;;  %v3531_v9 = vld [vmem:[%s4622_s25 + $0x38] sm:$0xff]  }
 0x332   : > { %v3491_v10 = vunpack.c.l.bf16 %v3531_v9 }
 0x334   : > { %3715 = vmatpush3.bf16.msra.mxu0 %v1522_v19  ;;  %v3492_v19 = vunpack.c.h.bf16 %v3531_v9 }
 0x335   : > { %3716 = vmatprep.subr.bf16.mxu0 %v1524_v20 }
 0x338   : > { %3685 = vmatpush3.bf16.xpose.msra.mxu1 %v1258_v63  ;;  %3717 = vmatpush3.bf16.msra.mxu0 %v1524_v20  ;;  %v3488_v63 = vunpack.c.h.bf16 %v3530_v12 }
 0x339   : > { %3894 = vmatprep.subr.msk.bf16.mxu0 %vm1211_vm2, %v4987_v15 }
 0x33f   : > { %3687 = vmatmul.mubr.msk.bf16.vlgmr.msra.gmra.mrb[0].mxu1 %vm1211_vm2, %v4928_v6 }
 0x340   : > { %3690 = vmatprep.mubr.msk.bf16.mxu1 %vm1211_vm2, %v4940_v42 }
 0x347   : > { %3691 = vmatmul.mubr.msk.bf16.gmra.mrb[4].mxu1 %vm1211_vm2, %v4938_v32 }
 0x348   : > { %3694 = vmatprep.mubr.msk.bf16.mxu1 %vm1211_vm2, %v4948_v56 }
 0x34f   : > { %3695 = vmatmul.mubr.msk.bf16.gmra.mrb[8].mxu1 %vm1211_vm2, %v4946_v55 }
 0x350   : > { %3698 = vmatprep.mubr.msk.bf16.mxu1 %vm1211_vm2, %v4956_v2 }
 0x357   : > { %3699 = vmatmul.mubr.msk.bf16.gmra.mrb[12].mxu1 %vm1211_vm2, %v4954_v1 }
 0x412   : > { %v3688_v23 = vpop.f32.mrb[0].mxu1 }
 0x413   : > { %v5010_v24 = vadd.f32 %v3688_v23, %v3467_v21  ;;  %v1294_v28 = vpop.f32.mrb[1].mxu1  ;;  %v5068_v21 = vpop.permute.xlu1 %1681 }
 0x414   : > { %v3689_v29 = vpop.f32.mrb[2].mxu1  ;;  %v5015_v34 = vadd.f32 %v3463_v25, %v1294_v28 }
 0x415   : > { %1361 = vmax.xlane.f32.xlu0 %v5010_v24  ;;  %v1297_v30 = vpop.f32.mrb[3].mxu1  ;;  %v5020_v16 = vadd.f32 %v3689_v29, %v3468_v35 }
 0x416   : > { %v5013_v31 = vadd.f32 %v3464_v47, %v1297_v30 }
 0x418   : > { %1359 = vmax.xlane.f32.xlu1 %v5013_v31 }
 0x419   : > { %1357 = vmax.xlane.f32.xlu0 %v5015_v34 }
 0x41a   : > { %v3692_v43 = vpop.f32.mrb[4].mxu1 }
 0x41b   : > { %v1310_v48 = vpop.f32.mrb[5].mxu1  ;;  %v5026_v52 = vadd.f32 %v3692_v43, %v3475_v46 }
 0x41c   : > { %v3693_v50 = vpop.f32.mrb[6].mxu1  ;;  %v5033_v0 = vadd.f32 %v3471_v26, %v1310_v48 }
 0x41d   : > { %v5023_v36 = vadd.f32 %v3693_v50, %v3476_v7  ;;  %v1313_v17 = vpop.f32.mrb[7].mxu1  ;;  %1363 = vmax.xlane.f32.xlu0 %v5020_v16 }
 0x41e   : > { %v5030_v58 = vadd.f32 %v3472_v54, %v1313_v17 }
 0x41f   : > { %1371 = vmax.xlane.f32.xlu1 %v5023_v36 }
 0x421   : > { %1369 = vmax.xlane.f32.xlu0 %v5026_v52 }
 0x422   : > { %v3696_v40 = vpop.f32.mrb[8].mxu1 }
 0x423   : > { %v1326_v60 = vpop.f32.mrb[9].mxu1  ;;  %1367 = vmax.xlane.f32.xlu1 %v5030_v58  ;;  %v5040_v5 = vadd.f32 %v3696_v40, %v3483_v27 }
 0x424   : > { %v3697_v39 = vpop.f32.mrb[10].mxu1  ;;  %v5047_v51 = vadd.f32 %v3479_v8, %v1326_v60 }
 0x425   : > { %v5037_v4 = vadd.f32 %v3697_v39, %v3484_v62  ;;  %v1329_v45 = vpop.f32.mrb[11].mxu1  ;;  %1365 = vmax.xlane.f32.xlu0 %v5033_v0 }
 0x426   : > { %v5044_v33 = vadd.f32 %v3480_v44, %v1329_v45 }
 0x427   : > { %1379 = vmax.xlane.f32.xlu1 %v5037_v4 }
 0x429   : > { %1377 = vmax.xlane.f32.xlu0 %v5040_v5 }
 0x42a   : > { %v3700_v53 = vpop.f32.mrb[12].mxu1 }
 0x42b   : > { %v1342_v11 = vpop.f32.mrb[13].mxu1  ;;  %1375 = vmax.xlane.f32.xlu1 %v5044_v33  ;;  %v5052_v37 = vadd.f32 %v3700_v53, %v3491_v10 }
 0x42c   : > { %v3701_v13 = vpop.f32.mrb[14].mxu1  ;;  %v5055_v18 = vadd.f32 %v3487_v41, %v1342_v11 }
 0x42d   : > { %v1345_v14 = vpop.f32.mrb[15].mxu1  ;;  %1373 = vmax.xlane.f32.xlu0 %v5047_v51  ;;  %v5062_v20 = vadd.f32 %v3701_v13, %v3492_v19 }
 0x42e   : > { %v5065_v61 = vadd.f32 %v3488_v63, %v1345_v14 }
 0x431   : > { %1385 = vmax.xlane.f32.xlu0 %v5052_v37 }
 0x435   : > { %1381 = vmax.xlane.f32.xlu0 %v5055_v18 }
 0x43c   : > { %1685 = vrot.lane.b32.xlu1 %v4938_v32, %s4370_s28 }
 0x44b   : > { %1683 = vrot.lane.b32.xlu0 %v4940_v42, %s4370_s28 }
 0x460   : > { %1387 = vmax.xlane.f32.xlu1 %v5062_v20 }
 0x464   : > { %1383 = vmax.xlane.f32.xlu1 %v5065_v61 }
 0x4a2   : > { %v1362_v22 = vpop.xlane.xlu0 %1361 }
 0x4a3   : > { %v1391_v23 = vsub.f32 %v5010_v24, %v1362_v22 }
 0x4a5   : > { %v1409_v47 = vmul.f32 1.442695, %v1391_v23  ;;  %v1360_v25 = vpop.xlane.xlu1 %1359 }
 0x4a6   : > { %v1390_v28 = vsub.f32 %v5013_v31, %v1360_v25  ;;  %v1358_v29 = vpop.xlane.xlu0 %1357 }
 0x4a7   : > { %4040 = vpow2.f32 %v1409_v47  ;;  %v1389_v30 = vsub.f32 %v5015_v34, %v1358_v29 }
 0x4a8   : > { %v1407_v35 = vmul.f32 1.442695, %v1390_v28 }
 0x4a9   : > { %v1405_v38 = vmul.f32 1.442695, %v1389_v30 }
 0x4aa   : > { %4042 = vpow2.f32 %v1407_v35  ;;  %v1364_v7 = vpop.xlane.xlu0 %1363 }
 0x4ab   : > { %4044 = vpow2.f32 %v1405_v38  ;;  %v1392_v43 = vsub.f32 %v5020_v16, %v1364_v7 }
 0x4ac   : > { %v1372_v50 = vpop.xlane.xlu1 %1371 }
 0x4ad   : > { %v1411_v46 = vmul.f32 1.442695, %v1392_v43  ;;  %v1396_v39 = vsub.f32 %v5023_v36, %v1372_v50 }
 0x4ae   : > { %v1370_v49 = vpop.xlane.xlu0 %1369 }
 0x4af   : > { %4046 = vpow2.f32 %v1411_v46  ;;  %v1395_v17 = vsub.f32 %v5026_v52, %v1370_v49  ;;  %v1419_v9 = vmul.f32 1.442695, %v1396_v39 }
 0x4b0   : > { %v1368_v26 = vpop.xlane.xlu1 %1367 }
 0x4b1   : > { %v5074_v48 = vpop.eup %4040  ;;  %v1417_v62 = vmul.f32 1.442695, %v1395_v17  ;;  %v1394_v27 = vsub.f32 %v5030_v58, %v1368_v26 }
 0x4b2   : > { %1441 = vadd.xlane.f32.xlu1 %v5074_v48  ;;  %v1366_v16 = vpop.xlane.xlu0 %1365 }
 0x4b3   : > { %v1393_v40 = vsub.f32 %v5033_v0, %v1366_v16  ;;  %4048 = vpow2.f32 %v1417_v62  ;;  %v1415_v45 = vmul.f32 1.442695, %v1394_v27 }
 0x4b4   : > { %v5077_v24 = vpop.eup %4042  ;;  %v1380_v60 = vpop.xlane.xlu1 %1379 }
 0x4b5   : > { %v5079_v31 = vpop.eup %4044  ;;  %1439 = vadd.xlane.f32.xlu0 %v5077_v24  ;;  %v1413_v44 = vmul.f32 1.442695, %v1393_v40  ;;  %v1400_v36 = vsub.f32 %v5037_v4, %v1380_v60 }
 0x4b6   : > { %1437 = vadd.xlane.f32.xlu1 %v5079_v31  ;;  %v1378_v54 = vpop.xlane.xlu0 %1377 }
 0x4b7   : > { %v1399_v8 = vsub.f32 %v5040_v5, %v1378_v54  ;;  %4050 = vpow2.f32 %v1413_v44  ;;  %v1427_v41 = vmul.f32 1.442695, %v1400_v36 }
 0x4b8   : > { %v1376_v53 = vpop.xlane.xlu1 %1375  ;;  %4052 = vpow2.f32 %v1415_v45 }
 0x4b9   : > { %v5083_v34 = vpop.eup %4046  ;;  %v1425_v10 = vmul.f32 1.442695, %v1399_v8  ;;  %4054 = vpow2.f32 %v1419_v9 }
 0x4ba   : > { %1443 = vadd.xlane.f32.xlu1 %v5083_v34  ;;  %v1374_v57 = vpop.xlane.xlu0 %1373 }
 0x4bb   : > { %v1397_v0 = vsub.f32 %v5047_v51, %v1374_v57  ;;  %4056 = vpow2.f32 %v1425_v10  ;;  %v1398_v51 = vsub.f32 %v5044_v33, %v1376_v53 }
 0x4bc   : > { %v5101_v5 = vpop.permute.xlu1 %1685 }
 0x4bd   : > { %v1421_v13 = vmul.f32 1.442695, %v1397_v0  ;;  %v5099_v14 = vpop.eup %4048  ;;  %v1423_v22 = vmul.f32 1.442695, %v1398_v51 }
 0x4be   : > { %v1386_v3 = vpop.xlane.xlu0 %1385 }
 0x4bf   : > { %v1403_v52 = vsub.f32 %v5052_v37, %v1386_v3  ;;  %v1720_v3 = vsel %vm1211_vm2, %v4987_v15, 0 }
 0x4c1   : > { %v1433_v58 = vmul.f32 1.442695, %v1403_v52  ;;  %v5105_v19 = vpop.eup %4050 }
 0x4c2   : > { %v1382_v11 = vpop.xlane.xlu0 %1381 }
 0x4c3   : > { %v1401_v12 = vsub.f32 %v5055_v18, %v1382_v11  ;;  %4058 = vpow2.f32 %v1433_v58  ;;  %v5107_v18 = vpop.eup %4052 }
 0x4c4   : > { %4060 = vpow2.f32 %v1421_v13  ;;  %v5112_v47 = vpop.eup %4054 }
 0x4c5   : > { %v1429_v37 = vmul.f32 1.442695, %v1401_v12  ;;  %v5114_v33 = vpop.eup %4056 }
 0x4c6   : > { %v1684_v46 = vpop.permute.xlu0 %1683 }
 0x4c7   : > { %4062 = vpow2.f32 %v1429_v37 }
 0x4c8   : > { %4064 = vpow2.f32 %v1427_v41 }
 0x4cb   : > { %1687 = vrot.lane.b32.xlu0 %v4948_v56, %s4370_s28  ;;  %1689 = vrot.lane.b32.xlu1 %v4946_v55, %s4370_s28 }
 0x4cd   : > { %v5119_v29 = vpop.eup %4058 }
 0x4ce   : > { %v5121_v30 = vpop.eup %4060 }
 0x4d1   : > { %v5125_v35 = vpop.eup %4062 }
 0x4d2   : > { %v5127_v38 = vpop.eup %4064 }
 0x4ea   : > { %1449 = vadd.xlane.f32.xlu0 %v5099_v14 }
 0x4ed   : > { %v1388_v63 = vpop.xlane.xlu1 %1387 }
 0x4ee   : > { %v1404_v4 = vsub.f32 %v5062_v20, %v1388_v63  ;;  %1445 = vadd.xlane.f32.xlu0 %v5105_v19 }
 0x4ef   : > { %1447 = vadd.xlane.f32.xlu1 %v5107_v18 }
 0x4f0   : > { %v1435_v23 = vmul.f32 1.442695, %v1404_v4 }
 0x4f1   : > { %v1384_v25 = vpop.xlane.xlu1 %1383 }
 0x4f2   : > { %4066 = vpow2.f32 %v1435_v23  ;;  %v1402_v28 = vsub.f32 %v5065_v61, %v1384_v25  ;;  %1451 = vadd.xlane.f32.xlu0 %v5112_v47 }
 0x4f3   : > { %1457 = vadd.xlane.f32.xlu1 %v5114_v33  ;;  %4068 = vpow2.f32 %v1423_v22 }
 0x4f4   : > { %v1431_v20 = vmul.f32 1.442695, %v1402_v28 }
 0x4f6   : > { %1465 = vadd.xlane.f32.xlu0 %v5119_v29  ;;  %4070 = vpow2.f32 %v1431_v20 }
 0x4f7   : > { %1453 = vadd.xlane.f32.xlu1 %v5121_v30 }
 0x4fa   : > { %1461 = vadd.xlane.f32.xlu0 %v5125_v35 }
 0x4fb   : > { %1459 = vadd.xlane.f32.xlu1 %v5127_v38 }
 0x4fc   : > { %v5131_v61 = vpop.eup %4066 }
 0x4fd   : > { %v5133_v7 = vpop.eup %4068 }
 0x4fe   : > { %1467 = vadd.xlane.f32.xlu0 %v5131_v61 }
 0x4ff   : > { %1455 = vadd.xlane.f32.xlu1 %v5133_v7 }
 0x500   : > { %v5137_v43 = vpop.eup %4070 }
 0x503   : > { %1463 = vadd.xlane.f32.xlu1 %v5137_v43 }
 0x514   : > { %1693 = vrot.lane.b32.xlu1 %v4954_v1, %s4370_s28  ;;  %1691 = vrot.lane.b32.xlu0 %v4956_v2, %s4370_s28 }
 0x518   : > { %1665 = vrot.lane.b32.xlu1 %v4928_v6, %s4371_s24  ;;  %1663 = vrot.lane.b32.xlu0 %v4930_v59, %s4371_s24 }
 0x51c   : > { %1669 = vrot.lane.b32.xlu1 %v4938_v32, %s4371_s24  ;;  %1667 = vrot.lane.b32.xlu0 %v4940_v42, %s4371_s24 }
 0x520   : > { %1673 = vrot.lane.b32.xlu1 %v4946_v55, %s4371_s24  ;;  %1671 = vrot.lane.b32.xlu0 %v4948_v56, %s4371_s24 }
 0x524   : > { %1677 = vrot.lane.b32.xlu1 %v4954_v1, %s4371_s24  ;;  %1675 = vrot.lane.b32.xlu0 %v4956_v2, %s4371_s24 }
 0x528   : > { %1994 = vrot.lane.b32.xlu1 %v4928_v6, %s4372_s22  ;;  %1992 = vrot.lane.b32.xlu0 %v4930_v59, %s4372_s22 }
 0x52c   : > { %1996 = vrot.lane.b32.xlu0 %v4940_v42, %s4372_s22 }
 0x53f   : > { %v1442_v49 = vpop.xlane.xlu1 %1441 }
 0x542   : > { %v1440_v16 = vpop.xlane.xlu0 %1439 }
 0x543   : > { %4072 = vrcp.f32 %v1440_v16  ;;  %v1438_v50 = vpop.xlane.xlu1 %1437 }
 0x544   : > { %4074 = vrcp.f32 %v1438_v50 }
 0x545   : > { %4076 = vrcp.f32 %v1442_v49 }
 0x546   : > { %v1688_v15 = vpop.permute.xlu0 %1687 }
 0x547   : > { %v1444_v54 = vpop.xlane.xlu1 %1443 }
 0x548   : > { %4078 = vrcp.f32 %v1444_v54 }
 0x54d   : > { %v4073_v17 = vpop.eup %4072 }
 0x54e   : > { %v4075_v26 = vpop.eup %4074  ;;  %v1486_v57 = vmul.f32 %v4073_v17, %v5077_v24  ;;  %v1723_v24 = vsel %vm1211_vm2, %v5068_v21, 0 }
 0x54f   : > { %v1485_v6 = vmul.f32 %v4075_v26, %v5079_v31  ;;  %v4077_v62 = vpop.eup %4076  ;;  %v1729_v31 = vsel %vm1211_vm2, %v5101_v5, 0 }
 0x550   : > { %v1487_v42 = vmul.f32 %v4077_v62, %v5074_v48  ;;  %v1726_v48 = vsel %vm1211_vm2, %v1684_v46, 0 }
 0x551   : > { %v1501_v59 = vpack.c.bf16 %v1486_v57, %v1485_v6 }
 0x552   : > { %v4079_v40 = vpop.eup %4078 }
 0x553   : > { %v1488_v27 = vmul.f32 %v4079_v40, %v5083_v34  ;;  %3718 = vmatprep.mubr.bf16.mxu0 %v1501_v59  ;;  %v1732_v34 = vsel %vm1211_vm2, %v1688_v15, 0 }
 0x555   : > { %v1502_v60 = vpack.c.bf16 %v1488_v27, %v1487_v42 }
 0x557   : > { %3719 = vmatmul.mubr.bf16.vlgmr.msra.gmra.mrb[16].mxu0 %v1502_v60 }
 0x558   : > { %3735 = vmatpush3.bf16.xpose.msra.mxu0 %v1720_v3 }
 0x559   : > { %3895 = vmatprep.subr.msk.bf16.mxu0 %vm1211_vm2, %v5068_v21  ;;  %v1690_v21 = vpop.permute.xlu1 %1689 }
 0x55a   : > { %v1735_v8 = vsel %vm1211_vm2, %v1690_v21, 0 }
 0x560   : > { %3737 = vmatpush3.bf16.xpose.msra.mxu0 %v1723_v24 }
 0x561   : > { %3896 = vmatprep.subr.msk.bf16.mxu0 %vm1211_vm2, %v1684_v46 }
 0x568   : > { %3739 = vmatpush3.bf16.xpose.msra.mxu0 %v1726_v48 }
 0x569   : > { %3897 = vmatprep.subr.msk.bf16.mxu0 %vm1211_vm2, %v5101_v5 }
 0x570   : > { %3741 = vmatpush3.bf16.xpose.msra.mxu0 %v1729_v31 }
 0x571   : > { %3898 = vmatprep.subr.msk.bf16.mxu0 %vm1211_vm2, %v1688_v15 }
 0x577   : > { %v1450_v39 = vpop.xlane.xlu0 %1449 }
 0x578   : > { %3743 = vmatpush3.bf16.xpose.msra.mxu0 %v1732_v34 }
 0x579   : > { %3899 = vmatprep.subr.msk.bf16.mxu0 %vm1211_vm2, %v1690_v21 }
 0x57b   : > { %v1446_v44 = vpop.xlane.xlu0 %1445 }
 0x57c   : > { %4080 = vrcp.f32 %v1446_v44  ;;  %v1448_v45 = vpop.xlane.xlu1 %1447 }
 0x57d   : > { %4082 = vrcp.f32 %v1448_v45 }
 0x57e   : > { %4084 = vrcp.f32 %v1450_v39 }
 0x57f   : > { %v1452_v9 = vpop.xlane.xlu0 %1451 }
 0x580   : > { %3745 = vmatpush3.bf16.xpose.msra.mxu0 %v1735_v8  ;;  %4086 = vrcp.f32 %v1452_v9  ;;  %v1458_v53 = vpop.xlane.xlu1 %1457 }
 0x583   : > { %v1466_v52 = vpop.xlane.xlu0 %1465 }
 0x584   : > { %v1454_v10 = vpop.xlane.xlu1 %1453 }
 0x586   : > { %v4081_v0 = vpop.eup %4080 }
 0x587   : > { %v4083_v11 = vpop.eup %4082  ;;  %v1462_v58 = vpop.xlane.xlu0 %1461  ;;  %v1489_v12 = vmul.f32 %v4081_v0, %v5105_v19 }
 0x588   : > { %v4085_v36 = vpop.eup %4084  ;;  %v1460_v13 = vpop.xlane.xlu1 %1459  ;;  %v1490_v5 = vmul.f32 %v4083_v11, %v5107_v18 }
 0x589   : > { %4088 = vrcp.f32 %v1460_v13  ;;  %v1491_v63 = vmul.f32 %v4085_v36, %v5099_v14 }
 0x58a   : > { %v4087_v37 = vpop.eup %4086  ;;  %v1503_v41 = vpack.c.bf16 %v1490_v5, %v1489_v12  ;;  %4090 = vrcp.f32 %v1454_v10  ;;  %v3533_v5 = vld [vmem:[%s4622_s25 + $0x48] sm:$0xff]  }
 0x58b   : > { %v1468_v51 = vpop.xlane.xlu0 %1467  ;;  %v1492_v4 = vmul.f32 %v4087_v37, %v5112_v47  ;;  %4092 = vrcp.f32 %v1458_v53 }
 0x58c   : > { %v1456_v22 = vpop.xlane.xlu1 %1455  ;;  %3722 = vmatprep.mubr.bf16.mxu0 %v1503_v41  ;;  %v3499_v41 = vunpack.c.l.bf16 %v3533_v5 }
 0x58d   : > { %4094 = vrcp.f32 %v1456_v22  ;;  %v1504_v23 = vpack.c.bf16 %v1492_v4, %v1491_v63 }
 0x58e   : > { %4096 = vrcp.f32 %v1462_v58 }
 0x58f   : > { %3723 = vmatmul.mubr.bf16.gmra.mrb[20].mxu0 %v1504_v23  ;;  %v1692_v19 = vpop.permute.xlu0 %1691 }
 0x590   : > { %v1738_v25 = vsel %vm1211_vm2, %v1692_v19, 0  ;;  %v1464_v18 = vpop.xlane.xlu1 %1463  ;;  %3900 = vmatprep.subr.msk.bf16.mxu0 %vm1211_vm2, %v1692_v19 }
 0x591   : > { %4098 = vrcp.f32 %v1464_v18  ;;  %3747 = vmatpush3.bf16.xpose.msra.mxu0 %v1738_v25 }
 0x592   : > { %4100 = vrcp.f32 %v1468_v51  ;;  %v3532_v51 = vld [vmem:[%s4622_s25 + $0x40] sm:$0xff]  }
 0x593   : > { %v1664_v28 = vpop.permute.xlu0 %1663  ;;  %v4089_v14 = vpop.eup %4088  ;;  %4102 = vrcp.f32 %v1466_v52  ;;  %v3496_v4 = vunpack.c.h.bf16 %v3532_v51  ;;  %v3495_v23 = vunpack.c.l.bf16 %v3532_v51 }
 0x594   : > { %v1694_v47 = vpop.permute.xlu1 %1693  ;;  %v4091_v20 = vpop.eup %4090  ;;  %v1496_v50 = vmul.f32 %v4089_v14, %v5127_v38 }
 0x595   : > { %3901 = vmatprep.subr.msk.bf16.mxu0 %vm1211_vm2, %v1694_v47  ;;  %v4093_v46 = vpop.eup %4092  ;;  %v1741_v54 = vsel %vm1211_vm2, %v1694_v47, 0  ;;  %v1493_v26 = vmul.f32 %v4091_v20, %v5121_v30  ;;  %v3500_v47 = vunpack.c.h.bf16 %v3533_v5  ;;  %v3535_v20 = vld [vmem:[%s4622_s25 + $0x58] sm:$0xff]  }
 0x596   : > { %v1495_v62 = vmul.f32 %v4093_v46, %v5114_v33  ;;  %v3508_v46 = vunpack.c.h.bf16 %v3535_v20 }
 0x597   : > { %v4095_v49 = vpop.eup %4094  ;;  %v1668_v16 = vpop.permute.xlu0 %1667 }
 0x598   : > { %v1666_v17 = vpop.permute.xlu1 %1665  ;;  %v1494_v57 = vmul.f32 %v4095_v49, %v5133_v7  ;;  %v4097_v6 = vpop.eup %4096  ;;  %v1506_v27 = vpack.c.bf16 %v1496_v50, %v1495_v62  ;;  %v3507_v50 = vunpack.c.l.bf16 %v3535_v20 }
 0x599   : > { %3749 = vmatpush3.bf16.xpose.msra.mxu0 %v1741_v54  ;;  %v1497_v38 = vmul.f32 %v4097_v6, %v5125_v35 }
 0x59a   : > { %v1505_v59 = vpack.c.bf16 %v1494_v57, %v1493_v26 }
 0x59b   : > { %v4099_v40 = vpop.eup %4098  ;;  %v1672_v42 = vpop.permute.xlu0 %1671 }
 0x59c   : > { %v4101_v60 = vpop.eup %4100  ;;  %v1670_v3 = vpop.permute.xlu1 %1669  ;;  %3726 = vmatprep.mubr.bf16.mxu0 %v1505_v59  ;;  %v1498_v24 = vmul.f32 %v4099_v40, %v5137_v43 }
 0x59d   : > { %3727 = vmatmul.mubr.bf16.gmra.mrb[24].mxu0 %v1506_v27  ;;  %v4103_v48 = vpop.eup %4102  ;;  %v1500_v7 = vmul.f32 %v4101_v60, %v5131_v61 }
 0x59e   : > { %v1507_v30 = vpack.c.bf16 %v1498_v24, %v1497_v38  ;;  %v1499_v33 = vmul.f32 %v4103_v48, %v5119_v29 }
 0x59f   : > { %v1676_v31 = vpop.permute.xlu0 %1675 }
 0x5a0   : > { %v1674_v15 = vpop.permute.xlu1 %1673  ;;  %3730 = vmatprep.mubr.bf16.mxu0 %v1507_v30  ;;  %v1508_v39 = vpack.c.bf16 %v1500_v7, %v1499_v33  ;;  %v3536_v30 = vld [vmem:[%s4622_s25 + $0x60] sm:$0xff]  }
 0x5a3   : > { %v1993_v34 = vpop.permute.xlu0 %1992 }
 0x5a4   : > { %v1678_v21 = vpop.permute.xlu1 %1677  ;;  %3766 = vmatprep.subr.bf16.mxu0 %v1993_v34  ;;  %3870 = vmatprep.subr.bf16.mxu1 %v1993_v34 }
 0x5a5   : > { %3731 = vmatmul.mubr.bf16.gmra.mrb[28].mxu0 %v1508_v39  ;;  %3878 = vmatpush3.bf16.msra.mxu1 %v1993_v34  ;;  %v3511_v39 = vunpack.c.l.bf16 %v3536_v30 }
 0x5a6   : > { %3750 = vmatprep.mubr.msk.bf16.mxu0 %vm1211_vm2, %v1664_v28 }
 0x5a7   : > { %v1997_v43 = vpop.permute.xlu0 %1996 }
 0x5a8   : > { %v1995_v35 = vpop.permute.xlu1 %1994 }
 0x5a9   : > { %3871 = vmatprep.subr.bf16.mxu1 %v1995_v35 }
 0x5aa   : > { %3879 = vmatpush3.bf16.msra.mxu1 %v1995_v35 }
 0x5ab   : > { %3872 = vmatprep.subr.bf16.mxu1 %v1997_v43 }
 0x5ad   : > { %3751 = vmatmul.mubr.msk.bf16.vlgmr.msra.gmra.mrb[32].mxu0 %vm1211_vm2, %v1666_v17  ;;  %v3534_v17 = vld [vmem:[%s4622_s25 + $0x50] sm:$0xff]  }
 0x5ae   : > { %3767 = vmatpush3.bf16.msra.mxu0 %v1993_v34  ;;  %3754 = vmatprep.mubr.msk.bf16.mxu0 %vm1211_vm2, %v1668_v16  ;;  %v3504_v6 = vunpack.c.h.bf16 %v3534_v17  ;;  %v3503_v40 = vunpack.c.l.bf16 %v3534_v17 }
 0x5af   : > { %3768 = vmatprep.subr.bf16.mxu0 %v1995_v35  ;;  %3880 = vmatpush3.bf16.msra.mxu1 %v1997_v43 }
 0x5b2   : > { %3769 = vmatpush3.bf16.msra.mxu0 %v1995_v35 }
 0x5b3   : > { %3770 = vmatprep.subr.bf16.mxu0 %v1997_v43 }
 0x5b5   : > { %3755 = vmatmul.mubr.msk.bf16.gmra.mrb[36].mxu0 %vm1211_vm2, %v1670_v3 }
 0x5b6   : > { %3771 = vmatpush3.bf16.msra.mxu0 %v1997_v43  ;;  %3758 = vmatprep.mubr.msk.bf16.mxu0 %vm1211_vm2, %v1672_v42  ;;  %v3537_v42 = vld [vmem:[%s4622_s25 + $0x68] sm:$0xff]  }
 0x5b7   : > { %v3516_v60 = vunpack.c.h.bf16 %v3537_v42  ;;  %v3515_v24 = vunpack.c.l.bf16 %v3537_v42 }
 0x5bd   : > { %3759 = vmatmul.mubr.msk.bf16.gmra.mrb[40].mxu0 %vm1211_vm2, %v1674_v15  ;;  %v3512_v15 = vunpack.c.h.bf16 %v3536_v30 }
 0x5be   : > { %3762 = vmatprep.mubr.msk.bf16.mxu0 %vm1211_vm2, %v1676_v31 }
 0x5c5   : > { %3763 = vmatmul.mubr.msk.bf16.gmra.mrb[44].mxu0 %vm1211_vm2, %v1678_v21  ;;  %v3539_v21 = vld [vmem:[%s4622_s25 + $0x78] sm:$0xff]  }
 0x62a   : > { %v5202_v29 = vpop.f32.mrb[16].mxu0 }
 0x62b   : > { %v5204_v61 = vpop.f32.mrb[17].mxu0 }
 0x62c   : > { %v5206_v44 = vpop.f32.mrb[18].mxu0 }
 0x62d   : > { %v5208_v45 = vpop.f32.mrb[19].mxu0 }
 0x662   : > { %v5210_v8 = vpop.f32.mrb[20].mxu0 }
 0x663   : > { %v5212_v9 = vpop.f32.mrb[21].mxu0 }
 0x664   : > { %v5214_v53 = vpop.f32.mrb[22].mxu0 }
 0x665   : > { %v5216_v52 = vpop.f32.mrb[23].mxu0 }
 0x670   : > { %v5218_v10 = vpop.f32.mrb[24].mxu0 }
 0x671   : > { %v5220_v0 = vpop.f32.mrb[25].mxu0 }
 0x672   : > { %v5222_v11 = vpop.f32.mrb[26].mxu0 }
 0x673   : > { %v5224_v58 = vpop.f32.mrb[27].mxu0 }
 0x678   : > { %v5226_v12 = vpop.f32.mrb[28].mxu0 }
 0x679   : > { %v5228_v36 = vpop.f32.mrb[29].mxu0 }
 0x67a   : > { %v5230_v13 = vpop.f32.mrb[30].mxu0 }
 0x67b   : > { %v5233_v37 = vpop.f32.mrb[31].mxu0 }
 0x680   : > { %v3752_v63 = vpop.f32.mrb[32].mxu0 }
 0x681   : > { %v5236_v22 = vadd.f32 %v3752_v63, %v3499_v41  ;;  %v1777_v19 = vpop.f32.mrb[33].mxu0  ;;  %v3523_v41 = vunpack.c.l.bf16 %v3539_v21  ;;  %v3538_v63 = vld [vmem:[%s4622_s25 + $0x70] sm:$0xff]   ;;  %s4373_s25 = smov 16  }
 0x682   : > { %v3753_v25 = vpop.f32.mrb[34].mxu0  ;;  %v5241_v14 = vadd.f32 %v3495_v23, %v1777_v19 }
 0x683   : > { %1844 = vmax.xlane.f32.xlu0 %v5236_v22  ;;  %v1780_v18 = vpop.f32.mrb[35].mxu0  ;;  %v5246_v16 = vadd.f32 %v3753_v25, %v3500_v47  ;;  %v3519_v25 = vunpack.c.l.bf16 %v3538_v63  ;;  %v3524_v47 = vunpack.c.h.bf16 %v3539_v21 }
 0x684   : > { %v5239_v28 = vadd.f32 %v3496_v4, %v1780_v18 }
 0x686   : > { %1842 = vmax.xlane.f32.xlu1 %v5239_v28 }
 0x687   : > { %1840 = vmax.xlane.f32.xlu0 %v5241_v14 }
 0x688   : > { %v3756_v49 = vpop.f32.mrb[36].mxu0 }
 0x689   : > { %v1793_v54 = vpop.f32.mrb[37].mxu0  ;;  %v5252_v59 = vadd.f32 %v3756_v49, %v3507_v50 }
 0x68a   : > { %v3757_v26 = vpop.f32.mrb[38].mxu0  ;;  %v5259_v38 = vadd.f32 %v3503_v40, %v1793_v54 }
 0x68b   : > { %v5249_v57 = vadd.f32 %v3757_v26, %v3508_v46  ;;  %1846 = vmax.xlane.f32.xlu0 %v5246_v16  ;;  %v1796_v62 = vpop.f32.mrb[39].mxu0  ;;  %v3520_v46 = vunpack.c.h.bf16 %v3538_v63 }
 0x68c   : > { %v5256_v27 = vadd.f32 %v3504_v6, %v1796_v62 }
 0x68d   : > { %1854 = vmax.xlane.f32.xlu1 %v5249_v57 }
 0x68f   : > { %1852 = vmax.xlane.f32.xlu0 %v5252_v59 }
 0x690   : > { %v3760_v3 = vpop.f32.mrb[40].mxu0 }
 0x691   : > { %1850 = vmax.xlane.f32.xlu1 %v5256_v27  ;;  %v1809_v48 = vpop.f32.mrb[41].mxu0  ;;  %v5266_v34 = vadd.f32 %v3760_v3, %v3515_v24 }
 0x692   : > { %v3761_v31 = vpop.f32.mrb[42].mxu0  ;;  %v5273_v5 = vadd.f32 %v3511_v39, %v1809_v48 }
 0x693   : > { %v5263_v7 = vadd.f32 %v3761_v31, %v3516_v60  ;;  %1848 = vmax.xlane.f32.xlu0 %v5259_v38  ;;  %v1812_v33 = vpop.f32.mrb[43].mxu0 }
 0x694   : > { %v5270_v35 = vadd.f32 %v3512_v15, %v1812_v33 }
 0x695   : > { %1862 = vmax.xlane.f32.xlu1 %v5263_v7 }
 0x697   : > { %1860 = vmax.xlane.f32.xlu0 %v5266_v34 }
 0x698   : > { %v3764_v43 = vpop.f32.mrb[44].mxu0 }
 0x699   : > { %1858 = vmax.xlane.f32.xlu1 %v5270_v35  ;;  %v1825_v51 = vpop.f32.mrb[45].mxu0  ;;  %v5278_v19 = vadd.f32 %v3764_v43, %v3523_v41 }
 0x69a   : > { %v3765_v4 = vpop.f32.mrb[46].mxu0  ;;  %v5281_v18 = vadd.f32 %v3519_v25, %v1825_v51 }
 0x69b   : > { %1856 = vmax.xlane.f32.xlu0 %v5273_v5  ;;  %v1828_v23 = vpop.f32.mrb[47].mxu0  ;;  %v5288_v20 = vadd.f32 %v3765_v4, %v3524_v47 }
 0x69c   : > { %v5291_v49 = vadd.f32 %v3520_v46, %v1828_v23 }
 0x69f   : > { %1868 = vmax.xlane.f32.xlu0 %v5278_v19 }
 0x6a3   : > { %1864 = vmax.xlane.f32.xlu0 %v5281_v18 }
 0x6aa   : > { %2000 = vrot.lane.b32.xlu1 %v4948_v56, %s4372_s22 }
 0x6b9   : > { %1998 = vrot.lane.b32.xlu0 %v4938_v32, %s4372_s22 }
 0x6ce   : > { %1870 = vmax.xlane.f32.xlu1 %v5288_v20 }
 0x6d2   : > { %1866 = vmax.xlane.f32.xlu1 %v5291_v49 }
 0x6e3   : > { %2002 = vrot.lane.b32.xlu1 %v4946_v55, %s4372_s22 }
 0x710   : > { %v1845_v50 = vpop.xlane.xlu0 %1844 }
 0x711   : > { %v1874_v54 = vsub.f32 %v5236_v22, %v1845_v50 }
 0x713   : > { %v1892_v56 = vmul.f32 1.442695, %v1874_v54  ;;  %v1843_v32 = vpop.xlane.xlu1 %1842 }
 0x714   : > { %v1841_v17 = vpop.xlane.xlu0 %1840  ;;  %v1873_v62 = vsub.f32 %v5239_v28, %v1843_v32 }
 0x715   : > { %4104 = vpow2.f32 %v1892_v56  ;;  %v1872_v26 = vsub.f32 %v5241_v14, %v1841_v17 }
 0x716   : > { %v1890_v24 = vmul.f32 1.442695, %v1873_v62 }
 0x717   : > { %v1888_v6 = vmul.f32 1.442695, %v1872_v26 }
 0x718   : > { %v1847_v40 = vpop.xlane.xlu0 %1846 }
 0x719   : > { %4106 = vpow2.f32 %v1888_v6  ;;  %v1875_v42 = vsub.f32 %v5246_v16, %v1847_v40 }
 0x71a   : > { %v1855_v60 = vpop.xlane.xlu1 %1854 }
 0x71b   : > { %v1894_v3 = vmul.f32 1.442695, %v1875_v42  ;;  %v1879_v15 = vsub.f32 %v5249_v57, %v1855_v60 }
 0x71c   : > { %v1853_v55 = vpop.xlane.xlu0 %1852 }
 0x71d   : > { %4108 = vpow2.f32 %v1894_v3  ;;  %v1878_v22 = vsub.f32 %v5252_v59, %v1853_v55  ;;  %v1902_v41 = vmul.f32 1.442695, %v1879_v15 }
 0x71e   : > { %v1851_v48 = vpop.xlane.xlu1 %1850  ;;  %4110 = vpow2.f32 %v1890_v24 }
 0x71f   : > { %v5301_v30 = vpop.eup %4104  ;;  %v1900_v31 = vmul.f32 1.442695, %v1878_v22  ;;  %v1877_v14 = vsub.f32 %v5256_v27, %v1851_v48 }
 0x720   : > { %1924 = vadd.xlane.f32.xlu1 %v5301_v30  ;;  %v1849_v28 = vpop.xlane.xlu0 %1848 }
 0x721   : > { %4112 = vpow2.f32 %v1900_v31  ;;  %v1898_v16 = vmul.f32 1.442695, %v1877_v14  ;;  %v1876_v33 = vsub.f32 %v5259_v38, %v1849_v28 }
 0x722   : > { %v1863_v59 = vpop.xlane.xlu1 %1862 }
 0x723   : > { %v5307_v39 = vpop.eup %4106  ;;  %v1896_v21 = vmul.f32 1.442695, %v1876_v33  ;;  %4114 = vpow2.f32 %v1898_v16  ;;  %v1883_v57 = vsub.f32 %v5263_v7, %v1863_v59 }
 0x724   : > { %1920 = vadd.xlane.f32.xlu1 %v5307_v39  ;;  %v1861_v43 = vpop.xlane.xlu0 %1860 }
 0x725   : > { %4116 = vpow2.f32 %v1896_v21  ;;  %v1882_v27 = vsub.f32 %v5266_v34, %v1861_v43  ;;  %v1910_v50 = vmul.f32 1.442695, %v1883_v57 }
 0x726   : > { %4118 = vpow2.f32 %v1902_v41  ;;  %v1859_v4 = vpop.xlane.xlu1 %1858 }
 0x727   : > { %v5311_v51 = vpop.eup %4108  ;;  %v1908_v63 = vmul.f32 1.442695, %v1882_v27  ;;  %v1881_v34 = vsub.f32 %v5270_v35, %v1859_v4 }
 0x728   : > { %1926 = vadd.xlane.f32.xlu1 %v5311_v51  ;;  %v1857_v38 = vpop.xlane.xlu0 %1856  ;;  %v5316_v25 = vpop.eup %4110 }
 0x729   : > { %v1880_v23 = vsub.f32 %v5273_v5, %v1857_v38  ;;  %4120 = vpow2.f32 %v1908_v63  ;;  %v1906_v32 = vmul.f32 1.442695, %v1881_v34 }
 0x72a   : > { %v2001_v42 = vpop.permute.xlu1 %2000 }
 0x72b   : > { %v5318_v47 = vpop.eup %4112  ;;  %v1904_v46 = vmul.f32 1.442695, %v1880_v23 }
 0x72c   : > { %1922 = vadd.xlane.f32.xlu1 %v5316_v25  ;;  %1932 = vadd.xlane.f32.xlu0 %v5318_v47  ;;  %v1869_v7 = vpop.xlane.xlu0 %1868 }
 0x72d   : > { %4122 = vpow2.f32 %v1904_v46  ;;  %v1886_v54 = vsub.f32 %v5278_v19, %v1869_v7  ;;  %v5324_v56 = vpop.eup %4114 }
 0x72e   : > { %4124 = vpow2.f32 %v1910_v50 }
 0x72f   : > { %v5326_v5 = vpop.eup %4116  ;;  %v1916_v17 = vmul.f32 1.442695, %v1886_v54 }
 0x730   : > { %1930 = vadd.xlane.f32.xlu1 %v5324_v56  ;;  %1928 = vadd.xlane.f32.xlu0 %v5326_v5  ;;  %v1865_v35 = vpop.xlane.xlu0 %1864  ;;  %v5331_v6 = vpop.eup %4118 }
 0x731   : > { %4126 = vpow2.f32 %v1916_v17  ;;  %v1884_v26 = vsub.f32 %v5281_v18, %v1865_v35 }
 0x732   : > { %4128 = vpow2.f32 %v1906_v32 }
 0x733   : > { %v1912_v62 = vmul.f32 1.442695, %v1884_v26  ;;  %v5334_v40 = vpop.eup %4120 }
 0x734   : > { %1934 = vadd.xlane.f32.xlu0 %v5331_v6  ;;  %v1999_v19 = vpop.permute.xlu0 %1998 }
 0x735   : > { %4130 = vpow2.f32 %v1912_v62  ;;  %3772 = vmatprep.subr.bf16.mxu0 %v1999_v19  ;;  %3873 = vmatprep.subr.bf16.mxu1 %v1999_v19 }
 0x736   : > { %3773 = vmatpush3.bf16.msra.mxu0 %v1999_v19  ;;  %3881 = vmatpush3.bf16.msra.mxu1 %v1999_v19 }
 0x737   : > { %v5336_v60 = vpop.eup %4122  ;;  %3774 = vmatprep.subr.bf16.mxu0 %v2001_v42  ;;  %3874 = vmatprep.subr.bf16.mxu1 %v2001_v42 }
 0x738   : > { %1940 = vadd.xlane.f32.xlu0 %v5334_v40  ;;  %1936 = vadd.xlane.f32.xlu1 %v5336_v60  ;;  %v5340_v18 = vpop.eup %4124 }
 0x73a   : > { %3775 = vmatpush3.bf16.msra.mxu0 %v2001_v42  ;;  %3882 = vmatpush3.bf16.msra.mxu1 %v2001_v42 }
 0x73b   : > { %v5342_v3 = vpop.eup %4126 }
 0x73c   : > { %1942 = vadd.xlane.f32.xlu0 %v5340_v18  ;;  %1948 = vadd.xlane.f32.xlu1 %v5342_v3  ;;  %v5346_v24 = vpop.eup %4128 }
 0x73f   : > { %v5348_v55 = vpop.eup %4130 }
 0x740   : > { %1938 = vadd.xlane.f32.xlu0 %v5346_v24  ;;  %1944 = vadd.xlane.f32.xlu1 %v5348_v55 }
 0x751   : > { %2006 = vrot.lane.b32.xlu1 %v4954_v1, %s4372_s22 }
 0x756   : > { %2004 = vrot.lane.b32.xlu0 %v4956_v2, %s4372_s22 }
 0x75b   : > { %v1871_v22 = vpop.xlane.xlu1 %1870 }
 0x75c   : > { %v1887_v28 = vsub.f32 %v5288_v20, %v1871_v22 }
 0x75e   : > { %v1918_v16 = vmul.f32 1.442695, %v1887_v28 }
 0x75f   : > { %v1867_v48 = vpop.xlane.xlu1 %1866 }
 0x760   : > { %v1885_v31 = vsub.f32 %v5291_v49, %v1867_v48 }
 0x762   : > { %v1914_v15 = vmul.f32 1.442695, %v1885_v31 }
 0x763   : > { %v2003_v14 = vpop.permute.xlu1 %2002 }
 0x764   : > { %3776 = vmatprep.subr.bf16.mxu0 %v2003_v14  ;;  %3875 = vmatprep.subr.bf16.mxu1 %v2003_v14  ;;  %4132 = vpow2.f32 %v1914_v15 }
 0x765   : > { %3777 = vmatpush3.bf16.msra.mxu0 %v2003_v14  ;;  %3883 = vmatpush3.bf16.msra.mxu1 %v2003_v14  ;;  %4134 = vpow2.f32 %v1918_v16 }
 0x76e   : > { %v5358_v33 = vpop.eup %4132 }
 0x76f   : > { %v5361_v1 = vpop.eup %4134 }
 0x775   : > { %1946 = vadd.xlane.f32.xlu0 %v5358_v33 }
 0x779   : > { %1950 = vadd.xlane.f32.xlu0 %v5361_v1 }
 0x7ad   : > { %v1925_v2 = vpop.xlane.xlu1 %1924 }
 0x7b1   : > { %v1921_v49 = vpop.xlane.xlu1 %1920 }
 0x7b2   : > { %4136 = vrcp.f32 %v1921_v49 }
 0x7b5   : > { %v1927_v21 = vpop.xlane.xlu1 %1926 }
 0x7b9   : > { %v1923_v59 = vpop.xlane.xlu1 %1922  ;;  %v1933_v43 = vpop.xlane.xlu0 %1932 }
 0x7ba   : > { %4138 = vrcp.f32 %v1923_v59 }
 0x7bc   : > { %v4137_v57 = vpop.eup %4136 }
 0x7bd   : > { %v1931_v20 = vpop.xlane.xlu1 %1930  ;;  %v1929_v41 = vpop.xlane.xlu0 %1928  ;;  %v1968_v23 = vmul.f32 %v4137_v57, %v5307_v39 }
 0x7be   : > { %4140 = vrcp.f32 %v1931_v20 }
 0x7bf   : > { %4142 = vrcp.f32 %v1929_v41 }
 0x7c0   : > { %4144 = vrcp.f32 %v1927_v21 }
 0x7c1   : > { %v1935_v27 = vpop.xlane.xlu0 %1934 }
 0x7c2   : > { %4146 = vrcp.f32 %v1935_v27 }
 0x7c3   : > { %4148 = vrcp.f32 %v1925_v2 }
 0x7c4   : > { %v4139_v63 = vpop.eup %4138  ;;  %4150 = vrcp.f32 %v1933_v43 }
 0x7c5   : > { %v1937_v38 = vpop.xlane.xlu1 %1936  ;;  %v1941_v4 = vpop.xlane.xlu0 %1940  ;;  %v1969_v46 = vmul.f32 %v4139_v63, %v5316_v25 }
 0x7c6   : > { %4152 = vrcp.f32 %v1937_v38 }
 0x7c7   : > { %v1984_v50 = vpack.c.bf16 %v1969_v46, %v1968_v23 }
 0x7c8   : > { %v4141_v34 = vpop.eup %4140 }
 0x7c9   : > { %v4143_v7 = vpop.eup %4142  ;;  %3782 = vmatprep.mubr.bf16.mxu0 %v1984_v50  ;;  %v1949_v54 = vpop.xlane.xlu1 %1948  ;;  %v1973_v32 = vmul.f32 %v4141_v34, %v5324_v56  ;;  %v3996_v50 = vld [vmem:[%s4612_s11] sm:$0xff]   ;;  %v3997_v34 = vld [vmem:[%s4612_s11 + $0x8] sm:$0xff]  }
 0x7ca   : > { %v1943_v17 = vpop.xlane.xlu0 %1942  ;;  %v1972_v35 = vmul.f32 %v4143_v7, %v5326_v5  ;;  %v4145_v25 = vpop.eup %4144 }
 0x7cb   : > { %4154 = vrcp.f32 %v1943_v17  ;;  %v1971_v56 = vmul.f32 %v4145_v25, %v5311_v51 }
 0x7cc   : > { %v1986_v26 = vpack.c.bf16 %v1973_v32, %v1972_v35  ;;  %v4147_v19 = vpop.eup %4146 }
 0x7cd   : > { %v1945_v62 = vpop.xlane.xlu1 %1944  ;;  %v4149_v22 = vpop.eup %4148  ;;  %v1975_v5 = vmul.f32 %v4147_v19, %v5331_v6 }
 0x7ce   : > { %v1939_v39 = vpop.xlane.xlu0 %1938  ;;  %3786 = vmatprep.mubr.bf16.mxu1 %v1986_v26  ;;  %v4151_v48 = vpop.eup %4150  ;;  %v1970_v14 = vmul.f32 %v4149_v22, %v5301_v30 }
 0x7cf   : > { %4156 = vrcp.f32 %v1939_v39  ;;  %v1974_v28 = vmul.f32 %v4151_v48, %v5318_v47 }
 0x7d0   : > { %4158 = vrcp.f32 %v1941_v4  ;;  %v4153_v15 = vpop.eup %4152  ;;  %v1985_v2 = vpack.c.bf16 %v1971_v56, %v1970_v14 }
 0x7d1   : > { %v2007_v31 = vpop.permute.xlu1 %2006  ;;  %v1987_v49 = vpack.c.bf16 %v1975_v5, %v1974_v28  ;;  %v1976_v59 = vmul.f32 %v4153_v15, %v5336_v60  ;;  %4160 = vrcp.f32 %v1945_v62 }
 0x7d2   : > { %v2005_v42 = vpop.permute.xlu0 %2004 }
 0x7d3   : > { %3778 = vmatprep.subr.bf16.mxu0 %v2005_v42  ;;  %3876 = vmatprep.subr.bf16.mxu1 %v2005_v42 }
 0x7d4   : > { %3779 = vmatpush3.bf16.msra.mxu0 %v2005_v42  ;;  %3884 = vmatpush3.bf16.msra.mxu1 %v2005_v42 }
 0x7d5   : > { %3780 = vmatprep.subr.bf16.mxu0 %v2007_v31  ;;  %3877 = vmatprep.subr.bf16.mxu1 %v2007_v31  ;;  %v4155_v16 = vpop.eup %4154 }
 0x7d6   : > { %v1979_v20 = vmul.f32 %v4155_v16, %v5340_v18 }
 0x7d8   : > { %3781 = vmatpush3.bf16.msra.mxu0 %v2007_v31  ;;  %3885 = vmatpush3.bf16.msra.mxu1 %v2007_v31 }
 0x7d9   : > { %v4157_v21 = vpop.eup %4156  ;;  %3798 = vmatprep.subr.bf16.mxu1 %v3996_v50 }
 0x7da   : > { %v1977_v51 = vmul.f32 %v4157_v21, %v5346_v24  ;;  %v4159_v6 = vpop.eup %4158 }
 0x7db   : > { %3783 = vmatmul.mubr.bf16.vlgmr.msra.gmra.mrb[48].mxu0 %v1985_v2  ;;  %3787 = vmatmul.mubr.bf16.vlgmr.msra.gmra.mrb[16].mxu1 %v1987_v49  ;;  %v1978_v30 = vmul.f32 %v4159_v6, %v5334_v40  ;;  %v4161_v60 = vpop.eup %4160 }
 0x7dc   : > { %v1988_v43 = vpack.c.bf16 %v1977_v51, %v1976_v59  ;;  %v1980_v24 = vmul.f32 %v4161_v60, %v5348_v55  ;;  %3799 = vmatpush3.bf16.msra.mxu1 %v3996_v50 }
 0x7dd   : > { %v1989_v47 = vpack.c.bf16 %v1979_v20, %v1978_v30  ;;  %3800 = vmatprep.subr.bf16.mxu1 %v3997_v34 }
 0x7de   : > { %3790 = vmatprep.mubr.bf16.mxu1 %v1988_v43 }
 0x7e0   : > { %3801 = vmatpush3.bf16.msra.mxu1 %v3997_v34 }
 0x7e3   : > { %3791 = vmatmul.mubr.bf16.gmra.mrb[20].mxu1 %v1989_v47 }
 0x802   : > { %v1947_v41 = vpop.xlane.xlu0 %1946 }
 0x803   : > { %4162 = vrcp.f32 %v1947_v41 }
 0x804   : > { %4164 = vrcp.f32 %v1949_v54 }
 0x806   : > { %v1951_v27 = vpop.xlane.xlu0 %1950 }
 0x807   : > { %4166 = vrcp.f32 %v1951_v27 }
 0x80d   : > { %v4163_v57 = vpop.eup %4162 }
 0x80e   : > { %v1981_v63 = vmul.f32 %v4163_v57, %v5358_v33  ;;  %v4165_v18 = vpop.eup %4164 }
 0x80f   : > { %v1982_v40 = vmul.f32 %v4165_v18, %v5342_v3 }
 0x810   : > { %v1990_v38 = vpack.c.bf16 %v1981_v63, %v1980_v24 }
 0x811   : > { %v4167_v4 = vpop.eup %4166 }
 0x812   : > { %3794 = vmatprep.mubr.bf16.mxu1 %v1990_v38  ;;  %v1983_v23 = vmul.f32 %v4167_v4, %v5361_v1 }
 0x814   : > { %v1991_v46 = vpack.c.bf16 %v1983_v23, %v1982_v40 }
 0x816   : > { %3795 = vmatmul.mubr.bf16.gmra.mrb[24].mxu1 %v1991_v46 }
 0x8ae   : > { %v3784_v7 = vpop.f32.mrb[48].mxu0  ;;  %v3788_v55 = vpop.f32.mrb[16].mxu1 }
 0x8af   : > { %v2050_v54 = vpop.f32.mrb[49].mxu0  ;;  %v2066_v33 = vpop.f32.mrb[17].mxu1 }
 0x8b0   : > { %v3785_v17 = vpop.f32.mrb[50].mxu0  ;;  %v3789_v32 = vpop.f32.mrb[18].mxu1 }
 0x8b1   : > { %v3959_v35 = vpack.i.bf16 %v3785_v17, %v3784_v7  ;;  %v3969_v26 = vpack.i.bf16 %v3789_v32, %v3788_v55  ;;  %v2053_v62 = vpop.f32.mrb[51].mxu0  ;;  %v2069_v3 = vpop.f32.mrb[19].mxu1 }
 0x8b2   : > { %v3954_v39 = vpack.i.bf16 %v2053_v62, %v2050_v54  ;;  %v3964_v1 = vpack.i.bf16 %v2069_v3, %v2066_v33 }
 0x8b3   : > { %3960 = vrot.lane.b32.xlu1 %v3959_v35, %s4373_s25 }
 0x8b4   : > { %3955 = vrot.lane.b32.xlu0 %v3954_v39, %s4373_s25 }
 0x8b6   : > { %v3792_v25 = vpop.f32.mrb[20].mxu1 }
 0x8b7   : > { %v2082_v19 = vpop.f32.mrb[21].mxu1  ;;  %3965 = vrot.lane.b32.xlu1 %v3964_v1, %s4373_s25 }
 0x8b8   : > { %v3793_v42 = vpop.f32.mrb[22].mxu1 }
 0x8b9   : > { %v3979_v22 = vpack.i.bf16 %v3793_v42, %v3792_v25  ;;  %v2085_v48 = vpop.f32.mrb[23].mxu1 }
 0x8ba   : > { %v3974_v31 = vpack.i.bf16 %v2085_v48, %v2082_v19 }
 0x8bb   : > { %3970 = vrot.lane.b32.xlu1 %v3969_v26, %s4373_s25 }
 0x8bc   : > { %3975 = vrot.lane.b32.xlu0 %v3974_v31, %s4373_s25 }
 0x8bf   : > { %3980 = vrot.lane.b32.xlu1 %v3979_v22, %s4373_s25  ;;  %v4232_v22 = vld [vmem:[#allocation2 + $0x10] sm:$0xff] }
 0x8e9   : > { %v3796_v56 = vpop.f32.mrb[24].mxu1 }
 0x8ea   : > { %v2098_v5 = vpop.f32.mrb[25].mxu1 }
 0x8eb   : > { %v3797_v14 = vpop.f32.mrb[26].mxu1 }
 0x8ec   : > { %v3989_v28 = vpack.i.bf16 %v3797_v14, %v3796_v56  ;;  %v2101_v15 = vpop.f32.mrb[27].mxu1  ;;  %v4233_v56 = vld [vmem:[#allocation2] sm:$0xff] }
 0x8ed   : > { %v3984_v16 = vpack.i.bf16 %v2101_v15, %v2098_v5 }
 0x8ee   : > { %3990 = vrot.lane.b32.xlu1 %v3989_v28, %s4373_s25  ;;  %v4234_v28 = vld [vmem:[#allocation2 + $0x18] sm:$0xff] }
 0x8ef   : > { %3985 = vrot.lane.b32.xlu0 %v3984_v16, %s4373_s25  ;;  %v4235_v16 = vld [vmem:[#allocation2 + $0x8] sm:$0xff] }
 0x925   : > { %v3961_v2 = vpop.permute.xlu1 %3960 }
 0x926   : > { %v3963_v49 = vunpack.i.h.bf16 %v3961_v2  ;;  %v3962_v21 = vunpack.i.l.bf16 %v3961_v2  ;;  %v3956_v59 = vpop.permute.xlu0 %3955 }
 0x927   : > { %v3958_v51 = vunpack.i.h.bf16 %v3956_v59  ;;  %v3957_v6 = vunpack.i.l.bf16 %v3956_v59 }
 0x928   : > { %v2180_v43 = vsel %vm1211_vm2, %v5206_v44, %v3963_v49  ;;  %v2179_v20 = vsel %vm1211_vm2, %v5202_v29, %v3962_v21 }
 0x929   : > { %v2194_v30 = vpack.c.bf16 %v2180_v43, %v2179_v20  ;;  %v2178_v47 = vsel %vm1211_vm2, %v5208_v45, %v3958_v51  ;;  %v2177_v41 = vsel %vm1211_vm2, %v5204_v61, %v3957_v6  ;;  %v3966_v27 = vpop.permute.xlu1 %3965  ;;  %v4236_v43 = vld [vmem:[#allocation2 + $0x30] sm:$0xff] }
 0x92a   : > { %v2193_v60 = vpack.c.bf16 %v2178_v47, %v2177_v41  ;;  %v3968_v57 = vunpack.i.h.bf16 %v3966_v27  ;;  %v3967_v24 = vunpack.i.l.bf16 %v3966_v27  ;;  %v4237_v41 = vld [vmem:[#allocation2 + $0x20] sm:$0xff] }
 0x92c   : > { %v2182_v63 = vsel %vm1211_vm2, %v5216_v52, %v3968_v57  ;;  %v2181_v44 = vsel %vm1211_vm2, %v5212_v9, %v3967_v24  ;;  %3802 = vmatprep.mubr.msk.bf16.mxu1 %vm741_vm1, %v2193_v60  ;;  %v4238_v57 = vld [vmem:[#allocation2 + $0x38] sm:$0xff] }
 0x92d   : > { %v2195_v29 = vpack.c.bf16 %v2182_v63, %v2181_v44  ;;  %v3971_v18 = vpop.permute.xlu1 %3970  ;;  %3803 = vmatmul.mubr.msk.bf16.vlgmr.msra.gmra.mrb[28].mxu1 %vm741_vm1, %v2194_v30  ;;  %v4239_v44 = vld [vmem:[#allocation2 + $0x28] sm:$0xff] }
 0x92e   : > { %v3973_v45 = vunpack.i.h.bf16 %v3971_v18  ;;  %v3972_v38 = vunpack.i.l.bf16 %v3971_v18  ;;  %v3976_v4 = vpop.permute.xlu0 %3975 }
 0x92f   : > { %v3978_v61 = vunpack.i.h.bf16 %v3976_v4  ;;  %v3977_v40 = vunpack.i.l.bf16 %v3976_v4  ;;  %3806 = vmatprep.mubr.msk.bf16.mxu1 %vm741_vm1, %v2195_v29 }
 0x930   : > { %v2184_v23 = vsel %vm1211_vm2, %v5214_v53, %v3973_v45  ;;  %v2183_v52 = vsel %vm1211_vm2, %v5210_v8, %v3972_v38 }
 0x931   : > { %v2196_v9 = vpack.c.bf16 %v2184_v23, %v2183_v52  ;;  %v2186_v46 = vsel %vm1211_vm2, %v5224_v58, %v3978_v61  ;;  %v2185_v50 = vsel %vm1211_vm2, %v5220_v0, %v3977_v40  ;;  %v3981_v34 = vpop.permute.xlu1 %3980 }
 0x932   : > { %v2197_v7 = vpack.c.bf16 %v2186_v46, %v2185_v50  ;;  %v3983_v55 = vunpack.i.h.bf16 %v3981_v34  ;;  %v3982_v54 = vunpack.i.l.bf16 %v3981_v34  ;;  %v4240_v50 = vld [vmem:[#allocation2 + $0x50] sm:$0xff] }
 0x934   : > { %v2188_v33 = vsel %vm1211_vm2, %v5222_v11, %v3983_v55  ;;  %v2187_v53 = vsel %vm1211_vm2, %v5218_v10, %v3982_v54 }
 0x935   : > { %v2198_v17 = vpack.c.bf16 %v2188_v33, %v2187_v53  ;;  %3807 = vmatmul.mubr.msk.bf16.gmra.mrb[32].mxu1 %vm741_vm1, %v2196_v9  ;;  %v4241_v33 = vld [vmem:[#allocation2 + $0x40] sm:$0xff] }
 0x936   : > { %3810 = vmatprep.mubr.msk.bf16.mxu1 %vm741_vm1, %v2197_v7 }
 0x93d   : > { %3811 = vmatmul.mubr.msk.bf16.gmra.mrb[36].mxu1 %vm741_vm1, %v2198_v17 }
 0x960   : > { %v3991_v8 = vpop.permute.xlu1 %3990 }
 0x961   : > { %v3993_v0 = vunpack.i.h.bf16 %v3991_v8  ;;  %v3992_v58 = vunpack.i.l.bf16 %v3991_v8  ;;  %v3986_v32 = vpop.permute.xlu0 %3985  ;;  %v4242_v8 = vld [vmem:[#allocation2 + $0x58] sm:$0xff] }
 0x962   : > { %v3988_v35 = vunpack.i.h.bf16 %v3986_v32  ;;  %v3987_v26 = vunpack.i.l.bf16 %v3986_v32 }
 0x963   : > { %v2192_v11 = vsel %vm1211_vm2, %v5230_v13, %v3993_v0  ;;  %v2191_v10 = vsel %vm1211_vm2, %v5226_v12, %v3992_v58  ;;  %v5427_v13 = vld [vmem:[%s5968_s16] ss:$0 sm:$0xff]  ;;  %v4243_v58 = vld [vmem:[#allocation2 + $0x48] sm:$0xff] }
 0x964   : > { %v2200_v62 = vpack.c.bf16 %v2192_v11, %v2191_v10  ;;  %v2190_v3 = vsel %vm1211_vm2, %v5233_v37, %v3988_v35  ;;  %v2189_v39 = vsel %vm1211_vm2, %v5228_v36, %v3987_v26 }
 0x965   : > { %v2199_v1 = vpack.c.bf16 %v2190_v3, %v2189_v39 }
 0x967   : > { %3814 = vmatprep.mubr.msk.bf16.mxu1 %vm741_vm1, %v2199_v1 }
 0x968   : > { %3815 = vmatmul.mubr.msk.bf16.gmra.mrb[40].mxu1 %vm741_vm1, %v2200_v62 }
 0xa00   : > { %v3804_v25 = vpop.f32.mrb[28].mxu1 }
 0xa01   : > { %v2291_v12 = vadd.f32 %v3804_v25, %v5427_v13  ;;  %v2282_v19 = vpop.f32.mrb[29].mxu1 }
 0xa02   : > { %v2283_v37 = vadd.f32 %v5427_v13, %v2282_v19  ;;  %v3805_v42 = vpop.f32.mrb[30].mxu1 }
 0xa03   : > { %v2347_v36 = vadd.f32 %v4232_v22, %v2291_v12  ;;  %v2294_v48 = vadd.f32 %v3805_v42, %v5427_v13  ;;  %v2285_v31 = vpop.f32.mrb[31].mxu1 }
 0xa04   : > { %v2345_v5 = vadd.f32 %v4233_v56, %v2283_v37  ;;  %v2286_v14 = vadd.f32 %v5427_v13, %v2285_v31 }
 0xa05   : > { %2363 = vst.msk [vmem:[#allocation2 + $0x10] sm:$0xff] %vm741_vm1, %v2347_v36  ;;  %v2348_v15 = vadd.f32 %v4234_v28, %v2294_v48 }
 0xa06   : > { %2361 = vst.msk [vmem:[#allocation2] sm:$0xff] %vm741_vm1, %v2345_v5  ;;  %v2346_v2 = vadd.f32 %v4235_v16, %v2286_v14  ;;  %v4244_v16 = vld [vmem:[#allocation2 + $0x70] sm:$0xff] }
 0xa07   : > { %2364 = vst.msk [vmem:[#allocation2 + $0x18] sm:$0xff] %vm741_vm1, %v2348_v15 }
 0xa08   : > { %2362 = vst.msk [vmem:[#allocation2 + $0x8] sm:$0xff] %vm741_vm1, %v2346_v2  ;;  %v3808_v49 = vpop.f32.mrb[32].mxu1 }
 0xa09   : > { %v2307_v21 = vadd.f32 %v3808_v49, %v5427_v13  ;;  %v2298_v59 = vpop.f32.mrb[33].mxu1 }
 0xa0a   : > { %v2299_v51 = vadd.f32 %v5427_v13, %v2298_v59  ;;  %v3809_v6 = vpop.f32.mrb[34].mxu1  ;;  %v4245_v59 = vld [vmem:[#allocation2 + $0x60] sm:$0xff] }
 0xa0b   : > { %v2351_v20 = vadd.f32 %v4236_v43, %v2307_v21  ;;  %v2310_v30 = vadd.f32 %v3809_v6, %v5427_v13  ;;  %v2301_v47 = vpop.f32.mrb[35].mxu1  ;;  %v4246_v43 = vld [vmem:[#allocation2 + $0x78] sm:$0xff] }
 0xa0c   : > { %v2349_v27 = vadd.f32 %v4237_v41, %v2299_v51  ;;  %v2302_v60 = vadd.f32 %v5427_v13, %v2301_v47  ;;  %v5450_v38 = vld [vmem:[#allocation2 + $0x10] sm:$0xff] }
 0xa0d   : > { %2367 = vst.msk [vmem:[#allocation2 + $0x30] sm:$0xff] %vm741_vm1, %v2351_v20  ;;  %v2352_v24 = vadd.f32 %v4238_v57, %v2310_v30  ;;  %v5442_v63 = vld [vmem:[#allocation2] sm:$0xff]  ;;  %v2401_v46 = vsel %vm741_vm1, %v5450_v38, 0.0  ;;  %v4247_v30 = vld [vmem:[#allocation2 + $0x68] sm:$0xff] }
 0xa0e   : > { %2365 = vst.msk [vmem:[#allocation2 + $0x20] sm:$0xff] %vm741_vm1, %v2349_v27  ;;  %v2350_v29 = vadd.f32 %v4239_v44, %v2302_v60  ;;  %v2395_v18 = vsel %vm741_vm1, %v5442_v63, 0.0  ;;  %v5460_v54 = vld [vmem:[#allocation2 + $0x18] sm:$0xff] }
 0xa0f   : > { %2368 = vst.msk [vmem:[#allocation2 + $0x38] sm:$0xff] %vm741_vm1, %v2352_v24  ;;  %2396 = vadd.xlane.f32.xlu0 %v2395_v18  ;;  %v5448_v45 = vld [vmem:[#allocation2 + $0x8] sm:$0xff]  ;;  %v2404_v35 = vsel %vm741_vm1, %v5460_v54, 0.0 }
 0xa10   : > { %2366 = vst.msk [vmem:[#allocation2 + $0x28] sm:$0xff] %vm741_vm1, %v2350_v29  ;;  %v3812_v4 = vpop.f32.mrb[36].mxu1  ;;  %v2398_v61 = vsel %vm741_vm1, %v5448_v45, 0.0 }
 0xa11   : > { %v2323_v40 = vadd.f32 %v3812_v4, %v5427_v13  ;;  %v2314_v23 = vpop.f32.mrb[37].mxu1  ;;  %2399 = vadd.xlane.f32.xlu1 %v2398_v61 }
 0xa12   : > { %v2315_v52 = vadd.f32 %v5427_v13, %v2314_v23  ;;  %v3813_v9 = vpop.f32.mrb[38].mxu1 }
 0xa13   : > { %v2355_v34 = vadd.f32 %v4240_v50, %v2323_v40  ;;  %v2326_v7 = vadd.f32 %v3813_v9, %v5427_v13  ;;  %v2317_v55 = vpop.f32.mrb[39].mxu1  ;;  %2402 = vadd.xlane.f32.xlu0 %v2401_v46 }
 0xa14   : > { %v2353_v53 = vadd.f32 %v4241_v33, %v2315_v52  ;;  %v2318_v17 = vadd.f32 %v5427_v13, %v2317_v55  ;;  %v5479_v39 = vld [vmem:[#allocation2 + $0x30] sm:$0xff] }
 0xa15   : > { %2371 = vst.msk [vmem:[#allocation2 + $0x50] sm:$0xff] %vm741_vm1, %v2355_v34  ;;  %v2356_v0 = vadd.f32 %v4242_v8, %v2326_v7  ;;  %v5470_v11 = vld [vmem:[#allocation2 + $0x20] sm:$0xff]  ;;  %v2413_v25 = vsel %vm741_vm1, %v5479_v39, 0.0 }
 0xa16   : > { %2369 = vst.msk [vmem:[#allocation2 + $0x40] sm:$0xff] %vm741_vm1, %v2353_v53  ;;  %v2354_v32 = vadd.f32 %v4243_v58, %v2318_v17  ;;  %v5475_v62 = vld [vmem:[#allocation2 + $0x38] sm:$0xff]  ;;  %v2407_v3 = vsel %vm741_vm1, %v5470_v11, 0.0 }
 0xa17   : > { %2372 = vst.msk [vmem:[#allocation2 + $0x58] sm:$0xff] %vm741_vm1, %v2356_v0  ;;  %2405 = vadd.xlane.f32.xlu0 %v2404_v35  ;;  %v5468_v26 = vld [vmem:[#allocation2 + $0x28] sm:$0xff]  ;;  %v2416_v1 = vsel %vm741_vm1, %v5475_v62, 0.0 }
 0xa18   : > { %2370 = vst.msk [vmem:[#allocation2 + $0x48] sm:$0xff] %vm741_vm1, %v2354_v32  ;;  %v2410_v10 = vsel %vm741_vm1, %v5468_v26, 0.0 }
 0xa19   : > { %2411 = vadd.xlane.f32.xlu1 %v2410_v10 }
 0xa1b   : > { %2408 = vadd.xlane.f32.xlu0 %v2407_v3 }
 0xa1c   : > { %v5495_v36 = vld [vmem:[#allocation2 + $0x50] sm:$0xff] }
 0xa1d   : > { %2417 = vadd.xlane.f32.xlu1 %v2416_v1  ;;  %v5487_v19 = vld [vmem:[#allocation2 + $0x40] sm:$0xff]  ;;  %v2425_v31 = vsel %vm741_vm1, %v5495_v36, 0.0 }
 0xa1e   : > { %v5491_v42 = vld [vmem:[#allocation2 + $0x58] sm:$0xff]  ;;  %v2419_v22 = vsel %vm741_vm1, %v5487_v19, 0.0 }
 0xa1f   : > { %2414 = vadd.xlane.f32.xlu0 %v2413_v25  ;;  %v5485_v12 = vld [vmem:[#allocation2 + $0x48] sm:$0xff]  ;;  %v2428_v48 = vsel %vm741_vm1, %v5491_v42, 0.0 }
 0xa20   : > { %v2422_v37 = vsel %vm741_vm1, %v5485_v12, 0.0 }
 0xa21   : > { %2423 = vadd.xlane.f32.xlu1 %v2422_v37 }
 0xa23   : > { %2420 = vadd.xlane.f32.xlu0 %v2419_v22 }
 0xa25   : > { %2429 = vadd.xlane.f32.xlu1 %v2428_v48 }
 0xa27   : > { %2426 = vadd.xlane.f32.xlu0 %v2425_v31 }
 0xa3b   : > { %v3816_v56 = vpop.f32.mrb[40].mxu1 }
 0xa3c   : > { %v2339_v5 = vadd.f32 %v3816_v56, %v5427_v13  ;;  %v2330_v14 = vpop.f32.mrb[41].mxu1 }
 0xa3d   : > { %v2331_v28 = vadd.f32 %v5427_v13, %v2330_v14  ;;  %v3817_v15 = vpop.f32.mrb[42].mxu1 }
 0xa3e   : > { %v2359_v2 = vadd.f32 %v4244_v16, %v2339_v5  ;;  %v2342_v49 = vadd.f32 %v3817_v15, %v5427_v13  ;;  %v2333_v21 = vpop.f32.mrb[43].mxu1 }
 0xa3f   : > { %v2357_v51 = vadd.f32 %v4245_v59, %v2331_v28  ;;  %v2334_v6 = vadd.f32 %v5427_v13, %v2333_v21 }
 0xa40   : > { %2375 = vst.msk [vmem:[#allocation2 + $0x70] sm:$0xff] %vm741_vm1, %v2359_v2  ;;  %v2360_v20 = vadd.f32 %v4246_v43, %v2342_v49 }
 0xa41   : > { %2373 = vst.msk [vmem:[#allocation2 + $0x60] sm:$0xff] %vm741_vm1, %v2357_v51  ;;  %v2358_v47 = vadd.f32 %v4247_v30, %v2334_v6 }
 0xa42   : > { %2376 = vst.msk [vmem:[#allocation2 + $0x78] sm:$0xff] %vm741_vm1, %v2360_v20 }
 0xa43   : > { %2374 = vst.msk [vmem:[#allocation2 + $0x68] sm:$0xff] %vm741_vm1, %v2358_v47 }
 0xa47   : > { %v5515_v13 = vld [vmem:[#allocation2 + $0x70] sm:$0xff] }
 0xa48   : > { %v5509_v41 = vld [vmem:[#allocation2 + $0x60] sm:$0xff]  ;;  %v2437_v44 = vsel %vm741_vm1, %v5515_v13, 0.0 }
 0xa49   : > { %v2431_v27 = vsel %vm741_vm1, %v5509_v41, 0.0  ;;  %v5519_v24 = vld [vmem:[#allocation2 + $0x78] sm:$0xff] }
 0xa4a   : > { %2432 = vadd.xlane.f32.xlu0 %v2431_v27  ;;  %v5513_v60 = vld [vmem:[#allocation2 + $0x68] sm:$0xff]  ;;  %v2440_v29 = vsel %vm741_vm1, %v5519_v24, 0.0 }
 0xa4b   : > { %v2434_v57 = vsel %vm741_vm1, %v5513_v60, 0.0 }
 0xa4c   : > { %2435 = vadd.xlane.f32.xlu1 %v2434_v57 }
 0xa4e   : > { %2438 = vadd.xlane.f32.xlu0 %v2437_v44 }
 0xa50   : > { %2441 = vadd.xlane.f32.xlu1 %v2440_v29 }
 0xa9c   : > { %v2397_v18 = vpop.xlane.xlu0 %2396 }
 0xa9d   : > { %v2443_v4 = vmul.f32 0.03125, %v2397_v18 }
 0xa9e   : > { %v2400_v61 = vpop.xlane.xlu1 %2399 }
 0xa9f   : > { %v5526_v40 = vsub.f32 %v5442_v63, %v2443_v4  ;;  %v2444_v23 = vmul.f32 0.03125, %v2400_v61  ;;  %v3999_v4 = vld [vmem:[%s4575_s26 + $0x8] sm:$0xff]  }
 0xaa0   : > { %v2403_v52 = vpop.xlane.xlu0 %2402 }
 0xaa1   : > { %v5529_v9 = vsub.f32 %v5448_v45, %v2444_v23  ;;  %v2445_v46 = vmul.f32 0.03125, %v2403_v52  ;;  %v2475_v50 = vmul.f32 %v5526_v40, %v5526_v40 }
 0xaa3   : > { %v5534_v34 = vsub.f32 %v5450_v38, %v2445_v46  ;;  %v2491_v7 = vsel %vm741_vm1, %v2475_v50, 0.0  ;;  %v2476_v55 = vmul.f32 %v5529_v9, %v5529_v9 }
 0xaa4   : > { %2492 = vadd.xlane.f32.xlu0 %v2491_v7  ;;  %v2406_v63 = vpop.xlane.xlu0 %2405 }
 0xaa5   : > { %v2446_v33 = vmul.f32 0.03125, %v2406_v63  ;;  %v2494_v53 = vsel %vm741_vm1, %v2476_v55, 0.0  ;;  %v2477_v45 = vmul.f32 %v5534_v34, %v5534_v34 }
 0xaa6   : > { %2495 = vadd.xlane.f32.xlu1 %v2494_v53  ;;  %v2412_v17 = vpop.xlane.xlu1 %2411 }
 0xaa7   : > { %v5543_v8 = vsub.f32 %v5460_v54, %v2446_v33  ;;  %v2448_v38 = vmul.f32 0.03125, %v2412_v17  ;;  %v2497_v0 = vsel %vm741_vm1, %v2477_v45, 0.0 }
 0xaa8   : > { %2498 = vadd.xlane.f32.xlu0 %v2497_v0  ;;  %v2409_v58 = vpop.xlane.xlu0 %2408 }
 0xaa9   : > { %v5547_v32 = vsub.f32 %v5468_v26, %v2448_v38  ;;  %v2447_v35 = vmul.f32 0.03125, %v2409_v58  ;;  %v2478_v10 = vmul.f32 %v5543_v8, %v5543_v8 }
 0xaaa   : > { %v2418_v3 = vpop.xlane.xlu1 %2417 }
 0xaab   : > { %v5552_v1 = vsub.f32 %v5470_v11, %v2447_v35  ;;  %v2450_v25 = vmul.f32 0.03125, %v2418_v3  ;;  %v2500_v54 = vsel %vm741_vm1, %v2478_v10, 0.0  ;;  %v2480_v37 = vmul.f32 %v5547_v32, %v5547_v32 }
 0xaac   : > { %2501 = vadd.xlane.f32.xlu1 %v2500_v54  ;;  %v2415_v22 = vpop.xlane.xlu0 %2414 }
 0xaad   : > { %v5558_v48 = vsub.f32 %v5475_v62, %v2450_v25  ;;  %v2449_v26 = vmul.f32 0.03125, %v2415_v22  ;;  %v2479_v31 = vmul.f32 %v5552_v1, %v5552_v1  ;;  %v2506_v5 = vsel %vm741_vm1, %v2480_v37, 0.0 }
 0xaae   : > { %v2424_v56 = vpop.xlane.xlu1 %2423 }
 0xaaf   : > { %v5564_v11 = vsub.f32 %v5479_v39, %v2449_v26  ;;  %v2452_v14 = vmul.f32 0.03125, %v2424_v56  ;;  %v2503_v28 = vsel %vm741_vm1, %v2479_v31, 0.0  ;;  %v2482_v15 = vmul.f32 %v5558_v48, %v5558_v48 }
 0xab0   : > { %2507 = vadd.xlane.f32.xlu1 %v2506_v5  ;;  %2504 = vadd.xlane.f32.xlu0 %v2503_v28  ;;  %v2421_v62 = vpop.xlane.xlu0 %2420 }
 0xab1   : > { %v5570_v16 = vsub.f32 %v5485_v12, %v2452_v14  ;;  %v2451_v2 = vmul.f32 0.03125, %v2421_v62  ;;  %v2481_v49 = vmul.f32 %v5564_v11, %v5564_v11  ;;  %v2512_v39 = vsel %vm741_vm1, %v2482_v15, 0.0 }
 0xab2   : > { %v2430_v21 = vpop.xlane.xlu1 %2429 }
 0xab3   : > { %v5576_v59 = vsub.f32 %v5487_v19, %v2451_v2  ;;  %v2454_v51 = vmul.f32 0.03125, %v2430_v21  ;;  %v2509_v6 = vsel %vm741_vm1, %v2481_v49, 0.0  ;;  %v2484_v43 = vmul.f32 %v5570_v16, %v5570_v16 }
 0xab4   : > { %2513 = vadd.xlane.f32.xlu1 %v2512_v39  ;;  %2510 = vadd.xlane.f32.xlu0 %v2509_v6  ;;  %v2427_v12 = vpop.xlane.xlu0 %2426  ;;  %v5628_v39 = vld [vmem:[%s673_s15] ss:$0 sm:$0xff] }
 0xab5   : > { %v5582_v20 = vsub.f32 %v5491_v42, %v2454_v51  ;;  %v2453_v30 = vmul.f32 0.03125, %v2427_v12  ;;  %v2483_v47 = vmul.f32 %v5576_v59, %v5576_v59  ;;  %v2518_v27 = vsel %vm741_vm1, %v2484_v43, 0.0 }
 0xab7   : > { %v5587_v19 = vsub.f32 %v5495_v36, %v2453_v30  ;;  %v2515_v57 = vsel %vm741_vm1, %v2483_v47, 0.0  ;;  %v2486_v44 = vmul.f32 %v5582_v20, %v5582_v20  ;;  %v3998_v36 = vld [vmem:[%s4575_s26] sm:$0xff]  }
 0xab8   : > { %2519 = vadd.xlane.f32.xlu1 %v2518_v27  ;;  %2516 = vadd.xlane.f32.xlu0 %v2515_v57 }
 0xab9   : > { %v2485_v42 = vmul.f32 %v5587_v19, %v5587_v19  ;;  %v2524_v29 = vsel %vm741_vm1, %v2486_v44, 0.0  ;;  %3818 = vmatprep.subr.bf16.mxu0 %v3998_v36 }
 0xaba   : > { %3819 = vmatpush3.bf16.msra.mxu0 %v3998_v36 }
 0xabb   : > { %v2521_v18 = vsel %vm741_vm1, %v2485_v42, 0.0  ;;  %3820 = vmatprep.subr.bf16.mxu0 %v3999_v4 }
 0xabc   : > { %2525 = vadd.xlane.f32.xlu1 %v2524_v29  ;;  %2522 = vadd.xlane.f32.xlu0 %v2521_v18 }
 0xabe   : > { %3821 = vmatpush3.bf16.msra.mxu0 %v3999_v4  ;;  %v5638_v4 = vld [vmem:[%s676_s14] ss:$0 sm:$0xff]  ;;  %s5969_s14 = sld [smem:[#allocation13_spill]] }
 0xac4   : > { %s5970_s27 = scalar_lea.vmem [#allocation5], %s5969_s14 }
 0xad7   : > { %v2433_v61 = vpop.xlane.xlu0 %2432 }
 0xad8   : > { %v2455_v23 = vmul.f32 0.03125, %v2433_v61 }
 0xad9   : > { %v2436_v52 = vpop.xlane.xlu1 %2435 }
 0xada   : > { %v5600_v46 = vsub.f32 %v5509_v41, %v2455_v23  ;;  %v2456_v50 = vmul.f32 0.03125, %v2436_v52 }
 0xadb   : > { %v2439_v7 = vpop.xlane.xlu0 %2438 }
 0xadc   : > { %v5603_v55 = vsub.f32 %v5513_v60, %v2456_v50  ;;  %v2457_v63 = vmul.f32 0.03125, %v2439_v7  ;;  %v2487_v33 = vmul.f32 %v5600_v46, %v5600_v46 }
 0xadd   : > { %v2442_v53 = vpop.xlane.xlu1 %2441 }
 0xade   : > { %v5608_v45 = vsub.f32 %v5515_v13, %v2457_v63  ;;  %v2458_v17 = vmul.f32 0.03125, %v2442_v53  ;;  %v2527_v38 = vsel %vm741_vm1, %v2487_v33, 0.0  ;;  %v2488_v41 = vmul.f32 %v5603_v55, %v5603_v55 }
 0xadf   : > { %2528 = vadd.xlane.f32.xlu0 %v2527_v38 }
 0xae0   : > { %v5614_v0 = vsub.f32 %v5519_v24, %v2458_v17  ;;  %v2530_v60 = vsel %vm741_vm1, %v2488_v41, 0.0  ;;  %v2489_v58 = vmul.f32 %v5608_v45, %v5608_v45 }
 0xae1   : > { %2531 = vadd.xlane.f32.xlu1 %v2530_v60 }
 0xae2   : > { %v2533_v35 = vsel %vm741_vm1, %v2489_v58, 0.0  ;;  %v2490_v13 = vmul.f32 %v5614_v0, %v5614_v0 }
 0xae3   : > { %2534 = vadd.xlane.f32.xlu0 %v2533_v35 }
 0xae4   : > { %v2536_v10 = vsel %vm741_vm1, %v2490_v13, 0.0 }
 0xae5   : > { %2537 = vadd.xlane.f32.xlu1 %v2536_v10 }
 0xb31   : > { %v2493_v3 = vpop.xlane.xlu0 %2492 }
 0xb32   : > { %v2539_v25 = vmul.f32 0.03125, %v2493_v3 }
 0xb33   : > { %v2496_v54 = vpop.xlane.xlu1 %2495 }
 0xb34   : > { %v2555_v24 = vadd.f32 1e-05, %v2539_v25  ;;  %v2540_v37 = vmul.f32 0.03125, %v2496_v54 }
 0xb35   : > { %v2499_v22 = vpop.xlane.xlu0 %2498 }
 0xb36   : > { %4168 = vrsqrt.f32 %v2555_v24  ;;  %v2556_v26 = vadd.f32 1e-05, %v2540_v37  ;;  %v2541_v31 = vmul.f32 0.03125, %v2499_v22 }
 0xb38   : > { %4170 = vrsqrt.f32 %v2556_v26  ;;  %v2557_v56 = vadd.f32 1e-05, %v2541_v31 }
 0xb39   : > { %v2502_v5 = vpop.xlane.xlu1 %2501 }
 0xb3a   : > { %4172 = vrsqrt.f32 %v2557_v56  ;;  %v2542_v14 = vmul.f32 0.03125, %v2502_v5 }
 0xb3c   : > { %v2558_v28 = vadd.f32 1e-05, %v2542_v14 }
 0xb3d   : > { %v2508_v15 = vpop.xlane.xlu1 %2507  ;;  %v2505_v62 = vpop.xlane.xlu0 %2504 }
 0xb3e   : > { %4174 = vrsqrt.f32 %v2558_v28  ;;  %v2544_v2 = vmul.f32 0.03125, %v2508_v15  ;;  %v2543_v49 = vmul.f32 0.03125, %v2505_v62 }
 0xb40   : > { %v4169_v21 = vpop.eup %4168  ;;  %v2560_v51 = vadd.f32 1e-05, %v2544_v2  ;;  %v2559_v6 = vadd.f32 1e-05, %v2543_v49 }
 0xb41   : > { %v2587_v43 = vmul.f32 %v4169_v21, %v5526_v40  ;;  %v2514_v12 = vpop.xlane.xlu1 %2513  ;;  %v2511_v30 = vpop.xlane.xlu0 %2510 }
 0xb42   : > { %v4171_v47 = vpop.eup %4170  ;;  %4176 = vrsqrt.f32 %v2560_v51  ;;  %v2546_v27 = vmul.f32 0.03125, %v2514_v12  ;;  %v2545_v57 = vmul.f32 0.03125, %v2511_v30 }
 0xb43   : > { %v2588_v44 = vmul.f32 %v4171_v47, %v5529_v9  ;;  %4178 = vrsqrt.f32 %v2559_v6  ;;  %v2609_v42 = vmul.f32 %v5628_v39, %v2587_v43 }
 0xb44   : > { %v4173_v29 = vpop.eup %4172  ;;  %v2562_v18 = vadd.f32 1e-05, %v2546_v27  ;;  %v2561_v36 = vadd.f32 1e-05, %v2545_v57 }
 0xb45   : > { %v2589_v40 = vmul.f32 %v4173_v29, %v5534_v34  ;;  %v2520_v61 = vpop.xlane.xlu1 %2519  ;;  %v2517_v23 = vpop.xlane.xlu0 %2516  ;;  %v2610_v52 = vmul.f32 %v5628_v39, %v2588_v44  ;;  %v2631_v7 = vadd.f32 %v5638_v4, %v2609_v42 }
 0xb46   : > { %4180 = vrsqrt.f32 %v2562_v18  ;;  %v2548_v9 = vmul.f32 0.03125, %v2520_v61  ;;  %v2547_v50 = vmul.f32 0.03125, %v2517_v23 }
 0xb47   : > { %4182 = vrsqrt.f32 %v2561_v36  ;;  %v2632_v63 = vadd.f32 %v5638_v4, %v2610_v52  ;;  %v2611_v38 = vmul.f32 %v5628_v39, %v2589_v40 }
 0xb48   : > { %v4175_v33 = vpop.eup %4174  ;;  %v2564_v53 = vadd.f32 1e-05, %v2548_v9  ;;  %v2563_v17 = vadd.f32 1e-05, %v2547_v50 }
 0xb49   : > { %v2590_v41 = vmul.f32 %v4175_v33, %v5543_v8  ;;  %v2526_v34 = vpop.xlane.xlu1 %2525  ;;  %v2523_v60 = vpop.xlane.xlu0 %2522  ;;  %v2647_v58 = vpack.c.bf16 %v2632_v63, %v2631_v7  ;;  %v2633_v22 = vadd.f32 %v5638_v4, %v2611_v38 }
 0xb4a   : > { %4184 = vrsqrt.f32 %v2564_v53  ;;  %v2550_v35 = vmul.f32 0.03125, %v2526_v34  ;;  %v2549_v13 = vmul.f32 0.03125, %v2523_v60 }
 0xb4b   : > { %v2612_v10 = vmul.f32 %v5628_v39, %v2590_v41  ;;  %4186 = vrsqrt.f32 %v2563_v17  ;;  %3822 = vmatprep.mubr.msk.bf16.mxu0 %vm741_vm1, %v2647_v58 }
 0xb4c   : > { %v4177_v3 = vpop.eup %4176  ;;  %v2566_v25 = vadd.f32 1e-05, %v2550_v35  ;;  %v2565_v54 = vadd.f32 1e-05, %v2549_v13 }
 0xb4d   : > { %v4179_v24 = vpop.eup %4178  ;;  %v2592_v37 = vmul.f32 %v4177_v3, %v5547_v32  ;;  %v2634_v8 = vadd.f32 %v5638_v4, %v2612_v10 }
 0xb4e   : > { %v2591_v26 = vmul.f32 %v4179_v24, %v5552_v1  ;;  %4188 = vrsqrt.f32 %v2566_v25 }
 0xb4f   : > { %4190 = vrsqrt.f32 %v2565_v54  ;;  %v2648_v31 = vpack.c.bf16 %v2634_v8, %v2633_v22  ;;  %v2614_v56 = vmul.f32 %v5628_v39, %v2592_v37 }
 0xb50   : > { %v4181_v5 = vpop.eup %4180  ;;  %v2613_v14 = vmul.f32 %v5628_v39, %v2591_v26 }
 0xb51   : > { %v4183_v28 = vpop.eup %4182  ;;  %v2594_v15 = vmul.f32 %v4181_v5, %v5558_v48  ;;  %3823 = vmatmul.mubr.msk.bf16.vlgmr.msra.gmra.mrb[52].mxu0 %vm741_vm1, %v2648_v31  ;;  %v2636_v32 = vadd.f32 %v5638_v4, %v2614_v56  ;;  %v4001_v5 = vld [vmem:[%s4636_s30 + $0x8] sm:$0xff]  }
 0xb52   : > { %v2593_v62 = vmul.f32 %v4183_v28, %v5564_v11  ;;  %v2635_v2 = vadd.f32 %v5638_v4, %v2613_v14  ;;  %v4003_v14 = vld [vmem:[%s4636_s30 + $0x18] sm:$0xff]   ;;  %v4005_v28 = vld [vmem:[%s4636_s30 + $0x28] sm:$0xff]  }
 0xb53   : > { %v2616_v1 = vmul.f32 %v5628_v39, %v2594_v15  ;;  %v4006_v15 = vld [vmem:[%s4636_s30 + $0x30] sm:$0xff]  }
 0xb54   : > { %v4185_v49 = vpop.eup %4184  ;;  %v2649_v21 = vpack.c.bf16 %v2636_v32, %v2635_v2  ;;  %v2615_v51 = vmul.f32 %v5628_v39, %v2593_v62  ;;  %v4007_v32 = vld [vmem:[%s4636_s30 + $0x38] sm:$0xff]   ;;  %v5703_v62 = vld [vmem:[%s5970_s27] ss:$0 sm:$0xff] }
 0xb55   : > { %v4187_v6 = vpop.eup %4186  ;;  %v2596_v43 = vmul.f32 %v4185_v49, %v5570_v16  ;;  %v2638_v12 = vadd.f32 %v5638_v4, %v2616_v1 }
 0xb56   : > { %v2595_v48 = vmul.f32 %v4187_v6, %v5576_v59  ;;  %3826 = vmatprep.mubr.msk.bf16.mxu0 %vm741_vm1, %v2649_v21  ;;  %v2637_v30 = vadd.f32 %v5638_v4, %v2615_v51 }
 0xb57   : > { %v2618_v11 = vmul.f32 %v5628_v39, %v2596_v43 }
 0xb58   : > { %v4189_v47 = vpop.eup %4188  ;;  %v2650_v27 = vpack.c.bf16 %v2638_v12, %v2637_v30  ;;  %v2617_v57 = vmul.f32 %v5628_v39, %v2595_v48 }
 0xb59   : > { %v4191_v44 = vpop.eup %4190  ;;  %v2598_v42 = vmul.f32 %v4189_v47, %v5582_v20  ;;  %v2640_v29 = vadd.f32 %v5638_v4, %v2618_v11 }
 0xb5a   : > { %v2597_v16 = vmul.f32 %v4191_v44, %v5587_v19  ;;  %3827 = vmatmul.mubr.msk.bf16.gmra.mrb[56].mxu0 %vm741_vm1, %v2650_v27  ;;  %v2639_v59 = vadd.f32 %v5638_v4, %v2617_v57 }
 0xb5b   : > { %v2620_v18 = vmul.f32 %v5628_v39, %v2598_v42 }
 0xb5c   : > { %v2651_v36 = vpack.c.bf16 %v2640_v29, %v2639_v59  ;;  %v2619_v40 = vmul.f32 %v5628_v39, %v2597_v16 }
 0xb5d   : > { %v2642_v61 = vadd.f32 %v5638_v4, %v2620_v18 }
 0xb5e   : > { %3830 = vmatprep.mubr.msk.bf16.mxu0 %vm741_vm1, %v2651_v36  ;;  %v2641_v23 = vadd.f32 %v5638_v4, %v2619_v40 }
 0xb60   : > { %v2652_v20 = vpack.c.bf16 %v2642_v61, %v2641_v23 }
 0xb62   : > { %3831 = vmatmul.mubr.msk.bf16.gmra.mrb[60].mxu0 %vm741_vm1, %v2652_v20 }
 0xb6c   : > { %v2529_v52 = vpop.xlane.xlu0 %2528 }
 0xb6d   : > { %v2551_v19 = vmul.f32 0.03125, %v2529_v52 }
 0xb6e   : > { %v2532_v9 = vpop.xlane.xlu1 %2531 }
 0xb6f   : > { %v2567_v50 = vadd.f32 1e-05, %v2551_v19  ;;  %v2552_v7 = vmul.f32 0.03125, %v2532_v9 }
 0xb70   : > { %v2535_v63 = vpop.xlane.xlu0 %2534 }
 0xb71   : > { %4192 = vrsqrt.f32 %v2567_v50  ;;  %v2568_v33 = vadd.f32 1e-05, %v2552_v7  ;;  %v2553_v53 = vmul.f32 0.03125, %v2535_v63 }
 0xb72   : > { %v2538_v17 = vpop.xlane.xlu1 %2537 }
 0xb73   : > { %4194 = vrsqrt.f32 %v2568_v33  ;;  %v2569_v38 = vadd.f32 1e-05, %v2553_v53  ;;  %v2554_v41 = vmul.f32 0.03125, %v2538_v17 }
 0xb75   : > { %4196 = vrsqrt.f32 %v2569_v38  ;;  %v2570_v34 = vadd.f32 1e-05, %v2554_v41 }
 0xb77   : > { %4198 = vrsqrt.f32 %v2570_v34 }
 0xb7b   : > { %v4193_v60 = vpop.eup %4192 }
 0xb7c   : > { %v2599_v58 = vmul.f32 %v4193_v60, %v5600_v46 }
 0xb7d   : > { %v4195_v35 = vpop.eup %4194 }
 0xb7e   : > { %v2600_v13 = vmul.f32 %v4195_v35, %v5603_v55  ;;  %v2621_v10 = vmul.f32 %v5628_v39, %v2599_v58 }
 0xb7f   : > { %v4197_v3 = vpop.eup %4196 }
 0xb80   : > { %v2601_v25 = vmul.f32 %v4197_v3, %v5608_v45  ;;  %v2622_v54 = vmul.f32 %v5628_v39, %v2600_v13  ;;  %v2643_v22 = vadd.f32 %v5638_v4, %v2621_v10 }
 0xb81   : > { %v4199_v24 = vpop.eup %4198 }
 0xb82   : > { %v2602_v37 = vmul.f32 %v4199_v24, %v5614_v0  ;;  %v2644_v46 = vadd.f32 %v5638_v4, %v2622_v54  ;;  %v2623_v8 = vmul.f32 %v5628_v39, %v2601_v25  ;;  %v4000_v0 = vld [vmem:[%s4636_s30] sm:$0xff]  }
 0xb83   : > { %3838 = vmatprep.subr.bf16.mxu1 %v4000_v0 }
 0xb84   : > { %v2653_v55 = vpack.c.bf16 %v2644_v46, %v2643_v22  ;;  %v2624_v26 = vmul.f32 %v5628_v39, %v2602_v37  ;;  %v2645_v31 = vadd.f32 %v5638_v4, %v2623_v8  ;;  %3839 = vmatpush3.bf16.msra.mxu1 %v4000_v0  ;;  %v4002_v39 = vld [vmem:[%s4636_s30 + $0x10] sm:$0xff]  }
 0xb85   : > { %3840 = vmatprep.subr.bf16.mxu1 %v4001_v5 }
 0xb86   : > { %3834 = vmatprep.mubr.msk.bf16.mxu0 %vm741_vm1, %v2653_v55  ;;  %v2646_v45 = vadd.f32 %v5638_v4, %v2624_v26  ;;  %v4004_v4 = vld [vmem:[%s4636_s30 + $0x20] sm:$0xff]  }
 0xb88   : > { %v2654_v56 = vpack.c.bf16 %v2646_v45, %v2645_v31  ;;  %3841 = vmatpush3.bf16.msra.mxu1 %v4001_v5 }
 0xb89   : > { %3842 = vmatprep.subr.bf16.mxu1 %v4002_v39 }
 0xb8a   : > { %3835 = vmatmul.mubr.msk.bf16.gmra.mrb[64].mxu0 %vm741_vm1, %v2654_v56 }
 0xb8c   : > { %3843 = vmatpush3.bf16.msra.mxu1 %v4002_v39 }
 0xb8d   : > { %3844 = vmatprep.subr.bf16.mxu1 %v4003_v14 }
 0xb90   : > { %3845 = vmatpush3.bf16.msra.mxu1 %v4003_v14 }
 0xb91   : > { %3846 = vmatprep.subr.bf16.mxu1 %v4004_v4 }
 0xb94   : > { %3847 = vmatpush3.bf16.msra.mxu1 %v4004_v4 }
 0xb95   : > { %3848 = vmatprep.subr.bf16.mxu1 %v4005_v28 }
 0xb98   : > { %3849 = vmatpush3.bf16.msra.mxu1 %v4005_v28 }
 0xb99   : > { %3850 = vmatprep.subr.bf16.mxu1 %v4006_v15 }
 0xb9c   : > { %3851 = vmatpush3.bf16.msra.mxu1 %v4006_v15 }
 0xb9d   : > { %3852 = vmatprep.subr.bf16.mxu1 %v4007_v32 }
 0xba0   : > { %3853 = vmatpush3.bf16.msra.mxu1 %v4007_v32 }
 0xc24   : > { %v3824_v2 = vpop.f32.mrb[52].mxu0 }
 0xc25   : > { %v5706_v1 = vadd.f32 %v3824_v2, %v5703_v62  ;;  %v2736_v49 = vpop.f32.mrb[53].mxu0 }
 0xc26   : > { %v5709_v21 = vadd.f32 %v5703_v62, %v2736_v49  ;;  %v3825_v51 = vpop.f32.mrb[54].mxu0 }
 0xc27   : > { %v2801_v6 = vmul.f32 %v5706_v1, %v5706_v1  ;;  %v5714_v43 = vadd.f32 %v3825_v51, %v5703_v62  ;;  %v2739_v12 = vpop.f32.mrb[55].mxu0 }
 0xc28   : > { %v2799_v48 = vmul.f32 %v5709_v21, %v5709_v21  ;;  %v5719_v30 = vadd.f32 %v5703_v62, %v2739_v12 }
 0xc29   : > { %v2817_v11 = vmul.f32 %v2801_v6, %v5706_v1  ;;  %v2802_v47 = vmul.f32 %v5714_v43, %v5714_v43 }
 0xc2a   : > { %v2815_v27 = vmul.f32 %v2799_v48, %v5709_v21  ;;  %v2800_v57 = vmul.f32 %v5719_v30, %v5719_v30 }
 0xc2b   : > { %v2833_v44 = vmul.f32 0.044715, %v2817_v11  ;;  %v2818_v42 = vmul.f32 %v2802_v47, %v5714_v43 }
 0xc2c   : > { %v2831_v29 = vmul.f32 0.044715, %v2815_v27  ;;  %v2816_v16 = vmul.f32 %v2800_v57, %v5719_v30 }
 0xc2d   : > { %v2849_v59 = vadd.f32 %v2833_v44, %v5706_v1  ;;  %v2834_v18 = vmul.f32 0.044715, %v2818_v42  ;;  %v3828_v36 = vpop.f32.mrb[56].mxu0 }
 0xc2e   : > { %v2847_v40 = vadd.f32 %v2831_v29, %v5709_v21  ;;  %v2832_v61 = vmul.f32 0.044715, %v2816_v16  ;;  %v5732_v23 = vadd.f32 %v3828_v36, %v5703_v62  ;;  %v2752_v20 = vpop.f32.mrb[57].mxu0 }
 0xc2f   : > { %v2865_v52 = vmul.f32 0.7978846, %v2849_v59  ;;  %v2850_v19 = vadd.f32 %v2834_v18, %v5714_v43  ;;  %v5736_v9 = vadd.f32 %v5703_v62, %v2752_v20  ;;  %v3829_v50 = vpop.f32.mrb[58].mxu0 }
 0xc30   : > { %v2863_v7 = vmul.f32 0.7978846, %v2847_v40  ;;  %v2848_v63 = vadd.f32 %v2832_v61, %v5719_v30  ;;  %v2805_v33 = vmul.f32 %v5732_v23, %v5732_v23  ;;  %v5742_v53 = vadd.f32 %v3829_v50, %v5703_v62  ;;  %v2755_v17 = vpop.f32.mrb[59].mxu0 }
 0xc31   : > { %4200 = vtanh.f32 %v2865_v52  ;;  %v2866_v38 = vmul.f32 0.7978846, %v2850_v19  ;;  %v2803_v41 = vmul.f32 %v5736_v9, %v5736_v9  ;;  %v5747_v34 = vadd.f32 %v5703_v62, %v2755_v17 }
 0xc32   : > { %4202 = vtanh.f32 %v2863_v7  ;;  %v2864_v60 = vmul.f32 0.7978846, %v2848_v63  ;;  %v2821_v58 = vmul.f32 %v2805_v33, %v5732_v23  ;;  %v2806_v35 = vmul.f32 %v5742_v53, %v5742_v53 }
 0xc33   : > { %4204 = vtanh.f32 %v2866_v38  ;;  %v2819_v13 = vmul.f32 %v2803_v41, %v5736_v9  ;;  %v2804_v10 = vmul.f32 %v5747_v34, %v5747_v34 }
 0xc34   : > { %4206 = vtanh.f32 %v2864_v60  ;;  %v2837_v3 = vmul.f32 0.044715, %v2821_v58  ;;  %v2822_v25 = vmul.f32 %v2806_v35, %v5742_v53 }
 0xc35   : > { %v2835_v54 = vmul.f32 0.044715, %v2819_v13  ;;  %v2820_v24 = vmul.f32 %v2804_v10, %v5747_v34  ;;  %v3832_v37 = vpop.f32.mrb[60].mxu0 }
 0xc36   : > { %v2853_v22 = vadd.f32 %v2837_v3, %v5732_v23  ;;  %v2838_v46 = vmul.f32 0.044715, %v2822_v25  ;;  %v5759_v8 = vadd.f32 %v3832_v37, %v5703_v62  ;;  %v2768_v55 = vpop.f32.mrb[61].mxu0 }
 0xc37   : > { %v2851_v26 = vadd.f32 %v2835_v54, %v5736_v9  ;;  %v2836_v31 = vmul.f32 0.044715, %v2820_v24  ;;  %v5763_v45 = vadd.f32 %v5703_v62, %v2768_v55  ;;  %v3833_v56 = vpop.f32.mrb[62].mxu0 }
 0xc38   : > { %v2869_v0 = vmul.f32 0.7978846, %v2853_v22  ;;  %v2854_v5 = vadd.f32 %v2838_v46, %v5742_v53  ;;  %v2809_v39 = vmul.f32 %v5759_v8, %v5759_v8  ;;  %v5769_v14 = vadd.f32 %v3833_v56, %v5703_v62  ;;  %v2771_v4 = vpop.f32.mrb[63].mxu0 }
 0xc39   : > { %v2867_v28 = vmul.f32 0.7978846, %v2851_v26  ;;  %v2852_v15 = vadd.f32 %v2836_v31, %v5747_v34  ;;  %v2807_v32 = vmul.f32 %v5763_v45, %v5763_v45  ;;  %v5775_v2 = vadd.f32 %v5703_v62, %v2771_v4 }
 0xc3a   : > { %4208 = vtanh.f32 %v2869_v0  ;;  %v2870_v49 = vmul.f32 0.7978846, %v2854_v5  ;;  %v2825_v51 = vmul.f32 %v2809_v39, %v5759_v8  ;;  %v2810_v6 = vmul.f32 %v5769_v14, %v5769_v14 }
 0xc3b   : > { %v4201_v12 = vpop.eup %4200  ;;  %4210 = vtanh.f32 %v2867_v28  ;;  %v2868_v48 = vmul.f32 0.7978846, %v2852_v15  ;;  %v2823_v11 = vmul.f32 %v2807_v32, %v5763_v45  ;;  %v2808_v47 = vmul.f32 %v5775_v2, %v5775_v2 }
 0xc3c   : > { %v4203_v27 = vpop.eup %4202  ;;  %v2897_v57 = vadd.f32 1.0, %v4201_v12  ;;  %4212 = vtanh.f32 %v2870_v49  ;;  %v2841_v44 = vmul.f32 0.044715, %v2825_v51  ;;  %v2826_v42 = vmul.f32 %v2810_v6, %v5769_v14 }
 0xc3d   : > { %v4205_v29 = vpop.eup %4204  ;;  %4214 = vtanh.f32 %v2868_v48  ;;  %v2839_v16 = vmul.f32 0.044715, %v2823_v11  ;;  %v2824_v59 = vmul.f32 %v2808_v47, %v5775_v2  ;;  %v2895_v18 = vadd.f32 1.0, %v4203_v27 }
 0xc3e   : > { %v4207_v36 = vpop.eup %4206  ;;  %v2913_v40 = vmul.f32 0.5, %v2897_v57  ;;  %v2898_v61 = vadd.f32 1.0, %v4205_v29  ;;  %v2857_v20 = vadd.f32 %v2841_v44, %v5759_v8  ;;  %v2842_v52 = vmul.f32 0.044715, %v2826_v42 }
 0xc3f   : > { %v2855_v19 = vadd.f32 %v2839_v16, %v5763_v45  ;;  %v2840_v50 = vmul.f32 0.044715, %v2824_v59  ;;  %v2896_v7 = vadd.f32 1.0, %v4207_v36  ;;  %v2911_v63 = vmul.f32 0.5, %v2895_v18 }
 0xc40   : > { %v2914_v33 = vmul.f32 0.5, %v2898_v61  ;;  %v2873_v17 = vmul.f32 0.7978846, %v2857_v20  ;;  %v2858_v38 = vadd.f32 %v2842_v52, %v5769_v14  ;;  %v2929_v35 = vmul.f32 %v2913_v40, %v5706_v1 }
 0xc41   : > { %v2871_v41 = vmul.f32 0.7978846, %v2855_v19  ;;  %v2856_v60 = vadd.f32 %v2840_v50, %v5775_v2  ;;  %v2912_v58 = vmul.f32 0.5, %v2896_v7  ;;  %v2927_v25 = vmul.f32 %v2911_v63, %v5709_v21 }
 0xc42   : > { %v2930_v13 = vmul.f32 %v2914_v33, %v5714_v43  ;;  %4216 = vtanh.f32 %v2873_v17  ;;  %v2874_v10 = vmul.f32 0.7978846, %v2858_v38 }
 0xc43   : > { %4218 = vtanh.f32 %v2871_v41  ;;  %v2872_v3 = vmul.f32 0.7978846, %v2856_v60  ;;  %v2928_v54 = vmul.f32 %v2912_v58, %v5719_v30 }
 0xc44   : > { %v4209_v24 = vpop.eup %4208  ;;  %v2944_v37 = vpack.c.bf16 %v2930_v13, %v2929_v35  ;;  %4220 = vtanh.f32 %v2874_v10 }
 0xc45   : > { %v4211_v22 = vpop.eup %4210  ;;  %4222 = vtanh.f32 %v2872_v3  ;;  %v2943_v46 = vpack.c.bf16 %v2928_v54, %v2927_v25  ;;  %v2901_v55 = vadd.f32 1.0, %v4209_v24 }
 0xc46   : > { %v4213_v26 = vpop.eup %4212  ;;  %v2899_v31 = vadd.f32 1.0, %v4211_v22 }
 0xc47   : > { %v4215_v1 = vpop.eup %4214  ;;  %3854 = vmatprep.mubr.bf16.mxu1 %v2943_v46  ;;  %v2902_v43 = vadd.f32 1.0, %v4213_v26  ;;  %v2917_v56 = vmul.f32 0.5, %v2901_v55 }
 0xc48   : > { %3855 = vmatmul.mubr.bf16.vlgmr.msra.gmra.mrb[44].mxu1 %v2944_v37  ;;  %v2900_v0 = vadd.f32 1.0, %v4215_v1  ;;  %v2915_v5 = vmul.f32 0.5, %v2899_v31 }
 0xc49   : > { %v2918_v39 = vmul.f32 0.5, %v2902_v43  ;;  %v2933_v30 = vmul.f32 %v2917_v56, %v5732_v23 }
 0xc4a   : > { %v2916_v21 = vmul.f32 0.5, %v2900_v0  ;;  %v2931_v15 = vmul.f32 %v2915_v5, %v5736_v9 }
 0xc4b   : > { %v2934_v4 = vmul.f32 %v2918_v39, %v5742_v53 }
 0xc4c   : > { %v4217_v28 = vpop.eup %4216  ;;  %v2932_v32 = vmul.f32 %v2916_v21, %v5747_v34 }
 0xc4d   : > { %v4219_v49 = vpop.eup %4218  ;;  %v2946_v51 = vpack.c.bf16 %v2934_v4, %v2933_v30  ;;  %v2905_v6 = vadd.f32 1.0, %v4217_v28 }
 0xc4e   : > { %v4221_v12 = vpop.eup %4220  ;;  %v2945_v48 = vpack.c.bf16 %v2932_v32, %v2931_v15  ;;  %v2903_v11 = vadd.f32 1.0, %v4219_v49 }
 0xc4f   : > { %v4223_v47 = vpop.eup %4222  ;;  %v2906_v27 = vadd.f32 1.0, %v4221_v12  ;;  %v2921_v57 = vmul.f32 0.5, %v2905_v6 }
 0xc50   : > { %3858 = vmatprep.mubr.bf16.mxu1 %v2945_v48  ;;  %v2904_v44 = vadd.f32 1.0, %v4223_v47  ;;  %v2919_v42 = vmul.f32 0.5, %v2903_v11 }
 0xc51   : > { %3859 = vmatmul.mubr.bf16.gmra.mrb[48].mxu1 %v2946_v51  ;;  %v2922_v23 = vmul.f32 0.5, %v2906_v27  ;;  %v2937_v29 = vmul.f32 %v2921_v57, %v5759_v8  ;;  %v5810_v51 = vld [vmem:[%s684_s19] ss:$0 sm:$0xff]  ;;  %v4248_v27 = vld [vmem:[#allocation2 + $0x10] sm:$0xff] }
 0xc52   : > { %v2920_v53 = vmul.f32 0.5, %v2904_v44  ;;  %v2935_v34 = vmul.f32 %v2919_v42, %v5763_v45 }
 0xc53   : > { %v2938_v9 = vmul.f32 %v2922_v23, %v5769_v14  ;;  %v4249_v23 = vld [vmem:[#allocation2] sm:$0xff] }
 0xc54   : > { %v2936_v16 = vmul.f32 %v2920_v53, %v5775_v2 }
 0xc55   : > { %v2948_v59 = vpack.c.bf16 %v2938_v9, %v2937_v29  ;;  %v4250_v9 = vld [vmem:[#allocation2 + $0x18] sm:$0xff] }
 0xc56   : > { %v2947_v18 = vpack.c.bf16 %v2936_v16, %v2935_v34  ;;  %v4251_v16 = vld [vmem:[#allocation2 + $0x8] sm:$0xff] }
 0xc58   : > { %3862 = vmatprep.mubr.bf16.mxu1 %v2947_v18 }
 0xc59   : > { %3863 = vmatmul.mubr.bf16.gmra.mrb[52].mxu1 %v2948_v59 }
 0xc5d   : > { %v3836_v36 = vpop.f32.mrb[64].mxu0 }
 0xc5e   : > { %v2793_v40 = vadd.f32 %v3836_v36, %v5703_v62  ;;  %v2784_v61 = vpop.f32.mrb[65].mxu0 }
 0xc5f   : > { %v2785_v20 = vadd.f32 %v5703_v62, %v2784_v61  ;;  %v3837_v52 = vpop.f32.mrb[66].mxu0 }
 0xc60   : > { %v2813_v19 = vmul.f32 %v2793_v40, %v2793_v40  ;;  %v2796_v8 = vadd.f32 %v3837_v52, %v5703_v62  ;;  %v2787_v50 = vpop.f32.mrb[67].mxu0  ;;  %v4252_v52 = vld [vmem:[#allocation2 + $0x30] sm:$0xff] }
 0xc61   : > { %v2811_v14 = vmul.f32 %v2785_v20, %v2785_v20  ;;  %v2788_v45 = vadd.f32 %v5703_v62, %v2787_v50 }
 0xc62   : > { %v2829_v7 = vmul.f32 %v2813_v19, %v2793_v40  ;;  %v2814_v2 = vmul.f32 %v2796_v8, %v2796_v8 }
 0xc63   : > { %v2827_v63 = vmul.f32 %v2811_v14, %v2785_v20  ;;  %v2812_v33 = vmul.f32 %v2788_v45, %v2788_v45  ;;  %v4253_v14 = vld [vmem:[#allocation2 + $0x20] sm:$0xff] }
 0xc64   : > { %v2845_v17 = vmul.f32 0.044715, %v2829_v7  ;;  %v2830_v38 = vmul.f32 %v2814_v2, %v2796_v8  ;;  %v4254_v2 = vld [vmem:[#allocation2 + $0x38] sm:$0xff] }
 0xc65   : > { %v2843_v41 = vmul.f32 0.044715, %v2827_v63  ;;  %v2828_v60 = vmul.f32 %v2812_v33, %v2788_v45  ;;  %v4255_v33 = vld [vmem:[#allocation2 + $0x28] sm:$0xff] }
 0xc66   : > { %v2861_v58 = vadd.f32 %v2845_v17, %v2793_v40  ;;  %v2846_v35 = vmul.f32 0.044715, %v2830_v38 }
 0xc67   : > { %v2859_v13 = vadd.f32 %v2843_v41, %v2785_v20  ;;  %v2844_v10 = vmul.f32 0.044715, %v2828_v60 }
 0xc68   : > { %v2877_v3 = vmul.f32 0.7978846, %v2861_v58  ;;  %v2862_v25 = vadd.f32 %v2846_v35, %v2796_v8 }
 0xc69   : > { %v2875_v54 = vmul.f32 0.7978846, %v2859_v13  ;;  %v2860_v24 = vadd.f32 %v2844_v10, %v2788_v45  ;;  %v4256_v13 = vld [vmem:[#allocation2 + $0x50] sm:$0xff] }
 0xc6a   : > { %4224 = vtanh.f32 %v2877_v3  ;;  %v2878_v37 = vmul.f32 0.7978846, %v2862_v25 }
 0xc6b   : > { %4226 = vtanh.f32 %v2875_v54  ;;  %v2876_v62 = vmul.f32 0.7978846, %v2860_v24  ;;  %v4257_v54 = vld [vmem:[#allocation2 + $0x40] sm:$0xff] }
 0xc6c   : > { %4228 = vtanh.f32 %v2878_v37 }
 0xc6d   : > { %4230 = vtanh.f32 %v2876_v62  ;;  %v4258_v62 = vld [vmem:[#allocation2 + $0x58] sm:$0xff] }
 0xc74   : > { %v4225_v22 = vpop.eup %4224 }
 0xc75   : > { %v4227_v46 = vpop.eup %4226  ;;  %v2909_v55 = vadd.f32 1.0, %v4225_v22 }
 0xc76   : > { %v4229_v26 = vpop.eup %4228  ;;  %v2907_v31 = vadd.f32 1.0, %v4227_v46  ;;  %v4259_v46 = vld [vmem:[#allocation2 + $0x48] sm:$0xff] }
 0xc77   : > { %v4231_v1 = vpop.eup %4230  ;;  %v2910_v43 = vadd.f32 1.0, %v4229_v26  ;;  %v2925_v56 = vmul.f32 0.5, %v2909_v55 }
 0xc78   : > { %v2908_v0 = vadd.f32 1.0, %v4231_v1  ;;  %v2923_v5 = vmul.f32 0.5, %v2907_v31 }
 0xc79   : > { %v2926_v39 = vmul.f32 0.5, %v2910_v43  ;;  %v2941_v30 = vmul.f32 %v2925_v56, %v2793_v40 }
 0xc7a   : > { %v2924_v21 = vmul.f32 0.5, %v2908_v0  ;;  %v2939_v28 = vmul.f32 %v2923_v5, %v2785_v20  ;;  %v4260_v0 = vld [vmem:[#allocation2 + $0x70] sm:$0xff] }
 0xc7b   : > { %v2942_v4 = vmul.f32 %v2926_v39, %v2796_v8 }
 0xc7c   : > { %v2940_v15 = vmul.f32 %v2924_v21, %v2788_v45 }
 0xc7d   : > { %v2950_v32 = vpack.c.bf16 %v2942_v4, %v2941_v30  ;;  %v4261_v30 = vld [vmem:[#allocation2 + $0x60] sm:$0xff] }
 0xc7e   : > { %v2949_v49 = vpack.c.bf16 %v2940_v15, %v2939_v28  ;;  %v4262_v15 = vld [vmem:[#allocation2 + $0x78] sm:$0xff] }
 0xc80   : > { %3866 = vmatprep.mubr.bf16.mxu1 %v2949_v49  ;;  %v4263_v49 = vld [vmem:[#allocation2 + $0x68] sm:$0xff] }
 0xc81   : > { %3867 = vmatmul.mubr.bf16.gmra.mrb[56].mxu1 %v2950_v32 }
 0xd1b   : > { %v3856_v6 = vpop.f32.mrb[44].mxu1 }
 0xd1c   : > { %v3065_v12 = vadd.f32 %v3856_v6, %v5810_v51  ;;  %v3056_v48 = vpop.f32.mrb[45].mxu1 }
 0xd1d   : > { %v3057_v11 = vadd.f32 %v5810_v51, %v3056_v48  ;;  %v3857_v47 = vpop.f32.mrb[46].mxu1 }
 0xd1e   : > { %v3121_v57 = vadd.f32 %v4248_v27, %v3065_v12  ;;  %v3068_v44 = vadd.f32 %v3857_v47, %v5810_v51  ;;  %v3059_v42 = vpop.f32.mrb[47].mxu1 }
 0xd1f   : > { %v3119_v53 = vadd.f32 %v4249_v23, %v3057_v11  ;;  %v3060_v29 = vadd.f32 %v5810_v51, %v3059_v42 }
 0xd20   : > { %3137 = vst.msk [vmem:[#allocation2 + $0x10] sm:$0xff] %vm741_vm1, %v3121_v57  ;;  %v3122_v34 = vadd.f32 %v4250_v9, %v3068_v44 }
 0xd21   : > { %3135 = vst.msk [vmem:[#allocation2] sm:$0xff] %vm741_vm1, %v3119_v53  ;;  %v3120_v59 = vadd.f32 %v4251_v16, %v3060_v29 }
 0xd22   : > { %3138 = vst.msk [vmem:[#allocation2 + $0x18] sm:$0xff] %vm741_vm1, %v3122_v34 }
 0xd23   : > { %3136 = vst.msk [vmem:[#allocation2 + $0x8] sm:$0xff] %vm741_vm1, %v3120_v59 }
 0xd24   : > { %v3860_v18 = vpop.f32.mrb[48].mxu1 }
 0xd25   : > { %v3081_v36 = vadd.f32 %v3860_v18, %v5810_v51  ;;  %v3072_v40 = vpop.f32.mrb[49].mxu1 }
 0xd26   : > { %v3073_v61 = vadd.f32 %v5810_v51, %v3072_v40  ;;  %v3861_v20 = vpop.f32.mrb[50].mxu1 }
 0xd27   : > { %v3125_v19 = vadd.f32 %v4252_v52, %v3081_v36  ;;  %v3084_v8 = vadd.f32 %v3861_v20, %v5810_v51  ;;  %v3075_v50 = vpop.f32.mrb[51].mxu1  ;;  %v3157_v11 = vld [vmem:[#allocation2 + $0x10] sm:$0xff] (!%p3453_p3) }
 0xd28   : > { %v3123_v45 = vadd.f32 %v4253_v14, %v3073_v61  ;;  %v3076_v7 = vadd.f32 %v5810_v51, %v3075_v50  ;;  %v3155_v12 = vld [vmem:[#allocation2] sm:$0xff] (!%p3453_p3) }
 0xd29   : > { %3141 = vst.msk [vmem:[#allocation2 + $0x30] sm:$0xff] %vm741_vm1, %v3125_v19  ;;  %v3126_v63 = vadd.f32 %v4254_v2, %v3084_v8  ;;  %3171 = vst.msk [vmem:[%s5971_s29] sm:$0xff] (!%p3453_p3), %vm741_vm1, %v3155_v12 }
 0xd2a   : > { %3139 = vst.msk [vmem:[#allocation2 + $0x20] sm:$0xff] %vm741_vm1, %v3123_v45  ;;  %v3124_v17 = vadd.f32 %v4255_v33, %v3076_v7  ;;  %v3156_v48 = vld [vmem:[#allocation2 + $0x8] sm:$0xff] (!%p3453_p3)  ;;  %3173 = vst.msk [vmem:[%s5972_s10 + $0x10] sm:$0xff] (!%p3453_p3), %vm741_vm1, %v3157_v11 }
 0xd2b   : > { %3142 = vst.msk [vmem:[#allocation2 + $0x38] sm:$0xff] %vm741_vm1, %v3126_v63  ;;  %3172 = vst.msk [vmem:[%s5972_s10 + $0x8] sm:$0xff] (!%p3453_p3), %vm741_vm1, %v3156_v48 }
 0xd2c   : > { %3140 = vst.msk [vmem:[#allocation2 + $0x28] sm:$0xff] %vm741_vm1, %v3124_v17  ;;  %v3864_v38 = vpop.f32.mrb[52].mxu1 }
 0xd2d   : > { %v3097_v41 = vadd.f32 %v3864_v38, %v5810_v51  ;;  %v3088_v60 = vpop.f32.mrb[53].mxu1 }
 0xd2e   : > { %v3089_v58 = vadd.f32 %v5810_v51, %v3088_v60  ;;  %v3865_v35 = vpop.f32.mrb[54].mxu1 }
 0xd2f   : > { %v3129_v10 = vadd.f32 %v4256_v13, %v3097_v41  ;;  %v3100_v3 = vadd.f32 %v3865_v35, %v5810_v51  ;;  %v3091_v25 = vpop.f32.mrb[55].mxu1 }
 0xd30   : > { %v3127_v24 = vadd.f32 %v4257_v54, %v3089_v58  ;;  %v3092_v37 = vadd.f32 %v5810_v51, %v3091_v25  ;;  %v3161_v57 = vld [vmem:[#allocation2 + $0x30] sm:$0xff] (!%p3453_p3) }
 0xd31   : > { %3145 = vst.msk [vmem:[#allocation2 + $0x50] sm:$0xff] %vm741_vm1, %v3129_v10  ;;  %v3130_v22 = vadd.f32 %v4258_v62, %v3100_v3  ;;  %v3159_v47 = vld [vmem:[#allocation2 + $0x20] sm:$0xff] (!%p3453_p3)  ;;  %3177 = vst.msk [vmem:[%s5972_s10 + $0x30] sm:$0xff] (!%p3453_p3), %vm741_vm1, %v3161_v57 }
 0xd32   : > { %3143 = vst.msk [vmem:[#allocation2 + $0x40] sm:$0xff] %vm741_vm1, %v3127_v24  ;;  %v3128_v55 = vadd.f32 %v4259_v46, %v3092_v37  ;;  %3175 = vst.msk [vmem:[%s5972_s10 + $0x20] sm:$0xff] (!%p3453_p3), %vm741_vm1, %v3159_v47  ;;  %v3162_v44 = vld [vmem:[#allocation2 + $0x38] sm:$0xff] (!%p3453_p3) }
 0xd33   : > { %3146 = vst.msk [vmem:[#allocation2 + $0x58] sm:$0xff] %vm741_vm1, %v3130_v22  ;;  %v3160_v27 = vld [vmem:[#allocation2 + $0x28] sm:$0xff] (!%p3453_p3)  ;;  %3178 = vst.msk [vmem:[%s5972_s10 + $0x38] sm:$0xff] (!%p3453_p3), %vm741_vm1, %v3162_v44 }
 0xd34   : > { %3144 = vst.msk [vmem:[#allocation2 + $0x48] sm:$0xff] %vm741_vm1, %v3128_v55  ;;  %3176 = vst.msk [vmem:[%s5972_s10 + $0x28] sm:$0xff] (!%p3453_p3), %vm741_vm1, %v3160_v27 }
 0xd38   : > { %v3165_v53 = vld [vmem:[#allocation2 + $0x50] sm:$0xff] (!%p3453_p3) }
 0xd39   : > { %v3163_v42 = vld [vmem:[#allocation2 + $0x40] sm:$0xff] (!%p3453_p3)  ;;  %3181 = vst.msk [vmem:[%s5972_s10 + $0x50] sm:$0xff] (!%p3453_p3), %vm741_vm1, %v3165_v53 }
 0xd3a   : > { %3179 = vst.msk [vmem:[%s5972_s10 + $0x40] sm:$0xff] (!%p3453_p3), %vm741_vm1, %v3163_v42  ;;  %v3166_v29 = vld [vmem:[#allocation2 + $0x58] sm:$0xff] (!%p3453_p3) }
 0xd3b   : > { %v3164_v23 = vld [vmem:[#allocation2 + $0x48] sm:$0xff] (!%p3453_p3)  ;;  %3182 = vst.msk [vmem:[%s5972_s10 + $0x58] sm:$0xff] (!%p3453_p3), %vm741_vm1, %v3166_v29 }
 0xd3c   : > { %3180 = vst.msk [vmem:[%s5972_s10 + $0x48] sm:$0xff] (!%p3453_p3), %vm741_vm1, %v3164_v23 }
 0xd54   : > { %v3868_v26 = vpop.f32.mrb[56].mxu1 }
 0xd55   : > { %v3113_v31 = vadd.f32 %v3868_v26, %v5810_v51  ;;  %v3104_v1 = vpop.f32.mrb[57].mxu1 }
 0xd56   : > { %v3105_v43 = vadd.f32 %v5810_v51, %v3104_v1  ;;  %v3869_v56 = vpop.f32.mrb[58].mxu1  ;;  %3154 = sbr.rel (%p3453_p3) target bundleno = 3429 (0xd65), region = 92 }
 0xd57   : > { %v3133_v5 = vadd.f32 %v4260_v0, %v3113_v31  ;;  %v3116_v39 = vadd.f32 %v3869_v56, %v5810_v51  ;;  %v3107_v21 = vpop.f32.mrb[59].mxu1 }
 0xd58   : > { %v3131_v4 = vadd.f32 %v4261_v30, %v3105_v43  ;;  %v3108_v28 = vadd.f32 %v5810_v51, %v3107_v21  ;;  %v3158_v51 = vld [vmem:[#allocation2 + $0x18] sm:$0xff] (!%p3453_p3) }
 0xd59   : > { %3149 = vst.msk [vmem:[#allocation2 + $0x70] sm:$0xff] %vm741_vm1, %v3133_v5  ;;  %v3134_v32 = vadd.f32 %v4262_v15, %v3116_v39  ;;  %3174 = vst.msk [vmem:[%s5972_s10 + $0x18] sm:$0xff] (!%p3453_p3), %vm741_vm1, %v3158_v51 }
 0xd5a   : > { %3147 = vst.msk [vmem:[#allocation2 + $0x60] sm:$0xff] %vm741_vm1, %v3131_v4  ;;  %v3132_v6 = vadd.f32 %v4263_v49, %v3108_v28 }
 0xd5b   : > { %3150 = vst.msk [vmem:[#allocation2 + $0x78] sm:$0xff] %vm741_vm1, %v3134_v32 }
 0xd5c   : > { %3148 = vst.msk [vmem:[#allocation2 + $0x68] sm:$0xff] %vm741_vm1, %v3132_v6 }
 0xd60   : > { %v3169_v16 = vld [vmem:[#allocation2 + $0x70] sm:$0xff] }
 0xd61   : > { %v3167_v9 = vld [vmem:[#allocation2 + $0x60] sm:$0xff]  ;;  %3185 = vst.msk [vmem:[%s5972_s10 + $0x70] sm:$0xff] %vm741_vm1, %v3169_v16 }
 0xd62   : > { %3183 = vst.msk [vmem:[%s5972_s10 + $0x60] sm:$0xff] %vm741_vm1, %v3167_v9  ;;  %v3170_v59 = vld [vmem:[#allocation2 + $0x78] sm:$0xff] }
 0xd63   : > { %v3168_v34 = vld [vmem:[#allocation2 + $0x68] sm:$0xff]  ;;  %3186 = vst.msk [vmem:[%s5972_s10 + $0x78] sm:$0xff] %vm741_vm1, %v3170_v59 }
 0xd64   : > { %3184 = vst.msk [vmem:[%s5972_s10 + $0x68] sm:$0xff] %vm741_vm1, %v3168_v34 }
 0xd65 PF: > { %s5973_s16 = sld [smem:[#allocation11_spill]]  ;;  %s5974_s29 = sld [smem:[#allocation9_spill]] }
 0xd66   : > { %s5975_s30 = sld [smem:[#allocation10_spill]]  ;;  %s5976_s15 = sld [smem:[#allocation12_spill]] }
 0xd6b   : > { %p27_p0 = scmp.ge.s32.totalorder %s5973_s16, 4  }
 0xd6d   :  { %29 = sbr.rel (!%p27_p0) target bundleno = 11 (0xb), region = 167 }
 0xd74   :  { %3198 = vsyncpa [#allocation4], 1 }
 0xd75   :  { %3200 = vsyncpa [#allocation4 + $0x1], 1 }
 0xd76   :  { %3201 = vsyncpa [#allocation6], 1 }
 0xd77   :  { %3203 = vsyncpa [#allocation6 + $0x1], 1 }

</bundles_post_ra>
